<compile_context>
chip_gen: v7x
topology: tpu7x:2x2x1
jax: 0.10.0
libtpu: 0.0.40
codegen_flags: <defaults>
</compile_context>

<pallas_src>
import functools
import numpy as np
import jax
import jax.numpy as jnp
from jax.experimental import pallas as pl
from jax.experimental.pallas import tpu as pltpu


# ------------------------------ Pallas kernel ------------------------------

def _sparse_classifier_kernel(*refs, T, F, n_layers, n_enc, layer_meta, Fp, S, kk):
    """One batch element per grid step.

    Input refs:
      [0] frames (1, T, n_fft)   [1] cre (n_fft, F)   [2] cim (n_fft, F)
      [3 .. 3+2L)   per fused conv layer: M (3, K, N), bias (1, N)
      [3+2L .. +5)  block-diag SAE/cls weights: we (NA, Fp*S), be (1, Fp*S),
                    wd (Fp*S, NA), bd (1, NA), wc (Fp*S, Fp*nC)
    Output refs:  A (1,T,NA), x_hat (1,T,NX), Z (1,T,Fp*S), A_hat (1,T,NA), Y (1,T,Fp*nC)
    Scratch:      buf0, buf1 (T+2, W) ping-pong feature slabs (rows 0 / T+1 = time pad).
    """
    frames_ref, cre_ref, cim_ref = refs[0], refs[1], refs[2]
    lrefs = refs[3:3 + 2 * n_layers]
    p = 3 + 2 * n_layers
    we_ref, be_ref, wd_ref, bd_ref, wc_ref = refs[p:p + 5]
    p += 5
    a_ref, xhat_ref, z_ref, ahat_ref, y_ref = refs[p:p + 5]
    buf0, buf1 = refs[p + 5], refs[p + 6]

    # Zero only the time-padding rows (never rewritten; keeps batch axis carry-free).
    zrow = jnp.zeros((1, buf0.shape[1]), jnp.float32)
    buf0[0:1, :] = zrow
    buf0[T + 1:T + 2, :] = zrow
    buf1[0:1, :] = zrow
    buf1[T + 1:T + 2, :] = zrow

    # --- Spectrogram: power=2, periodic Hann window, then log(1 + |STFT|^2) ---
    fr = frames_ref[0]                                            # (T, n_fft)
    re = jnp.dot(fr, cre_ref[...], preferred_element_type=jnp.float32)
    im = jnp.dot(fr, cim_ref[...], preferred_element_type=jnp.float32)
    buf0[1:T + 1, 0:F] = jnp.log(1.0 + re * re + im * im)         # (T, F)

    # --- fused (upsample+)Conv2d(5,3)+BN(+LeakyReLU) stack: 3 shifted matmuls each ---
    cur, nxt = buf0, buf1
    latent = None
    for l in range(n_layers):
        K, N, use_act, slope = layer_meta[l]
        m_ref, b_ref = lrefs[2 * l], lrefs[2 * l + 1]
        acc = jnp.dot(cur[0:T, 0:K], m_ref[0], preferred_element_type=jnp.float32)
        acc = acc + jnp.dot(cur[1:T + 1, 0:K], m_ref[1],
                            preferred_element_type=jnp.float32)
        acc = acc + jnp.dot(cur[2:T + 2, 0:K], m_ref[2],
                            preferred_element_type=jnp.float32)
        acc = acc + b_ref[...]                                    # folded conv+BN bias
        if use_act:                                               # LeakyReLU
            acc = jnp.where(acc >= 0.0, acc, acc * slope)
        if l == n_enc - 1:                                        # latent A
            a_ref[0] = acc
            latent = acc
        if l == n_layers - 1:                                     # decoder output x_hat
            xhat_ref[0] = acc
        else:
            nxt[1:T + 1, 0:N] = acc
            cur, nxt = nxt, cur

    # --- SAE encode + ReLU + per-(t,f) top-k threshold + decode + classifier head ---
    h = jnp.dot(latent, we_ref[...], preferred_element_type=jnp.float32) + be_ref[...]
    h = jnp.maximum(h, 0.0)                                       # ReLU, (T, Fp*S)
    parts = []
    for f in range(Fp):                                           # per freq group of S
        hf = h[:, f * S:(f + 1) * S]
        cur_h = hf
        thr = jnp.max(cur_h, axis=-1, keepdims=True)
        for _ in range(kk - 1):                                   # k-th largest per row
            cur_h = jnp.where(cur_h >= thr, -jnp.inf, cur_h)
            thr = jnp.max(cur_h, axis=-1, keepdims=True)
        parts.append(jnp.where(hf >= thr, hf, 0.0))
    z = parts[0] if Fp == 1 else jnp.concatenate(parts, axis=-1)  # (T, Fp*S)
    z_ref[0] = z
    ahat_ref[0] = jnp.dot(z, wd_ref[...],
                          preferred_element_type=jnp.float32) + bd_ref[...]
    y_ref[0] = jnp.dot(z, wc_ref[...], preferred_element_type=jnp.float32)


# --------------------- parameter composition (host side, NumPy) -------------------

def _build_upsample_matrix(H):
    # nn.Upsample(scale_factor=(2,1), mode='bilinear', align_corners=False), freq axis.
    H2 = 2 * H
    i = np.arange(H2, dtype=np.float64)
    src = np.maximum((i + 0.5) * 0.5 - 0.5, 0.0)
    i0 = np.floor(src).astype(np.int64)
    frac = src - i0
    i1 = np.minimum(i0 + 1, H - 1)
    U = np.zeros((H2, H), dtype=np.float32)
    U[np.arange(H2), i0] += (1.0 - frac).astype(np.float32)
    U[np.arange(H2), i1] += frac.astype(np.float32)
    return U


def _build_fused_layers(params, cfg, F):
    """Compose each (upsample+)conv+BN layer into 3 per-time-tap matrices + bias.

    Flattened feature index convention: j = f * C + c (freq-major, channel-minor),
    so  out_flat[t] = sum_dx x_flat[t + dx - 1] @ M_dx  reproduces the conv.
    """
    kh, kw = 5, 3
    slope = float(cfg['activation_slope'])
    mats, biases, metas = [], [], []
    H = F

    # Encoder: Conv2d(5,3) stride (2,1) pad (2,1) + BN + LeakyReLU.
    for (w, scale, bias) in params['enc']:
        w = np.asarray(w); scale = np.asarray(scale); bias = np.asarray(bias)
        C_out, C_in = w.shape[0], w.shape[1]
        H_out = (H + 2 * 2 - kh) // 2 + 1
        w_s = w * scale[:, None, None, None]
        Ms = []
        for dx in range(kw):
            M = np.zeros((H * C_in, H_out * C_out), np.float32)
            for dy in range(kh):
                sel = np.zeros((H, H_out), np.float32)            # sel[f,o] = [f == 2o+dy-2]
                for o in range(H_out):
                    fidx = 2 * o + dy - 2
                    if 0 <= fidx < H:
                        sel[fidx, o] = 1.0
                M += np.kron(sel, w_s[:, :, dy, dx].T)
            Ms.append(M)
        mats.append(jnp.asarray(np.stack(Ms, 0)))
        biases.append(jnp.asarray(np.tile(bias, H_out).reshape(1, H_out * C_out)))
        metas.append((H * C_in, H_out * C_out, True, slope))
        H = H_out

    # Decoder: bilinear upsample (2,1) folded into Conv2d(5,3) stride 1 pad (2,1) + BN.
    for (w, scale, bias, use_act) in params['dec']:
        w = np.asarray(w); scale = np.asarray(scale); bias = np.asarray(bias)
        C_out, C_in = w.shape[0], w.shape[1]
        H_up = 2 * H
        H_out = H_up
        U = _build_upsample_matrix(H)                             # (2H, H)
        w_s = w * scale[:, None, None, None]
        Ms = []
        for dx in range(kw):
            M = np.zeros((H * C_in, H_out * C_out), np.float32)
            for dy in range(kh):
                sel = np.zeros((H_out, H_up), np.float32)         # shift with zero pad
                for o in range(H_out):
                    r = o + dy - 2
                    if 0 <= r < H_up:
                        sel[o, r] = 1.0
                AU = (sel @ U).T                                  # (H_in, H_out)
                M += np.kron(AU, w_s[:, :, dy, dx].T)
            Ms.append(M)
        mats.append(jnp.asarray(np.stack(Ms, 0)))
        biases.append(jnp.asarray(np.tile(bias, H_out).reshape(1, H_out * C_out)))
        metas.append((H * C_in, H_out * C_out, bool(use_act), slope))
        H = H_out

    return mats, biases, tuple(metas)


# ------------------------------- JAX glue ---------------------------------

def normalize_wav(wav):
    energy = jnp.sum(wav ** 2, axis=-1, keepdims=True)
    energy = jnp.maximum(energy, 1e-6)
    return wav / jnp.sqrt(energy)


def make_params(key, cfg):
    hid = cfg['hid_dim']
    kh, kw = 5, 3
    eps = 1e-5
    params = {'enc': [], 'dec': []}

    def conv_init(k, cout, cin):
        k1, k2 = jax.random.split(k)
        fan_in = cin * kh * kw
        w = jax.random.normal(k1, (cout, cin, kh, kw), jnp.float32) / np.sqrt(fan_in)
        b = 0.01 * jax.random.normal(k2, (cout,), jnp.float32)
        gamma = jnp.ones((cout,), jnp.float32)
        beta = jnp.zeros((cout,), jnp.float32)
        rmean = jnp.zeros((cout,), jnp.float32)
        rvar = jnp.ones((cout,), jnp.float32)
        scale = gamma / jnp.sqrt(rvar + eps)              # eval-mode BN folded
        bias = (b - rmean) * scale + beta
        return w, scale, bias

    keys = jax.random.split(key, 16)
    ki = 0
    in_c = cfg['input_channels']
    for h in hid:
        params['enc'].append(conv_init(keys[ki], h, in_c)); ki += 1
        in_c = h
    rev = list(reversed(hid))
    n = len(rev)
    for jj, h in enumerate(rev):
        out_c = cfg['input_channels'] if jj == n - 1 else rev[jj + 1]
        w, scale, bias = conv_init(keys[ki], out_c, h); ki += 1
        params['dec'].append((w, scale, bias, jj != n - 1))
    D = hid[-1]; S = cfg['sae_dim']
    k1, k2, k3, k4, k5 = jax.random.split(keys[ki], 5)
    params['sae'] = {
        'w_enc': jax.random.normal(k1, (D, S), jnp.float32) / np.sqrt(D),
        'b_enc': 0.01 * jax.random.normal(k2, (S,), jnp.float32),
        'w_dec': jax.random.normal(k3, (S, D), jnp.float32) / np.sqrt(S),
        'b_dec': 0.01 * jax.random.normal(k4, (D,), jnp.float32),
    }
    params['cls_w'] = jax.random.normal(k5, (S, cfg['n_classes']),
                                        jnp.float32) / np.sqrt(S)
    return params


def sparse_classifier_forward(wav, params, cfg):
    n_fft, hop = cfg['n_fft'], cfg['hop_length']
    B = wav.shape[0]
    C0 = cfg['input_channels']

    wav = normalize_wav(wav)

    # --- framing for torchaudio.Spectrogram (center=True, reflect pad) -----------------
    sig = wav.reshape(B, -1)
    L = sig.shape[-1]
    pad = n_fft // 2
    sp = jnp.pad(sig, ((0, 0), (pad, pad)), mode='reflect')
    T = 1 + L // hop
    idx = np.arange(T)[:, None] * hop + np.arange(n_fft)[None, :]
    frames = sp[:, idx]                                            # (B, T, n_fft)

    F = n_fft // 2 + 1
    n = np.arange(n_fft, dtype=np.float64)[:, None]
    k = np.arange(F, dtype=np.float64)[None, :]
    win = 0.5 - 0.5 * np.cos(2.0 * np.pi * np.arange(n_fft) / n_fft)   # periodic Hann
    ang = 2.0 * np.pi * n * k / n_fft
    cre = jnp.asarray((win[:, None] * np.cos(ang)).astype(np.float32))   # (n_fft, F)
    cim = jnp.asarray((-win[:, None] * np.sin(ang)).astype(np.float32))  # (n_fft, F)

    # --- compose conv/upsample/BN stack and block-diagonal SAE/cls weights ------------
    mats, biases, metas = _build_fused_layers(params, cfg, F)
    n_layers = len(metas)
    n_enc = len(params['enc'])
    NA = metas[n_enc - 1][1]                 # latent flat width = Fp * C_lat
    NX = metas[-1][1]                        # x_hat flat width  = F_dec * C0
    C_lat = params['enc'][-1][0].shape[0]
    Fp = NA // C_lat
    F_dec = NX // C0
    wbuf = max([F] + [m[0] for m in metas] + [m[1] for m in metas])
    wbuf = ((wbuf + 127) // 128) * 128       # lane-aligned scratch width

    sae = params['sae']
    S = sae['w_enc'].shape[1]
    nC = params['cls_w'].shape[1]
    kk = max(1, int(cfg['sparsity'] * cfg['sae_dim']))

    eye = np.eye(Fp, dtype=np.float32)
    we_blk = jnp.asarray(np.kron(eye, np.asarray(sae['w_enc'])))     # (NA, Fp*S)
    be_blk = jnp.asarray(np.tile(np.asarray(sae['b_enc']), Fp).reshape(1, Fp * S))
    wd_blk = jnp.asarray(np.kron(eye, np.asarray(sae['w_dec'])))     # (Fp*S, NA)
    bd_blk = jnp.asarray(np.tile(np.asarray(sae['b_dec']), Fp).reshape(1, NA))
    wc_blk = jnp.asarray(np.kron(eye, np.asarray(params['cls_w']))) # (Fp*S, Fp*nC)

    # --- single fused pallas_call: one grid step per batch element --------------------
    kernel = functools.partial(_sparse_classifier_kernel, T=T, F=F,
                               n_layers=n_layers, n_enc=n_enc, layer_meta=metas,
                               Fp=Fp, S=S, kk=kk)

    in_specs = [pl.BlockSpec((1, T, n_fft), lambda b: (b, 0, 0)),
                pl.BlockSpec((n_fft, F), lambda b: (0, 0)),
                pl.BlockSpec((n_fft, F), lambda b: (0, 0))]
    ins = [frames, cre, cim]
    for l in range(n_layers):
        K, N = metas[l][0], metas[l][1]
        in_specs.append(pl.BlockSpec((3, K, N), lambda b: (0, 0, 0)))
        in_specs.append(pl.BlockSpec((1, N), lambda b: (0, 0)))
        ins += [mats[l], biases[l]]
    in_specs += [pl.BlockSpec((NA, Fp * S), lambda b: (0, 0)),
                 pl.BlockSpec((1, Fp * S), lambda b: (0, 0)),
                 pl.BlockSpec((Fp * S, NA), lambda b: (0, 0)),
                 pl.BlockSpec((1, NA), lambda b: (0, 0)),
                 pl.BlockSpec((Fp * S, Fp * nC), lambda b: (0, 0))]
    ins += [we_blk, be_blk, wd_blk, bd_blk, wc_blk]

    out_shape = (jax.ShapeDtypeStruct((B, T, NA), jnp.float32),      # A
                 jax.ShapeDtypeStruct((B, T, NX), jnp.float32),      # x_hat
                 jax.ShapeDtypeStruct((B, T, Fp * S), jnp.float32),  # Z
                 jax.ShapeDtypeStruct((B, T, NA), jnp.float32),      # A_hat
                 jax.ShapeDtypeStruct((B, T, Fp * nC), jnp.float32)) # y_hat
    out_specs = (pl.BlockSpec((1, T, NA), lambda b: (b, 0, 0)),
                 pl.BlockSpec((1, T, NX), lambda b: (b, 0, 0)),
                 pl.BlockSpec((1, T, Fp * S), lambda b: (b, 0, 0)),
                 pl.BlockSpec((1, T, NA), lambda b: (b, 0, 0)),
                 pl.BlockSpec((1, T, Fp * nC), lambda b: (b, 0, 0)))

    a_flat, xhat_flat, z_flat, ahat_flat, y_flat = pl.pallas_call(
        kernel,
        out_shape=out_shape,
        grid=(B,),
        in_specs=in_specs,
        out_specs=out_specs,
        scratch_shapes=[pltpu.VMEM((T + 2, wbuf), jnp.float32),
                        pltpu.VMEM((T + 2, wbuf), jnp.float32)],
        compiler_params=pltpu.CompilerParams(dimension_semantics=("parallel",)),
    )(*ins)

    # --- reassemble PyTorch-style output layouts (tiny arrays, plain JAX) --------------
    A = a_flat.reshape(B, T, Fp, C_lat).transpose(0, 3, 2, 1)         # (B, C, Fp, T)
    A_hat = ahat_flat.reshape(B, T, Fp, C_lat).transpose(0, 3, 2, 1)  # (B, C, Fp, T)
    Z = z_flat.reshape(B, T, Fp, S).transpose(0, 2, 1, 3)             # (B, Fp, T, S)
    y_hat = y_flat.reshape(B, T, Fp, nC).transpose(0, 2, 1, 3)        # (B, Fp, T, nC)
    x_hat = xhat_flat.reshape(B, T, F_dec, C0).transpose(0, 3, 2, 1)  # (B, C0, F_dec, T)
    return y_hat, x_hat, A_hat, A, Z


if __name__ == "__main__":
    cfg = dict(n_classes=10,
               n_fft=64, hop_length=16, win_length=64,
               input_channels=1, hid_dim=[4, 8, 16, 32],
               activation_slope=0.2, sae_dim=64, sparsity=0.05)
    wav = jax.random.normal(jax.random.PRNGKey(0), (2, 1, 512), jnp.float32)
    params = make_params(jax.random.PRNGKey(42), cfg)
    outs = sparse_classifier_forward(wav, params, cfg)
    jax.block_until_ready(outs)
    print("KERNEL_OK")
</pallas_src>

<mosaic_0001>
module attributes {stable_mosaic.version = 11 : i64} {
  func.func @_sparse_classifier_kernel(%arg0: i32, %arg1: memref<1x33x64xf32, #tpu.memory_space<vmem>>, %arg2: memref<64x33xf32, #tpu.memory_space<vmem>>, %arg3: memref<64x33xf32, #tpu.memory_space<vmem>>, %arg4: memref<3x33x68xf32, #tpu.memory_space<vmem>>, %arg5: memref<1x68xf32, #tpu.memory_space<vmem>>, %arg6: memref<3x68x72xf32, #tpu.memory_space<vmem>>, %arg7: memref<1x72xf32, #tpu.memory_space<vmem>>, %arg8: memref<3x72x80xf32, #tpu.memory_space<vmem>>, %arg9: memref<1x80xf32, #tpu.memory_space<vmem>>, %arg10: memref<3x80x96xf32, #tpu.memory_space<vmem>>, %arg11: memref<1x96xf32, #tpu.memory_space<vmem>>, %arg12: memref<3x96x96xf32, #tpu.memory_space<vmem>>, %arg13: memref<1x96xf32, #tpu.memory_space<vmem>>, %arg14: memref<3x96x96xf32, #tpu.memory_space<vmem>>, %arg15: memref<1x96xf32, #tpu.memory_space<vmem>>, %arg16: memref<3x96x96xf32, #tpu.memory_space<vmem>>, %arg17: memref<1x96xf32, #tpu.memory_space<vmem>>, %arg18: memref<3x96x48xf32, #tpu.memory_space<vmem>>, %arg19: memref<1x48xf32, #tpu.memory_space<vmem>>, %arg20: memref<96x192xf32, #tpu.memory_space<vmem>>, %arg21: memref<1x192xf32, #tpu.memory_space<vmem>>, %arg22: memref<192x96xf32, #tpu.memory_space<vmem>>, %arg23: memref<1x96xf32, #tpu.memory_space<vmem>>, %arg24: memref<192x30xf32, #tpu.memory_space<vmem>>, %arg25: memref<1x33x96xf32, #tpu.memory_space<vmem>>, %arg26: memref<1x33x48xf32, #tpu.memory_space<vmem>>, %arg27: memref<1x33x192xf32, #tpu.memory_space<vmem>>, %arg28: memref<1x33x96xf32, #tpu.memory_space<vmem>>, %arg29: memref<1x33x30xf32, #tpu.memory_space<vmem>>, %arg30: memref<35x128xf32, #tpu.memory_space<vmem>>, %arg31: memref<35x128xf32, #tpu.memory_space<vmem>>) attributes {dimension_semantics = [#tpu.dimension_semantics<parallel>], iteration_bounds = array<i64: 2>, scalar_prefetch = 0 : i64, scratch_operands = 2 : i64, tpu.core_type = #tpu.core_type<tc>, window_params = [{transform_indices = @transform_0, window_bounds = array<i64: 1, 33, 64>}, {pipeline_mode = #tpu.pipeline_mode<synchronous>, transform_indices = @transform_1, window_bounds = array<i64: 64, 33>}, {pipeline_mode = #tpu.pipeline_mode<synchronous>, transform_indices = @transform_2, window_bounds = array<i64: 64, 33>}, {pipeline_mode = #tpu.pipeline_mode<synchronous>, transform_indices = @transform_3, window_bounds = array<i64: 3, 33, 68>}, {pipeline_mode = #tpu.pipeline_mode<synchronous>, transform_indices = @transform_4, window_bounds = array<i64: 1, 68>}, {pipeline_mode = #tpu.pipeline_mode<synchronous>, transform_indices = @transform_5, window_bounds = array<i64: 3, 68, 72>}, {pipeline_mode = #tpu.pipeline_mode<synchronous>, transform_indices = @transform_6, window_bounds = array<i64: 1, 72>}, {pipeline_mode = #tpu.pipeline_mode<synchronous>, transform_indices = @transform_7, window_bounds = array<i64: 3, 72, 80>}, {pipeline_mode = #tpu.pipeline_mode<synchronous>, transform_indices = @transform_8, window_bounds = array<i64: 1, 80>}, {pipeline_mode = #tpu.pipeline_mode<synchronous>, transform_indices = @transform_9, window_bounds = array<i64: 3, 80, 96>}, {pipeline_mode = #tpu.pipeline_mode<synchronous>, transform_indices = @transform_10, window_bounds = array<i64: 1, 96>}, {pipeline_mode = #tpu.pipeline_mode<synchronous>, transform_indices = @transform_11, window_bounds = array<i64: 3, 96, 96>}, {pipeline_mode = #tpu.pipeline_mode<synchronous>, transform_indices = @transform_12, window_bounds = array<i64: 1, 96>}, {pipeline_mode = #tpu.pipeline_mode<synchronous>, transform_indices = @transform_13, window_bounds = array<i64: 3, 96, 96>}, {pipeline_mode = #tpu.pipeline_mode<synchronous>, transform_indices = @transform_14, window_bounds = array<i64: 1, 96>}, {pipeline_mode = #tpu.pipeline_mode<synchronous>, transform_indices = @transform_15, window_bounds = array<i64: 3, 96, 96>}, {pipeline_mode = #tpu.pipeline_mode<synchronous>, transform_indices = @transform_16, window_bounds = array<i64: 1, 96>}, {pipeline_mode = #tpu.pipeline_mode<synchronous>, transform_indices = @transform_17, window_bounds = array<i64: 3, 96, 48>}, {pipeline_mode = #tpu.pipeline_mode<synchronous>, transform_indices = @transform_18, window_bounds = array<i64: 1, 48>}, {pipeline_mode = #tpu.pipeline_mode<synchronous>, transform_indices = @transform_19, window_bounds = array<i64: 96, 192>}, {pipeline_mode = #tpu.pipeline_mode<synchronous>, transform_indices = @transform_20, window_bounds = array<i64: 1, 192>}, {pipeline_mode = #tpu.pipeline_mode<synchronous>, transform_indices = @transform_21, window_bounds = array<i64: 192, 96>}, {pipeline_mode = #tpu.pipeline_mode<synchronous>, transform_indices = @transform_22, window_bounds = array<i64: 1, 96>}, {pipeline_mode = #tpu.pipeline_mode<synchronous>, transform_indices = @transform_23, window_bounds = array<i64: 192, 30>}, {transform_indices = @transform_24, window_bounds = array<i64: 1, 33, 96>}, {transform_indices = @transform_25, window_bounds = array<i64: 1, 33, 48>}, {transform_indices = @transform_26, window_bounds = array<i64: 1, 33, 192>}, {transform_indices = @transform_27, window_bounds = array<i64: 1, 33, 96>}, {transform_indices = @transform_28, window_bounds = array<i64: 1, 33, 30>}]} {
    %cst = arith.constant 0.000000e+00 : f32
    %0 = vector.broadcast %cst : f32 to vector<1x128xf32>
    %c0 = arith.constant 0 : index
    %c0_0 = arith.constant 0 : index
    %1 = vector.load %arg30[%c0, %c0_0] : memref<35x128xf32, #tpu.memory_space<vmem>>, vector<1x128xf32>
    tpu.vector_store %arg30[%c0, %c0_0], %0 {strides = array<i32>} : memref<35x128xf32, #tpu.memory_space<vmem>>, vector<1x128xf32>,
    %c34 = arith.constant 34 : index
    %c0_1 = arith.constant 0 : index
    %2 = vector.load %arg30[%c34, %c0_1] : memref<35x128xf32, #tpu.memory_space<vmem>>, vector<1x128xf32>
    tpu.vector_store %arg30[%c34, %c0_1], %0 {strides = array<i32>} : memref<35x128xf32, #tpu.memory_space<vmem>>, vector<1x128xf32>,
    %c0_2 = arith.constant 0 : index
    %c0_3 = arith.constant 0 : index
    %3 = vector.load %arg31[%c0_2, %c0_3] : memref<35x128xf32, #tpu.memory_space<vmem>>, vector<1x128xf32>
    tpu.vector_store %arg31[%c0_2, %c0_3], %0 {strides = array<i32>} : memref<35x128xf32, #tpu.memory_space<vmem>>, vector<1x128xf32>,
    %c34_4 = arith.constant 34 : index
    %c0_5 = arith.constant 0 : index
    %4 = vector.load %arg31[%c34_4, %c0_5] : memref<35x128xf32, #tpu.memory_space<vmem>>, vector<1x128xf32>
    tpu.vector_store %arg31[%c34_4, %c0_5], %0 {strides = array<i32>} : memref<35x128xf32, #tpu.memory_space<vmem>>, vector<1x128xf32>,
    %c0_6 = arith.constant 0 : index
    %c0_7 = arith.constant 0 : index
    %c0_8 = arith.constant 0 : index
    %5 = vector.load %arg1[%c0_6, %c0_7, %c0_8] : memref<1x33x64xf32, #tpu.memory_space<vmem>>, vector<1x33x64xf32>
    %6 = vector.shape_cast %5 : vector<1x33x64xf32> to vector<33x64xf32>
    %c0_9 = arith.constant 0 : index
    %c0_10 = arith.constant 0 : index
    %7 = vector.load %arg2[%c0_9, %c0_10] : memref<64x33xf32, #tpu.memory_space<vmem>>, vector<64x33xf32>
    %cst_11 = arith.constant dense<0.000000e+00> : vector<33x33xf32>
    %8 = tpu.matmul %6, %7, %cst_11 {dimension_numbers = #tpu.dot_dimension_numbers<[1], [0], [0], [1], [0, 0, 1, 1], [], []>} : vector<33x64xf32>, vector<64x33xf32>, vector<33x33xf32> -> vector<33x33xf32>
    %c0_12 = arith.constant 0 : index
    %c0_13 = arith.constant 0 : index
    %9 = vector.load %arg3[%c0_12, %c0_13] : memref<64x33xf32, #tpu.memory_space<vmem>>, vector<64x33xf32>
    %cst_14 = arith.constant dense<0.000000e+00> : vector<33x33xf32>
    %10 = tpu.matmul %6, %9, %cst_14 {dimension_numbers = #tpu.dot_dimension_numbers<[1], [0], [0], [1], [0, 0, 1, 1], [], []>} : vector<33x64xf32>, vector<64x33xf32>, vector<33x33xf32> -> vector<33x33xf32>
    %11 = arith.mulf %8, %8 : vector<33x33xf32>
    %cst_15 = arith.constant 1.000000e+00 : f32
    %12 = vector.broadcast %cst_15 : f32 to vector<33x33xf32>
    %13 = arith.addf %12, %11 : vector<33x33xf32>
    %14 = arith.mulf %10, %10 : vector<33x33xf32>
    %15 = arith.addf %13, %14 : vector<33x33xf32>
    %16 = math.log %15 : vector<33x33xf32>
    %c1 = arith.constant 1 : index
    %c0_16 = arith.constant 0 : index
    %17 = vector.load %arg30[%c1, %c0_16] : memref<35x128xf32, #tpu.memory_space<vmem>>, vector<33x33xf32>
    tpu.vector_store %arg30[%c1, %c0_16], %16 {strides = array<i32>} : memref<35x128xf32, #tpu.memory_space<vmem>>, vector<33x33xf32>,
    %c0_17 = arith.constant 0 : index
    %c0_18 = arith.constant 0 : index
    %18 = vector.load %arg30[%c0_17, %c0_18] : memref<35x128xf32, #tpu.memory_space<vmem>>, vector<33x33xf32>
    %c0_19 = arith.constant 0 : index
    %c0_20 = arith.constant 0 : index
    %c0_21 = arith.constant 0 : index
    %19 = vector.load %arg4[%c0_19, %c0_20, %c0_21] : memref<3x33x68xf32, #tpu.memory_space<vmem>>, vector<1x33x68xf32>
    %20 = vector.shape_cast %19 : vector<1x33x68xf32> to vector<33x68xf32>
    %cst_22 = arith.constant dense<0.000000e+00> : vector<33x68xf32>
    %21 = tpu.matmul %18, %20, %cst_22 {dimension_numbers = #tpu.dot_dimension_numbers<[1], [0], [0], [1], [0, 0, 1, 1], [], []>} : vector<33x33xf32>, vector<33x68xf32>, vector<33x68xf32> -> vector<33x68xf32>
    %c1_23 = arith.constant 1 : index
    %c0_24 = arith.constant 0 : index
    %22 = vector.load %arg30[%c1_23, %c0_24] : memref<35x128xf32, #tpu.memory_space<vmem>>, vector<33x33xf32>
    %c1_25 = arith.constant 1 : index
    %c0_26 = arith.constant 0 : index
    %c0_27 = arith.constant 0 : index
    %23 = vector.load %arg4[%c1_25, %c0_26, %c0_27] : memref<3x33x68xf32, #tpu.memory_space<vmem>>, vector<1x33x68xf32>
    %24 = vector.shape_cast %23 : vector<1x33x68xf32> to vector<33x68xf32>
    %cst_28 = arith.constant dense<0.000000e+00> : vector<33x68xf32>
    %25 = tpu.matmul %22, %24, %cst_28 {dimension_numbers = #tpu.dot_dimension_numbers<[1], [0], [0], [1], [0, 0, 1, 1], [], []>} : vector<33x33xf32>, vector<33x68xf32>, vector<33x68xf32> -> vector<33x68xf32>
    %26 = arith.addf %21, %25 : vector<33x68xf32>
    %c2 = arith.constant 2 : index
    %c0_29 = arith.constant 0 : index
    %27 = vector.load %arg30[%c2, %c0_29] : memref<35x128xf32, #tpu.memory_space<vmem>>, vector<33x33xf32>
    %c2_30 = arith.constant 2 : index
    %c0_31 = arith.constant 0 : index
    %c0_32 = arith.constant 0 : index
    %28 = vector.load %arg4[%c2_30, %c0_31, %c0_32] : memref<3x33x68xf32, #tpu.memory_space<vmem>>, vector<1x33x68xf32>
    %29 = vector.shape_cast %28 : vector<1x33x68xf32> to vector<33x68xf32>
    %cst_33 = arith.constant dense<0.000000e+00> : vector<33x68xf32>
    %30 = tpu.matmul %27, %29, %cst_33 {dimension_numbers = #tpu.dot_dimension_numbers<[1], [0], [0], [1], [0, 0, 1, 1], [], []>} : vector<33x33xf32>, vector<33x68xf32>, vector<33x68xf32> -> vector<33x68xf32>
    %31 = arith.addf %26, %30 : vector<33x68xf32>
    %c0_34 = arith.constant 0 : index
    %c0_35 = arith.constant 0 : index
    %32 = vector.load %arg5[%c0_34, %c0_35] : memref<1x68xf32, #tpu.memory_space<vmem>>, vector<1x68xf32>
    %33 = vector.broadcast %32 : vector<1x68xf32> to vector<33x68xf32>
    %34 = arith.addf %31, %33 : vector<33x68xf32>
    %cst_36 = arith.constant 0.000000e+00 : f32
    %35 = vector.broadcast %cst_36 : f32 to vector<33x68xf32>
    %36 = arith.cmpf oge, %34, %35 : vector<33x68xf32>
    %cst_37 = arith.constant 2.000000e-01 : f32
    %37 = vector.broadcast %cst_37 : f32 to vector<33x68xf32>
    %38 = arith.mulf %34, %37 : vector<33x68xf32>
    %39 = arith.select %36, %34, %38 : vector<33x68xi1>, vector<33x68xf32>
    %c1_38 = arith.constant 1 : index
    %c0_39 = arith.constant 0 : index
    %40 = vector.load %arg31[%c1_38, %c0_39] : memref<35x128xf32, #tpu.memory_space<vmem>>, vector<33x68xf32>
    tpu.vector_store %arg31[%c1_38, %c0_39], %39 {strides = array<i32>} : memref<35x128xf32, #tpu.memory_space<vmem>>, vector<33x68xf32>,
    %c0_40 = arith.constant 0 : index
    %c0_41 = arith.constant 0 : index
    %41 = vector.load %arg31[%c0_40, %c0_41] : memref<35x128xf32, #tpu.memory_space<vmem>>, vector<33x68xf32>
    %c0_42 = arith.constant 0 : index
    %c0_43 = arith.constant 0 : index
    %c0_44 = arith.constant 0 : index
    %42 = vector.load %arg6[%c0_42, %c0_43, %c0_44] : memref<3x68x72xf32, #tpu.memory_space<vmem>>, vector<1x68x72xf32>
    %43 = vector.shape_cast %42 : vector<1x68x72xf32> to vector<68x72xf32>
    %cst_45 = arith.constant dense<0.000000e+00> : vector<33x72xf32>
    %44 = tpu.matmul %41, %43, %cst_45 {dimension_numbers = #tpu.dot_dimension_numbers<[1], [0], [0], [1], [0, 0, 1, 1], [], []>} : vector<33x68xf32>, vector<68x72xf32>, vector<33x72xf32> -> vector<33x72xf32>
    %c1_46 = arith.constant 1 : index
    %c0_47 = arith.constant 0 : index
    %45 = vector.load %arg31[%c1_46, %c0_47] : memref<35x128xf32, #tpu.memory_space<vmem>>, vector<33x68xf32>
    %c1_48 = arith.constant 1 : index
    %c0_49 = arith.constant 0 : index
    %c0_50 = arith.constant 0 : index
    %46 = vector.load %arg6[%c1_48, %c0_49, %c0_50] : memref<3x68x72xf32, #tpu.memory_space<vmem>>, vector<1x68x72xf32>
    %47 = vector.shape_cast %46 : vector<1x68x72xf32> to vector<68x72xf32>
    %cst_51 = arith.constant dense<0.000000e+00> : vector<33x72xf32>
    %48 = tpu.matmul %45, %47, %cst_51 {dimension_numbers = #tpu.dot_dimension_numbers<[1], [0], [0], [1], [0, 0, 1, 1], [], []>} : vector<33x68xf32>, vector<68x72xf32>, vector<33x72xf32> -> vector<33x72xf32>
    %49 = arith.addf %44, %48 : vector<33x72xf32>
    %c2_52 = arith.constant 2 : index
    %c0_53 = arith.constant 0 : index
    %50 = vector.load %arg31[%c2_52, %c0_53] : memref<35x128xf32, #tpu.memory_space<vmem>>, vector<33x68xf32>
    %c2_54 = arith.constant 2 : index
    %c0_55 = arith.constant 0 : index
    %c0_56 = arith.constant 0 : index
    %51 = vector.load %arg6[%c2_54, %c0_55, %c0_56] : memref<3x68x72xf32, #tpu.memory_space<vmem>>, vector<1x68x72xf32>
    %52 = vector.shape_cast %51 : vector<1x68x72xf32> to vector<68x72xf32>
    %cst_57 = arith.constant dense<0.000000e+00> : vector<33x72xf32>
    %53 = tpu.matmul %50, %52, %cst_57 {dimension_numbers = #tpu.dot_dimension_numbers<[1], [0], [0], [1], [0, 0, 1, 1], [], []>} : vector<33x68xf32>, vector<68x72xf32>, vector<33x72xf32> -> vector<33x72xf32>
    %54 = arith.addf %49, %53 : vector<33x72xf32>
    %c0_58 = arith.constant 0 : index
    %c0_59 = arith.constant 0 : index
    %55 = vector.load %arg7[%c0_58, %c0_59] : memref<1x72xf32, #tpu.memory_space<vmem>>, vector<1x72xf32>
    %56 = vector.broadcast %55 : vector<1x72xf32> to vector<33x72xf32>
    %57 = arith.addf %54, %56 : vector<33x72xf32>
    %cst_60 = arith.constant 0.000000e+00 : f32
    %58 = vector.broadcast %cst_60 : f32 to vector<33x72xf32>
    %59 = arith.cmpf oge, %57, %58 : vector<33x72xf32>
    %cst_61 = arith.constant 2.000000e-01 : f32
    %60 = vector.broadcast %cst_61 : f32 to vector<33x72xf32>
    %61 = arith.mulf %57, %60 : vector<33x72xf32>
    %62 = arith.select %59, %57, %61 : vector<33x72xi1>, vector<33x72xf32>
    %c1_62 = arith.constant 1 : index
    %c0_63 = arith.constant 0 : index
    %63 = vector.load %arg30[%c1_62, %c0_63] : memref<35x128xf32, #tpu.memory_space<vmem>>, vector<33x72xf32>
    tpu.vector_store %arg30[%c1_62, %c0_63], %62 {strides = array<i32>} : memref<35x128xf32, #tpu.memory_space<vmem>>, vector<33x72xf32>,
    %c0_64 = arith.constant 0 : index
    %c0_65 = arith.constant 0 : index
    %64 = vector.load %arg30[%c0_64, %c0_65] : memref<35x128xf32, #tpu.memory_space<vmem>>, vector<33x72xf32>
    %c0_66 = arith.constant 0 : index
    %c0_67 = arith.constant 0 : index
    %c0_68 = arith.constant 0 : index
    %65 = vector.load %arg8[%c0_66, %c0_67, %c0_68] : memref<3x72x80xf32, #tpu.memory_space<vmem>>, vector<1x72x80xf32>
    %66 = vector.shape_cast %65 : vector<1x72x80xf32> to vector<72x80xf32>
    %cst_69 = arith.constant dense<0.000000e+00> : vector<33x80xf32>
    %67 = tpu.matmul %64, %66, %cst_69 {dimension_numbers = #tpu.dot_dimension_numbers<[1], [0], [0], [1], [0, 0, 1, 1], [], []>} : vector<33x72xf32>, vector<72x80xf32>, vector<33x80xf32> -> vector<33x80xf32>
    %c1_70 = arith.constant 1 : index
    %c0_71 = arith.constant 0 : index
    %68 = vector.load %arg30[%c1_70, %c0_71] : memref<35x128xf32, #tpu.memory_space<vmem>>, vector<33x72xf32>
    %c1_72 = arith.constant 1 : index
    %c0_73 = arith.constant 0 : index
    %c0_74 = arith.constant 0 : index
    %69 = vector.load %arg8[%c1_72, %c0_73, %c0_74] : memref<3x72x80xf32, #tpu.memory_space<vmem>>, vector<1x72x80xf32>
    %70 = vector.shape_cast %69 : vector<1x72x80xf32> to vector<72x80xf32>
    %cst_75 = arith.constant dense<0.000000e+00> : vector<33x80xf32>
    %71 = tpu.matmul %68, %70, %cst_75 {dimension_numbers = #tpu.dot_dimension_numbers<[1], [0], [0], [1], [0, 0, 1, 1], [], []>} : vector<33x72xf32>, vector<72x80xf32>, vector<33x80xf32> -> vector<33x80xf32>
    %72 = arith.addf %67, %71 : vector<33x80xf32>
    %c2_76 = arith.constant 2 : index
    %c0_77 = arith.constant 0 : index
    %73 = vector.load %arg30[%c2_76, %c0_77] : memref<35x128xf32, #tpu.memory_space<vmem>>, vector<33x72xf32>
    %c2_78 = arith.constant 2 : index
    %c0_79 = arith.constant 0 : index
    %c0_80 = arith.constant 0 : index
    %74 = vector.load %arg8[%c2_78, %c0_79, %c0_80] : memref<3x72x80xf32, #tpu.memory_space<vmem>>, vector<1x72x80xf32>
    %75 = vector.shape_cast %74 : vector<1x72x80xf32> to vector<72x80xf32>
    %cst_81 = arith.constant dense<0.000000e+00> : vector<33x80xf32>
    %76 = tpu.matmul %73, %75, %cst_81 {dimension_numbers = #tpu.dot_dimension_numbers<[1], [0], [0], [1], [0, 0, 1, 1], [], []>} : vector<33x72xf32>, vector<72x80xf32>, vector<33x80xf32> -> vector<33x80xf32>
    %77 = arith.addf %72, %76 : vector<33x80xf32>
    %c0_82 = arith.constant 0 : index
    %c0_83 = arith.constant 0 : index
    %78 = vector.load %arg9[%c0_82, %c0_83] : memref<1x80xf32, #tpu.memory_space<vmem>>, vector<1x80xf32>
    %79 = vector.broadcast %78 : vector<1x80xf32> to vector<33x80xf32>
    %80 = arith.addf %77, %79 : vector<33x80xf32>
    %cst_84 = arith.constant 0.000000e+00 : f32
    %81 = vector.broadcast %cst_84 : f32 to vector<33x80xf32>
    %82 = arith.cmpf oge, %80, %81 : vector<33x80xf32>
    %cst_85 = arith.constant 2.000000e-01 : f32
    %83 = vector.broadcast %cst_85 : f32 to vector<33x80xf32>
    %84 = arith.mulf %80, %83 : vector<33x80xf32>
    %85 = arith.select %82, %80, %84 : vector<33x80xi1>, vector<33x80xf32>
    %c1_86 = arith.constant 1 : index
    %c0_87 = arith.constant 0 : index
    %86 = vector.load %arg31[%c1_86, %c0_87] : memref<35x128xf32, #tpu.memory_space<vmem>>, vector<33x80xf32>
    tpu.vector_store %arg31[%c1_86, %c0_87], %85 {strides = array<i32>} : memref<35x128xf32, #tpu.memory_space<vmem>>, vector<33x80xf32>,
    %c0_88 = arith.constant 0 : index
    %c0_89 = arith.constant 0 : index
    %87 = vector.load %arg31[%c0_88, %c0_89] : memref<35x128xf32, #tpu.memory_space<vmem>>, vector<33x80xf32>
    %c0_90 = arith.constant 0 : index
    %c0_91 = arith.constant 0 : index
    %c0_92 = arith.constant 0 : index
    %88 = vector.load %arg10[%c0_90, %c0_91, %c0_92] : memref<3x80x96xf32, #tpu.memory_space<vmem>>, vector<1x80x96xf32>
    %89 = vector.shape_cast %88 : vector<1x80x96xf32> to vector<80x96xf32>
    %cst_93 = arith.constant dense<0.000000e+00> : vector<33x96xf32>
    %90 = tpu.matmul %87, %89, %cst_93 {dimension_numbers = #tpu.dot_dimension_numbers<[1], [0], [0], [1], [0, 0, 1, 1], [], []>} : vector<33x80xf32>, vector<80x96xf32>, vector<33x96xf32> -> vector<33x96xf32>
    %c1_94 = arith.constant 1 : index
    %c0_95 = arith.constant 0 : index
    %91 = vector.load %arg31[%c1_94, %c0_95] : memref<35x128xf32, #tpu.memory_space<vmem>>, vector<33x80xf32>
    %c1_96 = arith.constant 1 : index
    %c0_97 = arith.constant 0 : index
    %c0_98 = arith.constant 0 : index
    %92 = vector.load %arg10[%c1_96, %c0_97, %c0_98] : memref<3x80x96xf32, #tpu.memory_space<vmem>>, vector<1x80x96xf32>
    %93 = vector.shape_cast %92 : vector<1x80x96xf32> to vector<80x96xf32>
    %cst_99 = arith.constant dense<0.000000e+00> : vector<33x96xf32>
    %94 = tpu.matmul %91, %93, %cst_99 {dimension_numbers = #tpu.dot_dimension_numbers<[1], [0], [0], [1], [0, 0, 1, 1], [], []>} : vector<33x80xf32>, vector<80x96xf32>, vector<33x96xf32> -> vector<33x96xf32>
    %95 = arith.addf %90, %94 : vector<33x96xf32>
    %c2_100 = arith.constant 2 : index
    %c0_101 = arith.constant 0 : index
    %96 = vector.load %arg31[%c2_100, %c0_101] : memref<35x128xf32, #tpu.memory_space<vmem>>, vector<33x80xf32>
    %c2_102 = arith.constant 2 : index
    %c0_103 = arith.constant 0 : index
    %c0_104 = arith.constant 0 : index
    %97 = vector.load %arg10[%c2_102, %c0_103, %c0_104] : memref<3x80x96xf32, #tpu.memory_space<vmem>>, vector<1x80x96xf32>
    %98 = vector.shape_cast %97 : vector<1x80x96xf32> to vector<80x96xf32>
    %cst_105 = arith.constant dense<0.000000e+00> : vector<33x96xf32>
    %99 = tpu.matmul %96, %98, %cst_105 {dimension_numbers = #tpu.dot_dimension_numbers<[1], [0], [0], [1], [0, 0, 1, 1], [], []>} : vector<33x80xf32>, vector<80x96xf32>, vector<33x96xf32> -> vector<33x96xf32>
    %100 = arith.addf %95, %99 : vector<33x96xf32>
    %c0_106 = arith.constant 0 : index
    %c0_107 = arith.constant 0 : index
    %101 = vector.load %arg11[%c0_106, %c0_107] : memref<1x96xf32, #tpu.memory_space<vmem>>, vector<1x96xf32>
    %102 = vector.broadcast %101 : vector<1x96xf32> to vector<33x96xf32>
    %103 = arith.addf %100, %102 : vector<33x96xf32>
    %cst_108 = arith.constant 0.000000e+00 : f32
    %104 = vector.broadcast %cst_108 : f32 to vector<33x96xf32>
    %105 = arith.cmpf oge, %103, %104 : vector<33x96xf32>
    %cst_109 = arith.constant 2.000000e-01 : f32
    %106 = vector.broadcast %cst_109 : f32 to vector<33x96xf32>
    %107 = arith.mulf %103, %106 : vector<33x96xf32>
    %108 = arith.select %105, %103, %107 : vector<33x96xi1>, vector<33x96xf32>
    %c0_110 = arith.constant 0 : index
    %c0_111 = arith.constant 0 : index
    %c0_112 = arith.constant 0 : index
    %109 = vector.load %arg25[%c0_110, %c0_111, %c0_112] : memref<1x33x96xf32, #tpu.memory_space<vmem>>, vector<1x33x96xf32>
    %110 = vector.shape_cast %109 : vector<1x33x96xf32> to vector<33x96xf32>
    %111 = vector.shape_cast %108 : vector<33x96xf32> to vector<1x33x96xf32>
    tpu.vector_store %arg25[%c0_110, %c0_111, %c0_112], %111 {strides = array<i32>} : memref<1x33x96xf32, #tpu.memory_space<vmem>>, vector<1x33x96xf32>,
    %c1_113 = arith.constant 1 : index
    %c0_114 = arith.constant 0 : index
    %112 = vector.load %arg30[%c1_113, %c0_114] : memref<35x128xf32, #tpu.memory_space<vmem>>, vector<33x96xf32>
    tpu.vector_store %arg30[%c1_113, %c0_114], %108 {strides = array<i32>} : memref<35x128xf32, #tpu.memory_space<vmem>>, vector<33x96xf32>,
    %c0_115 = arith.constant 0 : index
    %c0_116 = arith.constant 0 : index
    %113 = vector.load %arg30[%c0_115, %c0_116] : memref<35x128xf32, #tpu.memory_space<vmem>>, vector<33x96xf32>
    %c0_117 = arith.constant 0 : index
    %c0_118 = arith.constant 0 : index
    %c0_119 = arith.constant 0 : index
    %114 = vector.load %arg12[%c0_117, %c0_118, %c0_119] : memref<3x96x96xf32, #tpu.memory_space<vmem>>, vector<1x96x96xf32>
    %115 = vector.shape_cast %114 : vector<1x96x96xf32> to vector<96x96xf32>
    %cst_120 = arith.constant dense<0.000000e+00> : vector<33x96xf32>
    %116 = tpu.matmul %113, %115, %cst_120 {dimension_numbers = #tpu.dot_dimension_numbers<[1], [0], [0], [1], [0, 0, 1, 1], [], []>} : vector<33x96xf32>, vector<96x96xf32>, vector<33x96xf32> -> vector<33x96xf32>
    %c1_121 = arith.constant 1 : index
    %c0_122 = arith.constant 0 : index
    %117 = vector.load %arg30[%c1_121, %c0_122] : memref<35x128xf32, #tpu.memory_space<vmem>>, vector<33x96xf32>
    %c1_123 = arith.constant 1 : index
    %c0_124 = arith.constant 0 : index
    %c0_125 = arith.constant 0 : index
    %118 = vector.load %arg12[%c1_123, %c0_124, %c0_125] : memref<3x96x96xf32, #tpu.memory_space<vmem>>, vector<1x96x96xf32>
    %119 = vector.shape_cast %118 : vector<1x96x96xf32> to vector<96x96xf32>
    %cst_126 = arith.constant dense<0.000000e+00> : vector<33x96xf32>
    %120 = tpu.matmul %117, %119, %cst_126 {dimension_numbers = #tpu.dot_dimension_numbers<[1], [0], [0], [1], [0, 0, 1, 1], [], []>} : vector<33x96xf32>, vector<96x96xf32>, vector<33x96xf32> -> vector<33x96xf32>
    %121 = arith.addf %116, %120 : vector<33x96xf32>
    %c2_127 = arith.constant 2 : index
    %c0_128 = arith.constant 0 : index
    %122 = vector.load %arg30[%c2_127, %c0_128] : memref<35x128xf32, #tpu.memory_space<vmem>>, vector<33x96xf32>
    %c2_129 = arith.constant 2 : index
    %c0_130 = arith.constant 0 : index
    %c0_131 = arith.constant 0 : index
    %123 = vector.load %arg12[%c2_129, %c0_130, %c0_131] : memref<3x96x96xf32, #tpu.memory_space<vmem>>, vector<1x96x96xf32>
    %124 = vector.shape_cast %123 : vector<1x96x96xf32> to vector<96x96xf32>
    %cst_132 = arith.constant dense<0.000000e+00> : vector<33x96xf32>
    %125 = tpu.matmul %122, %124, %cst_132 {dimension_numbers = #tpu.dot_dimension_numbers<[1], [0], [0], [1], [0, 0, 1, 1], [], []>} : vector<33x96xf32>, vector<96x96xf32>, vector<33x96xf32> -> vector<33x96xf32>
    %126 = arith.addf %121, %125 : vector<33x96xf32>
    %c0_133 = arith.constant 0 : index
    %c0_134 = arith.constant 0 : index
    %127 = vector.load %arg13[%c0_133, %c0_134] : memref<1x96xf32, #tpu.memory_space<vmem>>, vector<1x96xf32>
    %128 = vector.broadcast %127 : vector<1x96xf32> to vector<33x96xf32>
    %129 = arith.addf %126, %128 : vector<33x96xf32>
    %cst_135 = arith.constant 0.000000e+00 : f32
    %130 = vector.broadcast %cst_135 : f32 to vector<33x96xf32>
    %131 = arith.cmpf oge, %129, %130 : vector<33x96xf32>
    %cst_136 = arith.constant 2.000000e-01 : f32
    %132 = vector.broadcast %cst_136 : f32 to vector<33x96xf32>
    %133 = arith.mulf %129, %132 : vector<33x96xf32>
    %134 = arith.select %131, %129, %133 : vector<33x96xi1>, vector<33x96xf32>
    %c1_137 = arith.constant 1 : index
    %c0_138 = arith.constant 0 : index
    %135 = vector.load %arg31[%c1_137, %c0_138] : memref<35x128xf32, #tpu.memory_space<vmem>>, vector<33x96xf32>
    tpu.vector_store %arg31[%c1_137, %c0_138], %134 {strides = array<i32>} : memref<35x128xf32, #tpu.memory_space<vmem>>, vector<33x96xf32>,
    %c0_139 = arith.constant 0 : index
    %c0_140 = arith.constant 0 : index
    %136 = vector.load %arg31[%c0_139, %c0_140] : memref<35x128xf32, #tpu.memory_space<vmem>>, vector<33x96xf32>
    %c0_141 = arith.constant 0 : index
    %c0_142 = arith.constant 0 : index
    %c0_143 = arith.constant 0 : index
    %137 = vector.load %arg14[%c0_141, %c0_142, %c0_143] : memref<3x96x96xf32, #tpu.memory_space<vmem>>, vector<1x96x96xf32>
    %138 = vector.shape_cast %137 : vector<1x96x96xf32> to vector<96x96xf32>
    %cst_144 = arith.constant dense<0.000000e+00> : vector<33x96xf32>
    %139 = tpu.matmul %136, %138, %cst_144 {dimension_numbers = #tpu.dot_dimension_numbers<[1], [0], [0], [1], [0, 0, 1, 1], [], []>} : vector<33x96xf32>, vector<96x96xf32>, vector<33x96xf32> -> vector<33x96xf32>
    %c1_145 = arith.constant 1 : index
    %c0_146 = arith.constant 0 : index
    %140 = vector.load %arg31[%c1_145, %c0_146] : memref<35x128xf32, #tpu.memory_space<vmem>>, vector<33x96xf32>
    %c1_147 = arith.constant 1 : index
    %c0_148 = arith.constant 0 : index
    %c0_149 = arith.constant 0 : index
    %141 = vector.load %arg14[%c1_147, %c0_148, %c0_149] : memref<3x96x96xf32, #tpu.memory_space<vmem>>, vector<1x96x96xf32>
    %142 = vector.shape_cast %141 : vector<1x96x96xf32> to vector<96x96xf32>
    %cst_150 = arith.constant dense<0.000000e+00> : vector<33x96xf32>
    %143 = tpu.matmul %140, %142, %cst_150 {dimension_numbers = #tpu.dot_dimension_numbers<[1], [0], [0], [1], [0, 0, 1, 1], [], []>} : vector<33x96xf32>, vector<96x96xf32>, vector<33x96xf32> -> vector<33x96xf32>
    %144 = arith.addf %139, %143 : vector<33x96xf32>
    %c2_151 = arith.constant 2 : index
    %c0_152 = arith.constant 0 : index
    %145 = vector.load %arg31[%c2_151, %c0_152] : memref<35x128xf32, #tpu.memory_space<vmem>>, vector<33x96xf32>
    %c2_153 = arith.constant 2 : index
    %c0_154 = arith.constant 0 : index
    %c0_155 = arith.constant 0 : index
    %146 = vector.load %arg14[%c2_153, %c0_154, %c0_155] : memref<3x96x96xf32, #tpu.memory_space<vmem>>, vector<1x96x96xf32>
    %147 = vector.shape_cast %146 : vector<1x96x96xf32> to vector<96x96xf32>
    %cst_156 = arith.constant dense<0.000000e+00> : vector<33x96xf32>
    %148 = tpu.matmul %145, %147, %cst_156 {dimension_numbers = #tpu.dot_dimension_numbers<[1], [0], [0], [1], [0, 0, 1, 1], [], []>} : vector<33x96xf32>, vector<96x96xf32>, vector<33x96xf32> -> vector<33x96xf32>
    %149 = arith.addf %144, %148 : vector<33x96xf32>
    %c0_157 = arith.constant 0 : index
    %c0_158 = arith.constant 0 : index
    %150 = vector.load %arg15[%c0_157, %c0_158] : memref<1x96xf32, #tpu.memory_space<vmem>>, vector<1x96xf32>
    %151 = vector.broadcast %150 : vector<1x96xf32> to vector<33x96xf32>
    %152 = arith.addf %149, %151 : vector<33x96xf32>
    %cst_159 = arith.constant 0.000000e+00 : f32
    %153 = vector.broadcast %cst_159 : f32 to vector<33x96xf32>
    %154 = arith.cmpf oge, %152, %153 : vector<33x96xf32>
    %cst_160 = arith.constant 2.000000e-01 : f32
    %155 = vector.broadcast %cst_160 : f32 to vector<33x96xf32>
    %156 = arith.mulf %152, %155 : vector<33x96xf32>
    %157 = arith.select %154, %152, %156 : vector<33x96xi1>, vector<33x96xf32>
    %c1_161 = arith.constant 1 : index
    %c0_162 = arith.constant 0 : index
    %158 = vector.load %arg30[%c1_161, %c0_162] : memref<35x128xf32, #tpu.memory_space<vmem>>, vector<33x96xf32>
    tpu.vector_store %arg30[%c1_161, %c0_162], %157 {strides = array<i32>} : memref<35x128xf32, #tpu.memory_space<vmem>>, vector<33x96xf32>,
    %c0_163 = arith.constant 0 : index
    %c0_164 = arith.constant 0 : index
    %159 = vector.load %arg30[%c0_163, %c0_164] : memref<35x128xf32, #tpu.memory_space<vmem>>, vector<33x96xf32>
    %c0_165 = arith.constant 0 : index
    %c0_166 = arith.constant 0 : index
    %c0_167 = arith.constant 0 : index
    %160 = vector.load %arg16[%c0_165, %c0_166, %c0_167] : memref<3x96x96xf32, #tpu.memory_space<vmem>>, vector<1x96x96xf32>
    %161 = vector.shape_cast %160 : vector<1x96x96xf32> to vector<96x96xf32>
    %cst_168 = arith.constant dense<0.000000e+00> : vector<33x96xf32>
    %162 = tpu.matmul %159, %161, %cst_168 {dimension_numbers = #tpu.dot_dimension_numbers<[1], [0], [0], [1], [0, 0, 1, 1], [], []>} : vector<33x96xf32>, vector<96x96xf32>, vector<33x96xf32> -> vector<33x96xf32>
    %c1_169 = arith.constant 1 : index
    %c0_170 = arith.constant 0 : index
    %163 = vector.load %arg30[%c1_169, %c0_170] : memref<35x128xf32, #tpu.memory_space<vmem>>, vector<33x96xf32>
    %c1_171 = arith.constant 1 : index
    %c0_172 = arith.constant 0 : index
    %c0_173 = arith.constant 0 : index
    %164 = vector.load %arg16[%c1_171, %c0_172, %c0_173] : memref<3x96x96xf32, #tpu.memory_space<vmem>>, vector<1x96x96xf32>
    %165 = vector.shape_cast %164 : vector<1x96x96xf32> to vector<96x96xf32>
    %cst_174 = arith.constant dense<0.000000e+00> : vector<33x96xf32>
    %166 = tpu.matmul %163, %165, %cst_174 {dimension_numbers = #tpu.dot_dimension_numbers<[1], [0], [0], [1], [0, 0, 1, 1], [], []>} : vector<33x96xf32>, vector<96x96xf32>, vector<33x96xf32> -> vector<33x96xf32>
    %167 = arith.addf %162, %166 : vector<33x96xf32>
    %c2_175 = arith.constant 2 : index
    %c0_176 = arith.constant 0 : index
    %168 = vector.load %arg30[%c2_175, %c0_176] : memref<35x128xf32, #tpu.memory_space<vmem>>, vector<33x96xf32>
    %c2_177 = arith.constant 2 : index
    %c0_178 = arith.constant 0 : index
    %c0_179 = arith.constant 0 : index
    %169 = vector.load %arg16[%c2_177, %c0_178, %c0_179] : memref<3x96x96xf32, #tpu.memory_space<vmem>>, vector<1x96x96xf32>
    %170 = vector.shape_cast %169 : vector<1x96x96xf32> to vector<96x96xf32>
    %cst_180 = arith.constant dense<0.000000e+00> : vector<33x96xf32>
    %171 = tpu.matmul %168, %170, %cst_180 {dimension_numbers = #tpu.dot_dimension_numbers<[1], [0], [0], [1], [0, 0, 1, 1], [], []>} : vector<33x96xf32>, vector<96x96xf32>, vector<33x96xf32> -> vector<33x96xf32>
    %172 = arith.addf %167, %171 : vector<33x96xf32>
    %c0_181 = arith.constant 0 : index
    %c0_182 = arith.constant 0 : index
    %173 = vector.load %arg17[%c0_181, %c0_182] : memref<1x96xf32, #tpu.memory_space<vmem>>, vector<1x96xf32>
    %174 = vector.broadcast %173 : vector<1x96xf32> to vector<33x96xf32>
    %175 = arith.addf %172, %174 : vector<33x96xf32>
    %cst_183 = arith.constant 0.000000e+00 : f32
    %176 = vector.broadcast %cst_183 : f32 to vector<33x96xf32>
    %177 = arith.cmpf oge, %175, %176 : vector<33x96xf32>
    %cst_184 = arith.constant 2.000000e-01 : f32
    %178 = vector.broadcast %cst_184 : f32 to vector<33x96xf32>
    %179 = arith.mulf %175, %178 : vector<33x96xf32>
    %180 = arith.select %177, %175, %179 : vector<33x96xi1>, vector<33x96xf32>
    %c1_185 = arith.constant 1 : index
    %c0_186 = arith.constant 0 : index
    %181 = vector.load %arg31[%c1_185, %c0_186] : memref<35x128xf32, #tpu.memory_space<vmem>>, vector<33x96xf32>
    tpu.vector_store %arg31[%c1_185, %c0_186], %180 {strides = array<i32>} : memref<35x128xf32, #tpu.memory_space<vmem>>, vector<33x96xf32>,
    %c0_187 = arith.constant 0 : index
    %c0_188 = arith.constant 0 : index
    %182 = vector.load %arg31[%c0_187, %c0_188] : memref<35x128xf32, #tpu.memory_space<vmem>>, vector<33x96xf32>
    %c0_189 = arith.constant 0 : index
    %c0_190 = arith.constant 0 : index
    %c0_191 = arith.constant 0 : index
    %183 = vector.load %arg18[%c0_189, %c0_190, %c0_191] : memref<3x96x48xf32, #tpu.memory_space<vmem>>, vector<1x96x48xf32>
    %184 = vector.shape_cast %183 : vector<1x96x48xf32> to vector<96x48xf32>
    %cst_192 = arith.constant dense<0.000000e+00> : vector<33x48xf32>
    %185 = tpu.matmul %182, %184, %cst_192 {dimension_numbers = #tpu.dot_dimension_numbers<[1], [0], [0], [1], [0, 0, 1, 1], [], []>} : vector<33x96xf32>, vector<96x48xf32>, vector<33x48xf32> -> vector<33x48xf32>
    %c1_193 = arith.constant 1 : index
    %c0_194 = arith.constant 0 : index
    %186 = vector.load %arg31[%c1_193, %c0_194] : memref<35x128xf32, #tpu.memory_space<vmem>>, vector<33x96xf32>
    %c1_195 = arith.constant 1 : index
    %c0_196 = arith.constant 0 : index
    %c0_197 = arith.constant 0 : index
    %187 = vector.load %arg18[%c1_195, %c0_196, %c0_197] : memref<3x96x48xf32, #tpu.memory_space<vmem>>, vector<1x96x48xf32>
    %188 = vector.shape_cast %187 : vector<1x96x48xf32> to vector<96x48xf32>
    %cst_198 = arith.constant dense<0.000000e+00> : vector<33x48xf32>
    %189 = tpu.matmul %186, %188, %cst_198 {dimension_numbers = #tpu.dot_dimension_numbers<[1], [0], [0], [1], [0, 0, 1, 1], [], []>} : vector<33x96xf32>, vector<96x48xf32>, vector<33x48xf32> -> vector<33x48xf32>
    %190 = arith.addf %185, %189 : vector<33x48xf32>
    %c2_199 = arith.constant 2 : index
    %c0_200 = arith.constant 0 : index
    %191 = vector.load %arg31[%c2_199, %c0_200] : memref<35x128xf32, #tpu.memory_space<vmem>>, vector<33x96xf32>
    %c2_201 = arith.constant 2 : index
    %c0_202 = arith.constant 0 : index
    %c0_203 = arith.constant 0 : index
    %192 = vector.load %arg18[%c2_201, %c0_202, %c0_203] : memref<3x96x48xf32, #tpu.memory_space<vmem>>, vector<1x96x48xf32>
    %193 = vector.shape_cast %192 : vector<1x96x48xf32> to vector<96x48xf32>
    %cst_204 = arith.constant dense<0.000000e+00> : vector<33x48xf32>
    %194 = tpu.matmul %191, %193, %cst_204 {dimension_numbers = #tpu.dot_dimension_numbers<[1], [0], [0], [1], [0, 0, 1, 1], [], []>} : vector<33x96xf32>, vector<96x48xf32>, vector<33x48xf32> -> vector<33x48xf32>
    %195 = arith.addf %190, %194 : vector<33x48xf32>
    %c0_205 = arith.constant 0 : index
    %c0_206 = arith.constant 0 : index
    %196 = vector.load %arg19[%c0_205, %c0_206] : memref<1x48xf32, #tpu.memory_space<vmem>>, vector<1x48xf32>
    %197 = vector.broadcast %196 : vector<1x48xf32> to vector<33x48xf32>
    %198 = arith.addf %195, %197 : vector<33x48xf32>
    %c0_207 = arith.constant 0 : index
    %c0_208 = arith.constant 0 : index
    %c0_209 = arith.constant 0 : index
    %199 = vector.load %arg26[%c0_207, %c0_208, %c0_209] : memref<1x33x48xf32, #tpu.memory_space<vmem>>, vector<1x33x48xf32>
    %200 = vector.shape_cast %199 : vector<1x33x48xf32> to vector<33x48xf32>
    %201 = vector.shape_cast %198 : vector<33x48xf32> to vector<1x33x48xf32>
    tpu.vector_store %arg26[%c0_207, %c0_208, %c0_209], %201 {strides = array<i32>} : memref<1x33x48xf32, #tpu.memory_space<vmem>>, vector<1x33x48xf32>,
    %c0_210 = arith.constant 0 : index
    %c0_211 = arith.constant 0 : index
    %202 = vector.load %arg20[%c0_210, %c0_211] : memref<96x192xf32, #tpu.memory_space<vmem>>, vector<96x192xf32>
    %cst_212 = arith.constant dense<0.000000e+00> : vector<33x192xf32>
    %203 = tpu.matmul %108, %202, %cst_212 {dimension_numbers = #tpu.dot_dimension_numbers<[1], [0], [0], [1], [0, 0, 1, 1], [], []>} : vector<33x96xf32>, vector<96x192xf32>, vector<33x192xf32> -> vector<33x192xf32>
    %c0_213 = arith.constant 0 : index
    %c0_214 = arith.constant 0 : index
    %204 = vector.load %arg21[%c0_213, %c0_214] : memref<1x192xf32, #tpu.memory_space<vmem>>, vector<1x192xf32>
    %205 = vector.broadcast %204 : vector<1x192xf32> to vector<33x192xf32>
    %206 = arith.addf %203, %205 : vector<33x192xf32>
    %cst_215 = arith.constant 0.000000e+00 : f32
    %207 = vector.broadcast %cst_215 : f32 to vector<33x192xf32>
    %208 = arith.maximumf %206, %207 : vector<33x192xf32>
    %209 = vector.extract_strided_slice %208 {offsets = [0, 0], sizes = [33, 64], strides = [1, 1]} : vector<33x192xf32> to vector<33x64xf32>
    %cst_216 = arith.constant dense<0xFF800000> : vector<33xf32>
    %210 = vector.multi_reduction <maximumf>, %209, %cst_216 [1] : vector<33x64xf32> to vector<33xf32>
    %211 = vector.shape_cast %210 : vector<33xf32> to vector<33x1xf32>
    %212 = vector.broadcast %211 : vector<33x1xf32> to vector<33x64xf32>
    %213 = arith.cmpf oge, %209, %212 : vector<33x64xf32>
    %cst_217 = arith.constant 0xFF800000 : f32
    %214 = vector.broadcast %cst_217 : f32 to vector<33x64xf32>
    %215 = arith.select %213, %214, %209 : vector<33x64xi1>, vector<33x64xf32>
    %cst_218 = arith.constant dense<0xFF800000> : vector<33xf32>
    %216 = vector.multi_reduction <maximumf>, %215, %cst_218 [1] : vector<33x64xf32> to vector<33xf32>
    %217 = vector.shape_cast %216 : vector<33xf32> to vector<33x1xf32>
    %218 = vector.broadcast %217 : vector<33x1xf32> to vector<33x64xf32>
    %219 = arith.cmpf oge, %215, %218 : vector<33x64xf32>
    %cst_219 = arith.constant 0xFF800000 : f32
    %220 = vector.broadcast %cst_219 : f32 to vector<33x64xf32>
    %221 = arith.select %219, %220, %215 : vector<33x64xi1>, vector<33x64xf32>
    %cst_220 = arith.constant dense<0xFF800000> : vector<33xf32>
    %222 = vector.multi_reduction <maximumf>, %221, %cst_220 [1] : vector<33x64xf32> to vector<33xf32>
    %223 = vector.shape_cast %222 : vector<33xf32> to vector<33x1xf32>
    %224 = vector.broadcast %223 : vector<33x1xf32> to vector<33x64xf32>
    %225 = arith.cmpf oge, %209, %224 : vector<33x64xf32>
    %cst_221 = arith.constant 0.000000e+00 : f32
    %226 = vector.broadcast %cst_221 : f32 to vector<33x64xf32>
    %227 = arith.select %225, %209, %226 : vector<33x64xi1>, vector<33x64xf32>
    %228 = vector.extract_strided_slice %208 {offsets = [0, 64], sizes = [33, 64], strides = [1, 1]} : vector<33x192xf32> to vector<33x64xf32>
    %cst_222 = arith.constant dense<0xFF800000> : vector<33xf32>
    %229 = vector.multi_reduction <maximumf>, %228, %cst_222 [1] : vector<33x64xf32> to vector<33xf32>
    %230 = vector.shape_cast %229 : vector<33xf32> to vector<33x1xf32>
    %231 = vector.broadcast %230 : vector<33x1xf32> to vector<33x64xf32>
    %232 = arith.cmpf oge, %228, %231 : vector<33x64xf32>
    %cst_223 = arith.constant 0xFF800000 : f32
    %233 = vector.broadcast %cst_223 : f32 to vector<33x64xf32>
    %234 = arith.select %232, %233, %228 : vector<33x64xi1>, vector<33x64xf32>
    %cst_224 = arith.constant dense<0xFF800000> : vector<33xf32>
    %235 = vector.multi_reduction <maximumf>, %234, %cst_224 [1] : vector<33x64xf32> to vector<33xf32>
    %236 = vector.shape_cast %235 : vector<33xf32> to vector<33x1xf32>
    %237 = vector.broadcast %236 : vector<33x1xf32> to vector<33x64xf32>
    %238 = arith.cmpf oge, %234, %237 : vector<33x64xf32>
    %cst_225 = arith.constant 0xFF800000 : f32
    %239 = vector.broadcast %cst_225 : f32 to vector<33x64xf32>
    %240 = arith.select %238, %239, %234 : vector<33x64xi1>, vector<33x64xf32>
    %cst_226 = arith.constant dense<0xFF800000> : vector<33xf32>
    %241 = vector.multi_reduction <maximumf>, %240, %cst_226 [1] : vector<33x64xf32> to vector<33xf32>
    %242 = vector.shape_cast %241 : vector<33xf32> to vector<33x1xf32>
    %243 = vector.broadcast %242 : vector<33x1xf32> to vector<33x64xf32>
    %244 = arith.cmpf oge, %228, %243 : vector<33x64xf32>
    %cst_227 = arith.constant 0.000000e+00 : f32
    %245 = vector.broadcast %cst_227 : f32 to vector<33x64xf32>
    %246 = arith.select %244, %228, %245 : vector<33x64xi1>, vector<33x64xf32>
    %247 = vector.extract_strided_slice %208 {offsets = [0, 128], sizes = [33, 64], strides = [1, 1]} : vector<33x192xf32> to vector<33x64xf32>
    %cst_228 = arith.constant dense<0xFF800000> : vector<33xf32>
    %248 = vector.multi_reduction <maximumf>, %247, %cst_228 [1] : vector<33x64xf32> to vector<33xf32>
    %249 = vector.shape_cast %248 : vector<33xf32> to vector<33x1xf32>
    %250 = vector.broadcast %249 : vector<33x1xf32> to vector<33x64xf32>
    %251 = arith.cmpf oge, %247, %250 : vector<33x64xf32>
    %cst_229 = arith.constant 0xFF800000 : f32
    %252 = vector.broadcast %cst_229 : f32 to vector<33x64xf32>
    %253 = arith.select %251, %252, %247 : vector<33x64xi1>, vector<33x64xf32>
    %cst_230 = arith.constant dense<0xFF800000> : vector<33xf32>
    %254 = vector.multi_reduction <maximumf>, %253, %cst_230 [1] : vector<33x64xf32> to vector<33xf32>
    %255 = vector.shape_cast %254 : vector<33xf32> to vector<33x1xf32>
    %256 = vector.broadcast %255 : vector<33x1xf32> to vector<33x64xf32>
    %257 = arith.cmpf oge, %253, %256 : vector<33x64xf32>
    %cst_231 = arith.constant 0xFF800000 : f32
    %258 = vector.broadcast %cst_231 : f32 to vector<33x64xf32>
    %259 = arith.select %257, %258, %253 : vector<33x64xi1>, vector<33x64xf32>
    %cst_232 = arith.constant dense<0xFF800000> : vector<33xf32>
    %260 = vector.multi_reduction <maximumf>, %259, %cst_232 [1] : vector<33x64xf32> to vector<33xf32>
    %261 = vector.shape_cast %260 : vector<33xf32> to vector<33x1xf32>
    %262 = vector.broadcast %261 : vector<33x1xf32> to vector<33x64xf32>
    %263 = arith.cmpf oge, %247, %262 : vector<33x64xf32>
    %cst_233 = arith.constant 0.000000e+00 : f32
    %264 = vector.broadcast %cst_233 : f32 to vector<33x64xf32>
    %265 = arith.select %263, %247, %264 : vector<33x64xi1>, vector<33x64xf32>
    %266 = tpu.concatenate %227, %246, %265 in 1 : vector<33x64xf32>, vector<33x64xf32>, vector<33x64xf32> -> vector<33x192xf32>
    %c0_234 = arith.constant 0 : index
    %c0_235 = arith.constant 0 : index
    %c0_236 = arith.constant 0 : index
    %267 = vector.load %arg27[%c0_234, %c0_235, %c0_236] : memref<1x33x192xf32, #tpu.memory_space<vmem>>, vector<1x33x192xf32>
    %268 = vector.shape_cast %267 : vector<1x33x192xf32> to vector<33x192xf32>
    %269 = vector.shape_cast %266 : vector<33x192xf32> to vector<1x33x192xf32>
    tpu.vector_store %arg27[%c0_234, %c0_235, %c0_236], %269 {strides = array<i32>} : memref<1x33x192xf32, #tpu.memory_space<vmem>>, vector<1x33x192xf32>,
    %c0_237 = arith.constant 0 : index
    %c0_238 = arith.constant 0 : index
    %270 = vector.load %arg22[%c0_237, %c0_238] : memref<192x96xf32, #tpu.memory_space<vmem>>, vector<192x96xf32>
    %cst_239 = arith.constant dense<0.000000e+00> : vector<33x96xf32>
    %271 = tpu.matmul %266, %270, %cst_239 {dimension_numbers = #tpu.dot_dimension_numbers<[1], [0], [0], [1], [0, 0, 1, 1], [], []>} : vector<33x192xf32>, vector<192x96xf32>, vector<33x96xf32> -> vector<33x96xf32>
    %c0_240 = arith.constant 0 : index
    %c0_241 = arith.constant 0 : index
    %272 = vector.load %arg23[%c0_240, %c0_241] : memref<1x96xf32, #tpu.memory_space<vmem>>, vector<1x96xf32>
    %273 = vector.broadcast %272 : vector<1x96xf32> to vector<33x96xf32>
    %274 = arith.addf %271, %273 : vector<33x96xf32>
    %c0_242 = arith.constant 0 : index
    %c0_243 = arith.constant 0 : index
    %c0_244 = arith.constant 0 : index
    %275 = vector.load %arg28[%c0_242, %c0_243, %c0_244] : memref<1x33x96xf32, #tpu.memory_space<vmem>>, vector<1x33x96xf32>
    %276 = vector.shape_cast %275 : vector<1x33x96xf32> to vector<33x96xf32>
    %277 = vector.shape_cast %274 : vector<33x96xf32> to vector<1x33x96xf32>
    tpu.vector_store %arg28[%c0_242, %c0_243, %c0_244], %277 {strides = array<i32>} : memref<1x33x96xf32, #tpu.memory_space<vmem>>, vector<1x33x96xf32>,
    %c0_245 = arith.constant 0 : index
    %c0_246 = arith.constant 0 : index
    %278 = vector.load %arg24[%c0_245, %c0_246] : memref<192x30xf32, #tpu.memory_space<vmem>>, vector<192x30xf32>
    %cst_247 = arith.constant dense<0.000000e+00> : vector<33x30xf32>
    %279 = tpu.matmul %266, %278, %cst_247 {dimension_numbers = #tpu.dot_dimension_numbers<[1], [0], [0], [1], [0, 0, 1, 1], [], []>} : vector<33x192xf32>, vector<192x30xf32>, vector<33x30xf32> -> vector<33x30xf32>
    %c0_248 = arith.constant 0 : index
    %c0_249 = arith.constant 0 : index
    %c0_250 = arith.constant 0 : index
    %280 = vector.load %arg29[%c0_248, %c0_249, %c0_250] : memref<1x33x30xf32, #tpu.memory_space<vmem>>, vector<1x33x30xf32>
    %281 = vector.shape_cast %280 : vector<1x33x30xf32> to vector<33x30xf32>
    %282 = vector.shape_cast %279 : vector<33x30xf32> to vector<1x33x30xf32>
    tpu.vector_store %arg29[%c0_248, %c0_249, %c0_250], %282 {strides = array<i32>} : memref<1x33x30xf32, #tpu.memory_space<vmem>>, vector<1x33x30xf32>,
    return
  }
  func.func @transform_0(%arg0: i32) -> (i32, i32, i32) {
    %c0_i32 = arith.constant 0 : i32
    %c0_i32_0 = arith.constant 0 : i32
    %c0_i32_1 = arith.constant 0 : i32
    return %arg0, %c0_i32, %c0_i32_0 : i32, i32, i32
  }
  func.func @transform_1(%arg0: i32) -> (i32, i32) {
    %c0_i32 = arith.constant 0 : i32
    %c0_i32_0 = arith.constant 0 : i32
    %c0_i32_1 = arith.constant 0 : i32
    return %c0_i32, %c0_i32_0 : i32, i32
  }
  func.func @transform_2(%arg0: i32) -> (i32, i32) {
    %c0_i32 = arith.constant 0 : i32
    %c0_i32_0 = arith.constant 0 : i32
    %c0_i32_1 = arith.constant 0 : i32
    return %c0_i32, %c0_i32_0 : i32, i32
  }
  func.func @transform_3(%arg0: i32) -> (i32, i32, i32) {
    %c0_i32 = arith.constant 0 : i32
    %c0_i32_0 = arith.constant 0 : i32
    %c0_i32_1 = arith.constant 0 : i32
    %c0_i32_2 = arith.constant 0 : i32
    return %c0_i32, %c0_i32_0, %c0_i32_1 : i32, i32, i32
  }
  func.func @transform_4(%arg0: i32) -> (i32, i32) {
    %c0_i32 = arith.constant 0 : i32
    %c0_i32_0 = arith.constant 0 : i32
    %c0_i32_1 = arith.constant 0 : i32
    return %c0_i32, %c0_i32_0 : i32, i32
  }
  func.func @transform_5(%arg0: i32) -> (i32, i32, i32) {
    %c0_i32 = arith.constant 0 : i32
    %c0_i32_0 = arith.constant 0 : i32
    %c0_i32_1 = arith.constant 0 : i32
    %c0_i32_2 = arith.constant 0 : i32
    return %c0_i32, %c0_i32_0, %c0_i32_1 : i32, i32, i32
  }
  func.func @transform_6(%arg0: i32) -> (i32, i32) {
    %c0_i32 = arith.constant 0 : i32
    %c0_i32_0 = arith.constant 0 : i32
    %c0_i32_1 = arith.constant 0 : i32
    return %c0_i32, %c0_i32_0 : i32, i32
  }
  func.func @transform_7(%arg0: i32) -> (i32, i32, i32) {
    %c0_i32 = arith.constant 0 : i32
    %c0_i32_0 = arith.constant 0 : i32
    %c0_i32_1 = arith.constant 0 : i32
    %c0_i32_2 = arith.constant 0 : i32
    return %c0_i32, %c0_i32_0, %c0_i32_1 : i32, i32, i32
  }
  func.func @transform_8(%arg0: i32) -> (i32, i32) {
    %c0_i32 = arith.constant 0 : i32
    %c0_i32_0 = arith.constant 0 : i32
    %c0_i32_1 = arith.constant 0 : i32
    return %c0_i32, %c0_i32_0 : i32, i32
  }
  func.func @transform_9(%arg0: i32) -> (i32, i32, i32) {
    %c0_i32 = arith.constant 0 : i32
    %c0_i32_0 = arith.constant 0 : i32
    %c0_i32_1 = arith.constant 0 : i32
    %c0_i32_2 = arith.constant 0 : i32
    return %c0_i32, %c0_i32_0, %c0_i32_1 : i32, i32, i32
  }
  func.func @transform_10(%arg0: i32) -> (i32, i32) {
    %c0_i32 = arith.constant 0 : i32
    %c0_i32_0 = arith.constant 0 : i32
    %c0_i32_1 = arith.constant 0 : i32
    return %c0_i32, %c0_i32_0 : i32, i32
  }
  func.func @transform_11(%arg0: i32) -> (i32, i32, i32) {
    %c0_i32 = arith.constant 0 : i32
    %c0_i32_0 = arith.constant 0 : i32
    %c0_i32_1 = arith.constant 0 : i32
    %c0_i32_2 = arith.constant 0 : i32
    return %c0_i32, %c0_i32_0, %c0_i32_1 : i32, i32, i32
  }
  func.func @transform_12(%arg0: i32) -> (i32, i32) {
    %c0_i32 = arith.constant 0 : i32
    %c0_i32_0 = arith.constant 0 : i32
    %c0_i32_1 = arith.constant 0 : i32
    return %c0_i32, %c0_i32_0 : i32, i32
  }
  func.func @transform_13(%arg0: i32) -> (i32, i32, i32) {
    %c0_i32 = arith.constant 0 : i32
    %c0_i32_0 = arith.constant 0 : i32
    %c0_i32_1 = arith.constant 0 : i32
    %c0_i32_2 = arith.constant 0 : i32
    return %c0_i32, %c0_i32_0, %c0_i32_1 : i32, i32, i32
  }
  func.func @transform_14(%arg0: i32) -> (i32, i32) {
    %c0_i32 = arith.constant 0 : i32
    %c0_i32_0 = arith.constant 0 : i32
    %c0_i32_1 = arith.constant 0 : i32
    return %c0_i32, %c0_i32_0 : i32, i32
  }
  func.func @transform_15(%arg0: i32) -> (i32, i32, i32) {
    %c0_i32 = arith.constant 0 : i32
    %c0_i32_0 = arith.constant 0 : i32
    %c0_i32_1 = arith.constant 0 : i32
    %c0_i32_2 = arith.constant 0 : i32
    return %c0_i32, %c0_i32_0, %c0_i32_1 : i32, i32, i32
  }
  func.func @transform_16(%arg0: i32) -> (i32, i32) {
    %c0_i32 = arith.constant 0 : i32
    %c0_i32_0 = arith.constant 0 : i32
    %c0_i32_1 = arith.constant 0 : i32
    return %c0_i32, %c0_i32_0 : i32, i32
  }
  func.func @transform_17(%arg0: i32) -> (i32, i32, i32) {
    %c0_i32 = arith.constant 0 : i32
    %c0_i32_0 = arith.constant 0 : i32
    %c0_i32_1 = arith.constant 0 : i32
    %c0_i32_2 = arith.constant 0 : i32
    return %c0_i32, %c0_i32_0, %c0_i32_1 : i32, i32, i32
  }
  func.func @transform_18(%arg0: i32) -> (i32, i32) {
    %c0_i32 = arith.constant 0 : i32
    %c0_i32_0 = arith.constant 0 : i32
    %c0_i32_1 = arith.constant 0 : i32
    return %c0_i32, %c0_i32_0 : i32, i32
  }
  func.func @transform_19(%arg0: i32) -> (i32, i32) {
    %c0_i32 = arith.constant 0 : i32
    %c0_i32_0 = arith.constant 0 : i32
    %c0_i32_1 = arith.constant 0 : i32
    return %c0_i32, %c0_i32_0 : i32, i32
  }
  func.func @transform_20(%arg0: i32) -> (i32, i32) {
    %c0_i32 = arith.constant 0 : i32
    %c0_i32_0 = arith.constant 0 : i32
    %c0_i32_1 = arith.constant 0 : i32
    return %c0_i32, %c0_i32_0 : i32, i32
  }
  func.func @transform_21(%arg0: i32) -> (i32, i32) {
    %c0_i32 = arith.constant 0 : i32
    %c0_i32_0 = arith.constant 0 : i32
    %c0_i32_1 = arith.constant 0 : i32
    return %c0_i32, %c0_i32_0 : i32, i32
  }
  func.func @transform_22(%arg0: i32) -> (i32, i32) {
    %c0_i32 = arith.constant 0 : i32
    %c0_i32_0 = arith.constant 0 : i32
    %c0_i32_1 = arith.constant 0 : i32
    return %c0_i32, %c0_i32_0 : i32, i32
  }
  func.func @transform_23(%arg0: i32) -> (i32, i32) {
    %c0_i32 = arith.constant 0 : i32
    %c0_i32_0 = arith.constant 0 : i32
    %c0_i32_1 = arith.constant 0 : i32
    return %c0_i32, %c0_i32_0 : i32, i32
  }
  func.func @transform_24(%arg0: i32) -> (i32, i32, i32) {
    %c0_i32 = arith.constant 0 : i32
    %c0_i32_0 = arith.constant 0 : i32
    %c0_i32_1 = arith.constant 0 : i32
    return %arg0, %c0_i32, %c0_i32_0 : i32, i32, i32
  }
  func.func @transform_25(%arg0: i32) -> (i32, i32, i32) {
    %c0_i32 = arith.constant 0 : i32
    %c0_i32_0 = arith.constant 0 : i32
    %c0_i32_1 = arith.constant 0 : i32
    return %arg0, %c0_i32, %c0_i32_0 : i32, i32, i32
  }
  func.func @transform_26(%arg0: i32) -> (i32, i32, i32) {
    %c0_i32 = arith.constant 0 : i32
    %c0_i32_0 = arith.constant 0 : i32
    %c0_i32_1 = arith.constant 0 : i32
    return %arg0, %c0_i32, %c0_i32_0 : i32, i32, i32
  }
  func.func @transform_27(%arg0: i32) -> (i32, i32, i32) {
    %c0_i32 = arith.constant 0 : i32
    %c0_i32_0 = arith.constant 0 : i32
    %c0_i32_1 = arith.constant 0 : i32
    return %arg0, %c0_i32, %c0_i32_0 : i32, i32, i32
  }
  func.func @transform_28(%arg0: i32) -> (i32, i32, i32) {
    %c0_i32 = arith.constant 0 : i32
    %c0_i32_0 = arith.constant 0 : i32
    %c0_i32_1 = arith.constant 0 : i32
    return %arg0, %c0_i32, %c0_i32_0 : i32, i32, i32
  }
}

</mosaic_0001>

<bundles_post_ra>
// kernel: tpu_custom_call.1
= control target key start
LH: loop header
LB: loop body
LE: loop exit
PB: predicated region body
PF: predicated region fallthrough
CT: control target
= control target key end

     0   :  { %s10095_s0 = inlined_call_operand.vmem [shape: f32[2,33,64], index: 0, kind: input, shape index: {}]   ;;  %s10096_s1 = inlined_call_operand.vmem [shape: f32[64,33], index: 1, kind: input, shape index: {}]   ;;  %s10097_s2 = inlined_call_operand.vmem [shape: f32[64,33], index: 2, kind: input, shape index: {}]   ;;  %s10098_s3 = inlined_call_operand.hbm [shape: f32[3,33,68], index: 3, kind: input, shape index: {}]   ;;  %s10099_s4 = inlined_call_operand.vmem [shape: f32[1,68], index: 4, kind: input, shape index: {}]   ;;  %s10100_s5 = inlined_call_operand.hbm [shape: f32[3,68,72], index: 5, kind: input, shape index: {}]   ;;  %s10101_s6 = inlined_call_operand.vmem [shape: f32[1,72], index: 6, kind: input, shape index: {}]   ;;  %s10102_s7 = inlined_call_operand.hbm [shape: f32[3,72,80], index: 7, kind: input, shape index: {}]   ;;  %s10103_s8 = inlined_call_operand.vmem [shape: f32[1,80], index: 8, kind: input, shape index: {}]   ;;  %s10104_s9 = inlined_call_operand.hbm [shape: f32[3,80,96], index: 9, kind: input, shape index: {}]   ;;  %s10105_s10 = inlined_call_operand.hbm [shape: f32[1,96], index: 10, kind: input, shape index: {}]   ;;  %s10106_s11 = inlined_call_operand.vmem [shape: f32[3,96,96], index: 11, kind: input, shape index: {}]   ;;  %s10107_s12 = inlined_call_operand.hbm [shape: f32[1,96], index: 12, kind: input, shape index: {}]   ;;  %s10108_s13 = inlined_call_operand.vmem [shape: f32[3,96,96], index: 13, kind: input, shape index: {}]   ;;  %s10109_s14 = inlined_call_operand.hbm [shape: f32[1,96], index: 14, kind: input, shape index: {}]   ;;  %s10110_s15 = inlined_call_operand.vmem [shape: f32[3,96,96], index: 15, kind: input, shape index: {}]   ;;  %s10111_s16 = inlined_call_operand.hbm [shape: f32[1,96], index: 16, kind: input, shape index: {}]   ;;  %s10112_s17 = inlined_call_operand.vmem [shape: f32[3,96,48], index: 17, kind: input, shape index: {}]   ;;  %s10113_s18 = inlined_call_operand.hbm [shape: f32[1,48], index: 18, kind: input, shape index: {}]   ;;  %s10114_s19 = inlined_call_operand.vmem [shape: f32[96,192], index: 19, kind: input, shape index: {}]   ;;  %s10115_s20 = inlined_call_operand.vmem [shape: f32[1,192], index: 20, kind: input, shape index: {}]   ;;  %s10116_s21 = inlined_call_operand.hbm [shape: f32[192,96], index: 21, kind: input, shape index: {}]   ;;  %s10117_s22 = inlined_call_operand.hbm [shape: f32[1,96], index: 22, kind: input, shape index: {}]   ;;  %s10118_s23 = inlined_call_operand.vmem [shape: f32[192,30], index: 23, kind: input, shape index: {}]   ;;  %s10119_s24 = inlined_call_operand.vmem [shape: f32[2,33,96], index: 24, kind: output, shape index: {0}]   ;;  %s10120_s25 = inlined_call_operand.vmem [shape: f32[2,33,48], index: 25, kind: output, shape index: {1}]   ;;  %s10121_s26 = inlined_call_operand.vmem [shape: f32[2,33,192], index: 26, kind: output, shape index: {2}]   ;;  %s10122_s27 = inlined_call_operand.vmem [shape: f32[2,33,96], index: 27, kind: output, shape index: {3}]   ;;  %s10123_s28 = inlined_call_operand.vmem [shape: f32[2,33,30], index: 28, kind: output, shape index: {4}]  }
   0x1   :  { %10140 = sst [smem:[#allocation28_spill]] %s10095_s0 }
   0x2   :  { %10141 = sst [smem:[#allocation29_spill]] %s10096_s1 }
   0x3   :  { %10142 = sst [smem:[#allocation30_spill]] %s10097_s2 }
   0x4   :  { %10143 = sst [smem:[#allocation31_spill]] %s10098_s3 }
   0x5   :  { %10144 = sst [smem:[#allocation32_spill]] %s10099_s4 }
   0x6   :  { %10145 = sst [smem:[#allocation33_spill]] %s10100_s5 }
   0x7   :  { %10146 = sst [smem:[#allocation34_spill]] %s10101_s6 }
   0x8   :  { %10147 = sst [smem:[#allocation35_spill]] %s10102_s7 }
   0x9   :  { %10148 = sst [smem:[#allocation36_spill]] %s10103_s8 }
   0xa   :  { %10149 = sst [smem:[#allocation37_spill]] %s10104_s9 }
   0xb   :  { %10150 = sst [smem:[#allocation38_spill]] %s10105_s10 }
   0xc   :  { %10151 = sst [smem:[#allocation39_spill]] %s10106_s11 }
   0xd   :  { %10152 = sst [smem:[#allocation40_spill]] %s10107_s12 }
   0xe   :  { %10153 = sst [smem:[#allocation41_spill]] %s10111_s16 }
   0xf   :  { %10154 = sst [smem:[#allocation42_spill]] %s10115_s20 }
  0x10   :  { %10155 = sst [smem:[#allocation43_spill]] %s10116_s21 }
  0x11   :  { %10156 = sst [smem:[#allocation44_spill]] %s10118_s23 }
  0x12   :  { %10157 = sst [smem:[#allocation45_spill]] %s10120_s25 }
  0x13   :  { %10158 = sst [smem:[#allocation46_spill]] %s10121_s26 }
  0x14   :  { %10159 = sst [smem:[#allocation47_spill]] %s10122_s27 }
  0x15   :  { %10160 = sst [smem:[#allocation48_spill]] %s10123_s28 }
  0x16   :  { %34 = vsyncpa [#allocation5], 0 }
  0x17   :  { %35 = vsyncpa [#allocation7], 0 }
  0x18   :  { %36 = vsyncpa [#allocation10], 0 }
  0x19   :  { %37 = vsyncpa [#allocation13], 0 }
  0x1a   :  { %38 = vsyncpa [#allocation16], 0 }
  0x1b   :  { %39 = vsyncpa [#allocation19], 0  ;;  %s8175_s8 = smov 0  }
  0x1c LB: > { %10161 = sst [smem:[#allocation27_spill]] %s8012_s8  ;;  %s8181_s5 = sadd.s32 4294967295, %s8012_s8   ;;  %s8012_s8 = sphi %s8175_s8, %s45_s8  }
  0x1d   : > { %p5473_p0 = scmp.ge.s32.totalorder %s8012_s8, 1  ;;  %p689_p1 = scmp.lt.s32.totalorder %s8012_s8, 3 }
  0x1e   : > { %p10135_p2 = scmp.eq.s32.totalorder %s8181_s5, 0  ;;  %s8014_s30 = smov [#allocation6]  }
  0x1f   : > { %p8186_p3 = pnand %p5473_p0, %p689_p1  ;;  %s723_s3 = sshll.u32 %s8014_s30, 4  ;;  %s8190_s3 = int_to_ptr.vmem [resolvable:$true] %s723_s3 }
  0x20   : > { %s8015_s6 = smov [#allocation9]   ;;  %s8016_s11 = smov [#allocation12]  }
  0x21   : > { %s10162_s9 = scalar_select %p8186_p3, 1, 0 }
  0x22   : > { %p7584_p4 = pneg %p8186_p3  ;;  %s755_s10 = sshll.u32 %s8015_s6, 4  ;;  %s8194_s10 = int_to_ptr.vmem [resolvable:$true] %s755_s10 }
  0x23   : > { %s783_s29 = sshll.u32 %s8016_s11, 4  ;;  %s8017_s2 = smov [#allocation15]   ;;  %s8202_s29 = int_to_ptr.vmem [resolvable:$true] %s783_s29 }
  0x24   : > { %p8198_p5 = pnand %p10135_p2, %p7584_p4  ;;  %s8204_s7 = sshll.u32 %s8017_s2, 4  ;;  %s812_s7 = int_to_ptr.vmem [resolvable:$true] %s8204_s7 }
  0x25   : > { %s10164_s4 = sld [smem:[#allocation33_spill]] }
  0x26   : > { %p8214_p7 = pneg %p8198_p5 }
  0x2b   : > { %s7674_s30 = scalar_lea.hbm %s10164_s4, 3456 }
  0x2c   : > { %p7675_p6 = scmp.ne.s32.totalorder %s10164_s4, %s7674_s30  ;;  %p7681_p10 = scmp.lt.u32.totalorder %s7674_s30, %s10164_s4 }
  0x2e   : > { %p7677_p8 = pnand %p8214_p7, %p7675_p6 }
  0x30   : > { %p7678_p9 = pneg %p7677_p8 }
  0x32   : > { %p7683_p11 = pnand %p7681_p10, %p7678_p9 }
  0x34   : > { %7686 = shalt.err (!%p7683_p11)
}
  0x35   : > { %s7687_s8 = scalar_lea.vmem %s8190_s3, 3456  ;;  %p7695_p1 = scmp.lt.s32.totalorder %s8190_s3, %s8190_s3 }
  0x36   : > { %p7688_p12 = scmp.ne.s32.totalorder %s8190_s3, %s7687_s8  ;;  %p7696_p4 = scmp.lt.s32.totalorder %s7687_s8, %s7687_s8 }
  0x38   : > { %p7690_p13 = pnand %p7688_p12, %p8214_p7  ;;  %p7697_p6 = por %p7696_p4, %p7695_p1 }
  0x3a   : > { %p7691_p0 = pneg %p7690_p13 }
  0x3c   : > { %p7698_p8 = pnand %p7697_p6, %p7691_p0 }
  0x3e   : > { %7701 = shalt.err (!%p7698_p8)
}
  0x3f   : > { %s10137_s12 = smov 128   ;;  %s8019_s1 = smov 8  }
  0x40   : > { %7590 = dma.hbm_to_vmem [thread:$0]  (!%p8198_p5), %s10164_s4, 3456, %s8190_s3, [#allocation7], %s10137_s12, %s10137_s12, %s8019_s1  }
  0x41   : > { %s10166_s28 = sld [smem:[#allocation37_spill]] }
  0x47   : > { %s7702_s8 = scalar_lea.hbm %s10166_s28, 3840 }
  0x48   : > { %p7703_p9 = scmp.ne.s32.totalorder %s10166_s28, %s7702_s8  ;;  %p7709_p12 = scmp.lt.u32.totalorder %s7702_s8, %s10166_s28 }
  0x4a   : > { %p7705_p10 = pnand %p7703_p9, %p8214_p7 }
  0x4c   : > { %p7706_p11 = pneg %p7705_p10 }
  0x4e   : > { %p7711_p13 = pnand %p7709_p12, %p7706_p11 }
  0x50   : > { %7714 = shalt.err (!%p7711_p13)
}
  0x51   : > { %s7715_s3 = scalar_lea.vmem %s8194_s10, 3840  ;;  %p7723_p6 = scmp.lt.s32.totalorder %s8194_s10, %s8194_s10 }
  0x52   : > { %p7716_p0 = scmp.ne.s32.totalorder %s8194_s10, %s7715_s3  ;;  %p7724_p8 = scmp.lt.s32.totalorder %s7715_s3, %s7715_s3 }
  0x54   : > { %p7718_p1 = pnand %p7716_p0, %p8214_p7  ;;  %p7725_p9 = por %p7724_p8, %p7723_p6 }
  0x56   : > { %p7719_p4 = pneg %p7718_p1 }
  0x58   : > { %p7726_p10 = pnand %p7725_p9, %p7719_p4 }
  0x5a   : > { %7729 = shalt.err (!%p7726_p10)
}
  0x5b   : > { %7596 = dma.hbm_to_vmem [thread:$0]  (!%p8198_p5), %s10166_s28, 3840, %s8194_s10, [#allocation10], %s10137_s12, %s10137_s12, %s8019_s1  }
  0x5c   : > { %s10167_s30 = sld [smem:[#allocation40_spill]] }
  0x62   : > { %s7730_s6 = scalar_lea.hbm %s10167_s30, 16 }
  0x63   : > { %p7731_p11 = scmp.ne.s32.totalorder %s10167_s30, %s7730_s6  ;;  %p7737_p0 = scmp.lt.u32.totalorder %s7730_s6, %s10167_s30 }
  0x65   : > { %p7733_p12 = pnand %p7731_p11, %p8214_p7 }
  0x67   : > { %p7734_p13 = pneg %p7733_p12 }
  0x69   : > { %p7739_p1 = pnand %p7737_p0, %p7734_p13 }
  0x6b   : > { %7742 = shalt.err (!%p7739_p1)
}
  0x6c   : > { %s7743_s10 = scalar_lea.vmem %s8202_s29, 16  ;;  %s7750_s20 = scalar_lea.vmem %s8202_s29, 32 }
  0x6d   : > { %p7744_p4 = scmp.ne.s32.totalorder %s8202_s29, %s7743_s10  ;;  %p7751_p9 = scmp.lt.s32.totalorder %s8202_s29, %s8202_s29 }
  0x6e   : > { %p7752_p10 = scmp.lt.s32.totalorder %s7750_s20, %s7743_s10 }
  0x6f   : > { %p7746_p6 = pnand %p7744_p4, %p8214_p7 }
  0x70   : > { %p7753_p11 = por %p7752_p10, %p7751_p9 }
  0x71   : > { %p7747_p8 = pneg %p7746_p6 }
  0x73   : > { %p7754_p12 = pnand %p7753_p11, %p7747_p8 }
  0x75   : > { %7757 = shalt.err (!%p7754_p12)
}
  0x76   : > { %7602 = dma.hbm_to_vmem [thread:$0]  (!%p8198_p5), %s10167_s30, 16, %s8202_s29, [#allocation13]  }
  0x77   : > { %s10168_s16 = sld [smem:[#allocation41_spill]] }
  0x7d   : > { %s7758_s11 = scalar_lea.hbm %s10168_s16, 16 }
  0x7e   : > { %p7759_p13 = scmp.ne.s32.totalorder %s10168_s16, %s7758_s11  ;;  %p7765_p4 = scmp.lt.u32.totalorder %s7758_s11, %s10168_s16 }
  0x80   : > { %p7761_p0 = pnand %p7759_p13, %p8214_p7 }
  0x82   : > { %p7762_p1 = pneg %p7761_p0 }
  0x84   : > { %p7767_p6 = pnand %p7765_p4, %p7762_p1 }
  0x86   : > { %7770 = shalt.err (!%p7767_p6)
}
  0x87   : > { %s7771_s20 = scalar_lea.vmem %s812_s7, 16  ;;  %s7778_s29 = scalar_lea.vmem %s812_s7, 32 }
  0x88   : > { %p7772_p8 = scmp.ne.s32.totalorder %s812_s7, %s7771_s20  ;;  %p7779_p11 = scmp.lt.s32.totalorder %s812_s7, %s812_s7 }
  0x89   : > { %p7780_p12 = scmp.lt.s32.totalorder %s7778_s29, %s7771_s20 }
  0x8a   : > { %p7774_p9 = pnand %p7772_p8, %p8214_p7 }
  0x8b   : > { %p7781_p2 = por %p7780_p12, %p7779_p11 }
  0x8c   : > { %p7775_p10 = pneg %p7774_p9 }
  0x8e   : > { %p7782_p3 = pnand %p7781_p2, %p7775_p10 }
  0x90   : > { %7785 = shalt.err (!%p7782_p3)
}
  0x91   : > { %7608 = dma.hbm_to_vmem [thread:$0]  (!%p8198_p5), %s10168_s16, 16, %s812_s7, [#allocation16]  }
  0x92   : > { %s8020_s26 = smov [#allocation18]   ;;  %s8021_s11 = smov [#allocation4]  }
  0x93   : > { %s841_s6 = sshll.u32 %s8020_s26, 4  ;;  %s707_s2 = sshll.u32 %s8021_s11, 4  ;;  %s842_s6 = int_to_ptr.vmem [resolvable:$true] %s841_s6  ;;  %s708_s2 = int_to_ptr.vmem [resolvable:$true] %s707_s2 }
  0x94   : > { %s10169_s21 = sld [smem:[#allocation43_spill]] }
  0x9a   : > { %s7786_s10 = scalar_lea.hbm %s10169_s21, 3072 }
  0x9b   : > { %p7787_p2 = scmp.ne.s32.totalorder %s10169_s21, %s7786_s10  ;;  %p7793_p0 = scmp.lt.u32.totalorder %s7786_s10, %s10169_s21 }
  0x9d   : > { %p7789_p3 = pnand %p7787_p2, %p8214_p7 }
  0x9f   : > { %p7790_p13 = pneg %p7789_p3 }
  0xa1   : > { %p7795_p1 = pnand %p7793_p0, %p7790_p13 }
  0xa3   : > { %7798 = shalt.err (!%p7795_p1)
}
  0xa4   : > { %s7799_s7 = scalar_lea.vmem %s842_s6, 3072  ;;  %p7807_p9 = scmp.lt.s32.totalorder %s842_s6, %s842_s6 }
  0xa5   : > { %p7800_p4 = scmp.ne.s32.totalorder %s842_s6, %s7799_s7  ;;  %p7808_p10 = scmp.lt.s32.totalorder %s7799_s7, %s7799_s7 }
  0xa7   : > { %p7802_p6 = pnand %p7800_p4, %p8214_p7  ;;  %p7809_p11 = por %p7808_p10, %p7807_p9 }
  0xa9   : > { %p7803_p8 = pneg %p7802_p6 }
  0xab   : > { %p7810_p12 = pnand %p7809_p11, %p7803_p8 }
  0xad   : > { %7813 = shalt.err (!%p7810_p12)
}
  0xae   : > { %s10170_s25 = smov 128   ;;  %s10171_s3 = sld [smem:[#allocation31_spill]] }
  0xaf   : > { %7614 = dma.hbm_to_vmem [thread:$0]  (!%p8198_p5), %s10169_s21, 3072, %s842_s6, [#allocation19], %s10170_s25, %s10170_s25, %s8019_s1  }
  0xb4   : > { %s7814_s10 = scalar_lea.hbm %s10171_s3, 1920 }
  0xb5   : > { %p7815_p2 = scmp.ne.s32.totalorder %s10171_s3, %s7814_s10  ;;  %p7821_p0 = scmp.lt.u32.totalorder %s7814_s10, %s10171_s3 }
  0xb7   : > { %p7817_p3 = pnand %p7815_p2, %p8214_p7 }
  0xb9   : > { %p7818_p13 = pneg %p7817_p3 }
  0xbb   : > { %p7823_p1 = pnand %p7821_p0, %p7818_p13 }
  0xbd   : > { %7826 = shalt.err (!%p7823_p1)
}
  0xbe   : > { %s7827_s12 = scalar_lea.vmem %s708_s2, 1920  ;;  %p7835_p9 = scmp.lt.s32.totalorder %s708_s2, %s708_s2 }
  0xbf   : > { %p7828_p4 = scmp.ne.s32.totalorder %s708_s2, %s7827_s12  ;;  %p7836_p10 = scmp.lt.s32.totalorder %s7827_s12, %s7827_s12 }
  0xc1   : > { %p7830_p6 = pnand %p7828_p4, %p8214_p7  ;;  %p7837_p11 = por %p7836_p10, %p7835_p9 }
  0xc3   : > { %p7831_p8 = pneg %p7830_p6 }
  0xc5   : > { %p7838_p12 = pnand %p7837_p11, %p7831_p8 }
  0xc7   : > { %7841 = shalt.err (!%p7838_p12)
}
  0xc8   : > { %7587 = dma.hbm_to_vmem [thread:$0]  (!%p8198_p5), %s10171_s3, 1920, %s708_s2, [#allocation5], %s10170_s25, %s10170_s25, %s8019_s1  }
  0xc9   : > { %s8022_s11 = smov [#allocation8]   ;;  %s8023_s10 = smov [#allocation11]  }
  0xca   : > { %s739_s8 = sshll.u32 %s8022_s11, 4  ;;  %s769_s20 = sshll.u32 %s8023_s10, 4  ;;  %s740_s8 = int_to_ptr.vmem [resolvable:$true] %s739_s8  ;;  %s770_s20 = int_to_ptr.vmem [resolvable:$true] %s769_s20 }
  0xcb   : > { %s10172_s7 = sld [smem:[#allocation35_spill]] }
  0xd1   : > { %s7842_s12 = scalar_lea.hbm %s10172_s7, 3456 }
  0xd2   : > { %p7843_p2 = scmp.ne.s32.totalorder %s10172_s7, %s7842_s12  ;;  %p7849_p0 = scmp.lt.u32.totalorder %s7842_s12, %s10172_s7 }
  0xd4   : > { %p7845_p3 = pnand %p7843_p2, %p8214_p7 }
  0xd6   : > { %p7846_p13 = pneg %p7845_p3 }
  0xd8   : > { %p7851_p1 = pnand %p7849_p0, %p7846_p13 }
  0xda   : > { %7854 = shalt.err (!%p7851_p1)
}
  0xdb   : > { %s7855_s2 = scalar_lea.vmem %s740_s8, 3456  ;;  %p7863_p9 = scmp.lt.s32.totalorder %s740_s8, %s740_s8 }
  0xdc   : > { %p7856_p4 = scmp.ne.s32.totalorder %s740_s8, %s7855_s2  ;;  %p7864_p10 = scmp.lt.s32.totalorder %s7855_s2, %s7855_s2 }
  0xde   : > { %p7858_p6 = pnand %p7856_p4, %p8214_p7  ;;  %p7865_p11 = por %p7864_p10, %p7863_p9 }
  0xe0   : > { %p7859_p8 = pneg %p7858_p6 }
  0xe2   : > { %p7866_p12 = pnand %p7865_p11, %p7859_p8 }
  0xe4   : > { %7869 = shalt.err (!%p7866_p12)
}
  0xe5   : > { %7593 = dma.hbm_to_vmem [thread:$0]  (!%p8198_p5), %s10172_s7, 3456, %s740_s8, [#allocation7], %s10170_s25, %s10170_s25, %s8019_s1  }
  0xe6   : > { %s10173_s11 = sld [smem:[#allocation38_spill]] }
  0xec   : > { %s7870_s10 = scalar_lea.hbm %s10173_s11, 16 }
  0xed   : > { %p7871_p2 = scmp.ne.s32.totalorder %s10173_s11, %s7870_s10  ;;  %p7877_p0 = scmp.lt.u32.totalorder %s7870_s10, %s10173_s11 }
  0xef   : > { %p7873_p3 = pnand %p7871_p2, %p8214_p7 }
  0xf1   : > { %p7874_p13 = pneg %p7873_p3 }
  0xf3   : > { %p7879_p1 = pnand %p7877_p0, %p7874_p13 }
  0xf5   : > { %7882 = shalt.err (!%p7879_p1)
}
  0xf6   : > { %s7883_s2 = scalar_lea.vmem %s770_s20, 16  ;;  %s7890_s1 = scalar_lea.vmem %s770_s20, 32 }
  0xf7   : > { %p7884_p4 = scmp.ne.s32.totalorder %s770_s20, %s7883_s2  ;;  %p7891_p9 = scmp.lt.s32.totalorder %s770_s20, %s770_s20 }
  0xf8   : > { %p7892_p10 = scmp.lt.s32.totalorder %s7890_s1, %s7883_s2 }
  0xf9   : > { %p7886_p6 = pnand %p7884_p4, %p8214_p7 }
  0xfa   : > { %p7893_p11 = por %p7892_p10, %p7891_p9 }
  0xfb   : > { %p7887_p8 = pneg %p7886_p6 }
  0xfd   : > { %p7894_p12 = pnand %p7893_p11, %p7887_p8 }
  0xff   : > { %7897 = shalt.err (!%p7894_p12)
}
 0x100   : > { %7599 = dma.hbm_to_vmem [thread:$0]  (!%p8198_p5), %s10173_s11, 16, %s770_s20, [#allocation10]  }
 0x101   : > { %s8024_s16 = smov [#allocation14]   ;;  %s8025_s4 = smov [#allocation17]  }
 0x102   : > { %s797_s21 = sshll.u32 %s8024_s16, 4  ;;  %s825_s26 = sshll.u32 %s8025_s4, 4  ;;  %s798_s21 = int_to_ptr.vmem [resolvable:$true] %s797_s21  ;;  %s826_s26 = int_to_ptr.vmem [resolvable:$true] %s825_s26 }
 0x103   : > { %s7898_s23 = scalar_lea.hbm %s10109_s14, 16 }
 0x104   : > { %p7899_p2 = scmp.ne.s32.totalorder %s10109_s14, %s7898_s23  ;;  %p7905_p0 = scmp.lt.u32.totalorder %s7898_s23, %s10109_s14 }
 0x106   : > { %p7901_p3 = pnand %p7899_p2, %p8214_p7 }
 0x108   : > { %p7902_p13 = pneg %p7901_p3 }
 0x10a   : > { %p7907_p1 = pnand %p7905_p0, %p7902_p13 }
 0x10c   : > { %7910 = shalt.err (!%p7907_p1)
}
 0x10d   : > { %s7911_s20 = scalar_lea.vmem %s798_s21, 16  ;;  %s7918_s25 = scalar_lea.vmem %s798_s21, 32 }
 0x10e   : > { %p7912_p4 = scmp.ne.s32.totalorder %s798_s21, %s7911_s20  ;;  %p7919_p9 = scmp.lt.s32.totalorder %s798_s21, %s798_s21 }
 0x10f   : > { %p7920_p10 = scmp.lt.s32.totalorder %s7918_s25, %s7911_s20 }
 0x110   : > { %p7914_p6 = pnand %p7912_p4, %p8214_p7 }
 0x111   : > { %p7921_p11 = por %p7920_p10, %p7919_p9 }
 0x112   : > { %p7915_p8 = pneg %p7914_p6 }
 0x114   : > { %p7922_p12 = pnand %p7921_p11, %p7915_p8 }
 0x116   : > { %7925 = shalt.err (!%p7922_p12)
}
 0x117   : > { %7605 = dma.hbm_to_vmem [thread:$0]  (!%p8198_p5), %s10109_s14, 16, %s798_s21, [#allocation13]  }
 0x118   : > { %s7926_s29 = scalar_lea.hbm %s10113_s18, 16 }
 0x119   : > { %p7927_p2 = scmp.ne.s32.totalorder %s10113_s18, %s7926_s29  ;;  %p7933_p0 = scmp.lt.u32.totalorder %s7926_s29, %s10113_s18 }
 0x11b   : > { %p7929_p3 = pnand %p7927_p2, %p8214_p7 }
 0x11d   : > { %p7930_p13 = pneg %p7929_p3 }
 0x11f   : > { %p7935_p1 = pnand %p7933_p0, %p7930_p13 }
 0x121   : > { %7938 = shalt.err (!%p7935_p1)
}
 0x122   : > { %s7939_s1 = scalar_lea.vmem %s826_s26, 16  ;;  %s7946_s21 = scalar_lea.vmem %s826_s26, 32 }
 0x123   : > { %p7940_p4 = scmp.ne.s32.totalorder %s826_s26, %s7939_s1  ;;  %p7947_p9 = scmp.lt.s32.totalorder %s826_s26, %s826_s26 }
 0x124   : > { %p7948_p10 = scmp.lt.s32.totalorder %s7946_s21, %s7939_s1 }
 0x125   : > { %p7942_p6 = pnand %p7940_p4, %p8214_p7 }
 0x126   : > { %p7949_p11 = por %p7948_p10, %p7947_p9 }
 0x127   : > { %p7943_p8 = pneg %p7942_p6 }
 0x129   : > { %p7950_p12 = pnand %p7949_p11, %p7943_p8 }
 0x12b   : > { %7953 = shalt.err (!%p7950_p12)
}
 0x12c   : > { %7611 = dma.hbm_to_vmem [thread:$0]  (!%p8198_p5), %s10113_s18, 16, %s826_s26, [#allocation16]  }
 0x12d   : > { %s8026_s8 = smov [#allocation20]   ;;  %s7954_s29 = scalar_lea.hbm %s10117_s22, 16 }
 0x12e   : > { %s855_s16 = sshll.u32 %s8026_s8, 4  ;;  %p7955_p2 = scmp.ne.s32.totalorder %s10117_s22, %s7954_s29  ;;  %s856_s16 = int_to_ptr.vmem [resolvable:$true] %s855_s16 }
 0x12f   : > { %p7961_p0 = scmp.lt.u32.totalorder %s7954_s29, %s10117_s22 }
 0x130   : > { %p7957_p3 = pnand %p7955_p2, %p8214_p7 }
 0x132   : > { %p7958_p13 = pneg %p7957_p3 }
 0x134   : > { %p7963_p1 = pnand %p7961_p0, %p7958_p13 }
 0x136   : > { %7966 = shalt.err (!%p7963_p1)
}
 0x137   : > { %s7967_s26 = scalar_lea.vmem %s856_s16, 16  ;;  %s7974_s1 = scalar_lea.vmem %s856_s16, 32 }
 0x138   : > { %p7968_p4 = scmp.ne.s32.totalorder %s856_s16, %s7967_s26  ;;  %p7975_p9 = scmp.lt.s32.totalorder %s856_s16, %s856_s16 }
 0x139   : > { %p7976_p10 = scmp.lt.s32.totalorder %s7974_s1, %s7967_s26 }
 0x13a   : > { %p7970_p6 = pnand %p7968_p4, %p8214_p7 }
 0x13b   : > { %p7977_p11 = por %p7976_p10, %p7975_p9 }
 0x13c   : > { %p7971_p8 = pneg %p7970_p6 }
 0x13e   : > { %p7978_p12 = pnand %p7977_p11, %p7971_p8 }
 0x140   : > { %7981 = shalt.err (!%p7978_p12)
}
 0x141   : > { %7617 = dma.hbm_to_vmem [thread:$0]  (!%p8198_p5), %s10117_s22, 16, %s856_s16, [#allocation19]  }
 0x142   : > { %p10174_p2 = scmp.ne.s32.totalorder %s10162_s9, 0 }
 0x143   : > { %p10175_p3 = scmp.eq.s32.totalorder (!%p10174_p2), %s8181_s5, 0 }
 0x144   : > { %879 = sbr.rel (%p10174_p2) target bundleno = 3286 (0xcd6), region = 116 }
 0x14b   : > { %7987 = dma.done.wait (%p10175_p3), [#allocation5], 1920   ;;  %p10176_p7 = pmov %p10175_p3 }
 0x14c   : > { %p10177_p13 = pmov %p10175_p3 }
 0x14d   : > { %7989 = vsyncadd (%p10176_p7), [#allocation5], 4294965376 }
 0x14e   : > { %7991 = dma.done.wait (%p10177_p13), [#allocation7], 6912   ;;  %p10178_p0 = pmov %p10175_p3 }
 0x150   : > { %7993 = vsyncadd (%p10178_p0), [#allocation7], 4294960384  ;;  %p10179_p1 = pmov %p10178_p0 }
 0x151   : > { %p10180_p5 = pmov %p10178_p0 }
 0x152   : > { %7995 = dma.done.wait (%p10179_p1), [#allocation10], 3856  }
 0x153   : > { %7997 = vsyncadd (%p10180_p5), [#allocation10], 4294963440  ;;  %p10181_p4 = pmov %p10178_p0 }
 0x154   : > { %p10182_p6 = pmov %p10178_p0 }
 0x155   : > { %7999 = dma.done.wait (%p10181_p4), [#allocation13], 32  }
 0x156   : > { %8001 = vsyncadd (%p10182_p6), [#allocation13], 4294967264  ;;  %p10183_p8 = pmov %p10178_p0 }
 0x157   : > { %p10184_p9 = pmov %p10178_p0 }
 0x158   : > { %8003 = dma.done.wait (%p10183_p8), [#allocation16], 32  }
 0x159   : > { %8005 = vsyncadd (%p10184_p9), [#allocation16], 4294967264  ;;  %p10185_p10 = pmov %p10178_p0 }
 0x15a   : > { %p10186_p11 = pmov %p10178_p0 }
 0x15b   : > { %8007 = dma.done.wait (%p10185_p10), [#allocation19], 3088  }
 0x15c   : > { %8009 = vsyncadd (%p10186_p11), [#allocation19], 4294964208  ;;  %v8027_v0 = vmov 0.0|0.0   ;;  %v8028_v1 = vmov 0.0   ;;  %vm8029_vm0 = vmmov 0   ;;  %s10187_s0 = sld [smem:[#allocation29_spill]] }
 0x15d   : > { %7530 = vmatprep.subr.bf16.mxu1 %v8027_v0  ;;  %7059 = vmatprep.subr.bf16.mxu0 %v8027_v0  ;;  %1043 = vst [vmem:[#allocation2] sm:$0x1] %v8028_v1  ;;  %1044 = vst [vmem:[#allocation2 + $0x22] sm:$0x1] %v8028_v1  ;;  %p1013_p12 = scmp.lt.s32.totalorder %s8181_s5, 1  ;;  %s10188_s8 = sld [smem:[#allocation28_spill]] }
 0x15e   : > { %1045 = vst [vmem:[#allocation3] sm:$0x1] %v8028_v1  ;;  %1046 = vst [vmem:[#allocation3 + $0x22] sm:$0x1] %v8028_v1  ;;  %6176 = vmatprep.mubr.msk.f32.mxu1 %vm8029_vm0, %v8028_v1  ;;  %6167 = vmatprep.mubr.msk.f32.mxu0 %vm8029_vm0, %v8028_v1  ;;  %s10189_s29 = sld [smem:[#allocation30_spill]]  ;;  %vm1060_vm1 = vcmask 523264  }
 0x15f   : > { %s10202_s5 = smov (!%p1013_p12, %s8181_s5), 1  ;;  %v1317_v31 = vld [vmem:[#allocation4 + $0x28] sm:$0xff]  ;;  %v1318_v32 = vld [vmem:[#allocation4 + $0x30] sm:$0xff]  ;;  %v1306_v33 = vld [vmem:[#allocation4] sm:$0xff]  ;;  %vm1337_vm2 = vcmask 1040384   ;;  %vm1294_vm3 = vcmask 269312  }
 0x160   : > { %s8510_s27 = smul.u32 40, %s10202_s5  ;;  %v7084_v34 = vpack.c.bf16 %v1318_v32, %v1317_v31  ;;  %v1307_v35 = vld [vmem:[#allocation4 + $0x8] sm:$0xff]  ;;  %v1319_v37 = vld [vmem:[#allocation4 + $0x38] sm:$0xff]  ;;  %v1320_v38 = vld [vmem:[#allocation4 + $0x40] sm:$0xff]  ;;  %vm1299_vm4 = vcmask 262144   ;;  %vm1741_vm5 = vcmask 1043456  }
 0x161   : > { %v7090_v36 = vpack.c.bf16 %v1307_v35, %v1306_v33  ;;  %v1308_v39 = vld [vmem:[#allocation4 + $0x10] sm:$0xff]  ;;  %v7087_v40 = vpack.c.bf16 %v1320_v38, %v1319_v37  ;;  %v1309_v41 = vld [vmem:[#allocation4 + $0x18] sm:$0xff]  ;;  %v1321_v43 = vld [vmem:[#allocation4 + $0x48] sm:$0x1]  ;;  %s10190_s6 = sld [smem:[#allocation32_spill]]  ;;  %vm1690_vm7 = vcmask 556032  }
 0x162   : > { %v1052_v2 = vld [vmem:[%s10187_s0] sm:$0xff]  ;;  %v1053_v3 = vld [vmem:[%s10187_s0 + $0x8] sm:$0xff]  ;;  %v1054_v4 = vld [vmem:[%s10187_s0 + $0x10] sm:$0xff]  ;;  %v7093_v42 = vpack.c.bf16 %v1309_v41, %v1308_v39  ;;  %vm1695_vm12 = vcmask 548864   ;;  %s10191_s1 = sld [smem:[#allocation34_spill]]  ;;  %vm2098_vm14 = vcmask 588800   ;;  %s8932_s20 = scalar_lea.vmem %s10119_s24, %s8510_s27 }
 0x163   : > { %v7060_v5 = vpack.c.bf16 %v1053_v3, %v1052_v2  ;;  %v1055_v6 = vld [vmem:[%s10187_s0 + $0x18] sm:$0xff]  ;;  %v1056_v8 = vld [vmem:[%s10187_s0 + $0x20] sm:$0xff]  ;;  %v1057_v9 = vld [vmem:[%s10187_s0 + $0x28] sm:$0xff]  ;;  %s1017_s16 = scalar_lea.vmem %s10188_s8, %s8510_s27  ;;  %s10192_s9 = sld [smem:[#allocation36_spill]] }
 0x164   : > { %v7063_v7 = vpack.c.bf16 %v1055_v6, %v1054_v4  ;;  %v7066_v10 = vpack.c.bf16 %v1057_v9, %v1056_v8  ;;  %v1058_v11 = vld [vmem:[%s10187_s0 + $0x30] sm:$0xff]  ;;  %v1059_v12 = vld [vmem:[%s10187_s0 + $0x38] sm:$0xff]  ;;  %v1166_v14 = vld [vmem:[%s10189_s29] sm:$0xff]  ;;  %s10193_s4 = sld [smem:[#allocation39_spill]]  ;;  %s10196_s21 = sld [smem:[#allocation44_spill]] }
 0x165   : > { %7534 = vmatpush3.bf16.msra.mxu1 %v7060_v5  ;;  %7061 = vmatpush3.bf16.msra.mxu0 %v7060_v5  ;;  %v7069_v13 = vpack.c.bf16 %v1059_v12, %v1058_v11  ;;  %v1167_v15 = vld [vmem:[%s10189_s29 + $0x8] sm:$0xff]  ;;  %v1050_v16 = vld [vmem:[%s1017_s16 + $0x18] sm:$0xff]  ;;  %v1047_v18 = vld [vmem:[%s1017_s16] sm:$0xff]  ;;  %s7539_s26 = smul.u32 80, %s10202_s5  ;;  %s10197_s25 = sld [smem:[#allocation46_spill]] }
 0x166   : > { %7531 = vmatprep.subr.bf16.mxu1 %v8027_v0  ;;  %7062 = vmatprep.subr.bf16.mxu0 %v8027_v0  ;;  %v7072_v17 = vpack.c.bf16 %v1167_v15, %v1166_v14  ;;  %v1168_v19 = vld [vmem:[%s10189_s29 + $0x10] sm:$0xff]  ;;  %v1169_v20 = vld [vmem:[%s10189_s29 + $0x18] sm:$0xff]  ;;  %v1051_v22 = vld [vmem:[%s1017_s16 + $0x20] sm:$0x1]  ;;  %s10198_s23 = sld [smem:[#allocation48_spill]] }
 0x167   : > { %v7075_v21 = vpack.c.bf16 %v1169_v20, %v1168_v19  ;;  %v1048_v23 = vld [vmem:[%s1017_s16 + $0x8] sm:$0xff]  ;;  %v1170_v24 = vld [vmem:[%s10189_s29 + $0x20] sm:$0xff]  ;;  %v1049_v27 = vld [vmem:[%s1017_s16 + $0x10] sm:$0xff]  ;;  %s10194_s16 = sld [smem:[#allocation42_spill]] }
 0x168   : > { %v1171_v25 = vld [vmem:[%s10189_s29 + $0x28] sm:$0xff]  ;;  %v1172_v28 = vld [vmem:[%s10189_s29 + $0x30] sm:$0xff]  ;;  %v1173_v29 = vld [vmem:[%s10189_s29 + $0x38] sm:$0xff] }
 0x169   : > { %7535 = vmatpush3.bf16.msra.mxu1 %v7063_v7  ;;  %7064 = vmatpush3.bf16.msra.mxu0 %v7063_v7  ;;  %v7078_v26 = vpack.c.bf16 %v1171_v25, %v1170_v24  ;;  %v7081_v30 = vpack.c.bf16 %v1173_v29, %v1172_v28  ;;  %v1310_v44 = vld [vmem:[#allocation4 + $0x20] sm:$0x1]  ;;  %v1546_v28 = vld [vmem:[#allocation4 + $0x58] sm:$0xff]  ;;  %v1548_v35 = vld [vmem:[#allocation4 + $0x68] sm:$0xff] }
 0x16a   : > { %7532 = vmatprep.subr.bf16.mxu1 %v8027_v0  ;;  %7065 = vmatprep.subr.bf16.mxu0 %v8027_v0  ;;  %v1547_v32 = vld [vmem:[#allocation4 + $0x60] sm:$0xff] }
 0x16b   : > { %v7099_v38 = vpack.c.bf16 %v1548_v35, %v1547_v32  ;;  %s10000_s8 = scalar_lea.vmem %s10197_s25, %s7539_s26 }
 0x16d   : > { %7536 = vmatpush3.bf16.msra.mxu1 %v7066_v10  ;;  %7067 = vmatpush3.bf16.msra.mxu0 %v7066_v10 }
 0x16e   : > { %7533 = vmatprep.subr.bf16.mxu1 %v8027_v0  ;;  %7068 = vmatprep.subr.bf16.mxu0 %v8027_v0 }
 0x171   : > { %7537 = vmatpush3.bf16.msra.mxu1 %v7069_v13  ;;  %7070 = vmatpush3.bf16.msra.mxu0 %v7069_v13 }
 0x172   : > { %7071 = vmatprep.subr.bf16.mxu1 %v8027_v0  ;;  %7083 = vmatprep.subr.bf16.mxu0 %v8027_v0 }
 0x174   : > { %6177 = vmatmul.mubr.msk.f32.vlgmr.msra.gmra.mrb[0].mxu1 %vm1060_vm1, %v1050_v16  ;;  %6168 = vmatmul.mubr.msk.f32.vlgmr.msra.gmra.mrb[0].mxu0 %vm1060_vm1, %v1047_v18 }
 0x175   : > { %7073 = vmatpush3.bf16.msra.mxu1 %v7072_v17  ;;  %6179 = vmatprep.mubr.msk.f32.mxu1 %vm8029_vm0, %v8028_v1 }
 0x176   : > { %7074 = vmatprep.subr.bf16.mxu1 %v8027_v0  ;;  %6170 = vmatprep.mubr.msk.f32.mxu0 %vm8029_vm0, %v8028_v1 }
 0x177   : > { %7085 = vmatpush3.bf16.msra.mxu0 %v7084_v34 }
 0x178   : > { %6180 = vmatmul.mubr.msk.f32.gmra.mrb[2].mxu1 %vm1060_vm1, %v1051_v22  ;;  %6171 = vmatmul.mubr.msk.f32.gmra.mrb[2].mxu0 %vm1060_vm1, %v1048_v23 }
 0x179   : > { %7076 = vmatpush3.bf16.msra.mxu1 %v7075_v21  ;;  %6198 = vmatprep.mubr.msk.f32.mxu1 %vm8029_vm0, %v8028_v1 }
 0x17a   : > { %7077 = vmatprep.subr.bf16.mxu1 %v8027_v0  ;;  %6173 = vmatprep.mubr.msk.f32.mxu0 %vm8029_vm0, %v8028_v1 }
 0x17b   : > { %7086 = vmatprep.subr.bf16.mxu0 %v8027_v0 }
 0x17c   : > { %6174 = vmatmul.mubr.msk.f32.gmra.mrb[4].mxu0 %vm1060_vm1, %v1049_v27 }
 0x17d   : > { %7079 = vmatpush3.bf16.msra.mxu1 %v7078_v26  ;;  %6223 = vmatprep.mubr.msk.f32.mxu0 %vm8029_vm0, %v8028_v1 }
 0x17e   : > { %7080 = vmatprep.subr.bf16.mxu1 %v8027_v0  ;;  %7088 = vmatpush3.bf16.msra.mxu0 %v7087_v40 }
 0x17f   : > { %6221 = vmatprep.subr.mxu0 %v8028_v1 }
 0x181   : > { %7082 = vmatpush3.bf16.msra.mxu1 %v7081_v30 }
 0x182   : > { %7089 = vmatprep.subr.bf16.mxu1 %v8027_v0  ;;  %6222 = vmatpush3.msk.msra.mxu0 %vm1337_vm2, %v1321_v43 }
 0x183   : > { %7095 = vmatprep.subr.bf16.mxu0 %v8027_v0 }
 0x184   : > { %6199 = vmatmul.mubr.msk.f32.vlgmr.msra.gmra.mrb[4].mxu1 %vm1060_vm1, %v1047_v18 }
 0x185   : > { %6201 = vmatprep.mubr.msk.f32.mxu1 %vm8029_vm0, %v8028_v1  ;;  %7091 = vmatpush3.bf16.msra.mxu1 %v7090_v36 }
 0x186   : > { %7092 = vmatprep.subr.bf16.mxu1 %v8027_v0 }
 0x188   : > { %6202 = vmatmul.mubr.msk.f32.gmra.mrb[6].mxu1 %vm1060_vm1, %v1048_v23 }
 0x189   : > { %6204 = vmatprep.mubr.msk.f32.mxu1 %vm8029_vm0, %v8028_v1  ;;  %7094 = vmatpush3.bf16.msra.mxu1 %v7093_v42 }
 0x18a   : > { %6246 = vmatprep.subr.mxu1 %v8028_v1 }
 0x18c   : > { %6205 = vmatmul.mubr.msk.f32.gmra.mrb[8].mxu1 %vm1060_vm1, %v1049_v27  ;;  %v1545_v27 = vld [vmem:[#allocation4 + $0x50] sm:$0xff] }
 0x18d   : > { %6207 = vmatprep.mubr.msk.f32.mxu1 %vm8029_vm0, %v8028_v1  ;;  %6247 = vmatpush3.msk.msra.mxu1 %vm1337_vm2, %v1310_v44  ;;  %v7096_v30 = vpack.c.bf16 %v1546_v28, %v1545_v27 }
 0x18e   : > { %7101 = vmatprep.subr.bf16.mxu1 %v8027_v0 }
 0x190   : > { %6208 = vmatmul.mubr.msk.f32.gmra.mrb[10].mxu1 %vm1060_vm1, %v1050_v16 }
 0x191   : > { %6210 = vmatprep.mubr.msk.f32.mxu1 %vm8029_vm0, %v8028_v1 }
 0x194   : > { %6211 = vmatmul.mubr.msk.f32.gmra.mrb[12].mxu1 %vm1060_vm1, %v1051_v22 }
 0x195   : > { %6248 = vmatprep.mubr.msk.f32.mxu1 %vm8029_vm0, %v8028_v1 }
 0x247   : > { %v1157_v45 = vpop.f32.mrb[0].mxu1  ;;  %v1142_v46 = vpop.f32.mrb[0].mxu0 }
 0x248   : > { %v6178_v47 = vpop.f32.mrb[1].mxu1  ;;  %v6169_v48 = vpop.f32.mrb[1].mxu0  ;;  %v1264_v55 = vmul.f32 %v1142_v46, %v1142_v46  ;;  %v1267_v8 = vmul.f32 %v1157_v45, %v1157_v45  ;;  %v1549_v45 = vld [vmem:[#allocation4 + $0x70] sm:$0x1] }
 0x24a   : > { %v1269_v56 = vadd.f32 1.0, %v1264_v55  ;;  %v1272_v13 = vadd.f32 1.0, %v1267_v8  ;;  %v1717_v55 = vld [vmem:[#allocation6 + $0x48] sm:$0xff] }
 0x24b   : > { %v1162_v49 = vpop.f32.mrb[2].mxu1  ;;  %v1147_v50 = vpop.f32.mrb[2].mxu0 }
 0x24c   : > { %v6181_v51 = vpop.f32.mrb[3].mxu1  ;;  %v6172_v52 = vpop.f32.mrb[3].mxu0  ;;  %v1265_v57 = vmul.f32 %v1147_v50, %v1147_v50  ;;  %v1268_v14 = vmul.f32 %v1162_v49, %v1162_v49 }
 0x24e   : > { %v1270_v62 = vadd.f32 1.0, %v1265_v57  ;;  %v1273_v21 = vadd.f32 1.0, %v1268_v14  ;;  %v1702_v57 = vld [vmem:[#allocation6] sm:$0xff] }
 0x24f   : > { %v1152_v53 = vpop.f32.mrb[4].mxu0 }
 0x250   : > { %v6175_v54 = vpop.f32.mrb[5].mxu0  ;;  %v1266_v63 = vmul.f32 %v1152_v53, %v1152_v53 }
 0x251   : > { %v1543_v54 = vld [vmem:[#allocation2 + $0x22] sm:$0x1] }
 0x252   : > { %v1271_v6 = vadd.f32 1.0, %v1266_v63 }
 0x257   : > { %v1240_v58 = vpop.f32.mrb[4].mxu1 }
 0x258   : > { %v1274_v59 = vmul.f32 %v1240_v58, %v1240_v58  ;;  %v6200_v60 = vpop.f32.mrb[5].mxu1 }
 0x25a   : > { %v1279_v61 = vadd.f32 %v1274_v59, %v1269_v56  ;;  %v1718_v56 = vld [vmem:[#allocation6 + $0x50] sm:$0xff]  ;;  %v1703_v59 = vld [vmem:[#allocation6 + $0x8] sm:$0xff] }
 0x25b   : > { %v1245_v2 = vpop.f32.mrb[6].mxu1  ;;  %v7102_v58 = vpack.c.bf16 %v1718_v56, %v1717_v55  ;;  %v7114_v60 = vpack.c.bf16 %v1703_v59, %v1702_v57  ;;  %v1949_v59 = vld [vmem:[#allocation6 + $0x90] sm:$0xff] }
 0x25c   : > { %7664 = vlog2.f32 %v1279_v61  ;;  %v1275_v3 = vmul.f32 %v1245_v2, %v1245_v2  ;;  %v6203_v4 = vpop.f32.mrb[7].mxu1  ;;  %v1719_v61 = vld [vmem:[#allocation6 + $0x58] sm:$0xff]  ;;  %v1704_v2 = vld [vmem:[#allocation6 + $0x10] sm:$0xff] }
 0x25e   : > { %v1280_v5 = vadd.f32 %v1275_v3, %v1270_v62  ;;  %v1720_v62 = vld [vmem:[#allocation6 + $0x60] sm:$0xff]  ;;  %v1705_v3 = vld [vmem:[#allocation6 + $0x18] sm:$0xff] }
 0x25f   : > { %v1250_v7 = vpop.f32.mrb[8].mxu1  ;;  %v7105_v63 = vpack.c.bf16 %v1720_v62, %v1719_v61  ;;  %v7117_v4 = vpack.c.bf16 %v1705_v3, %v1704_v2 }
 0x260   : > { %7666 = vlog2.f32 %v1280_v5  ;;  %v1276_v9 = vmul.f32 %v1250_v7, %v1250_v7  ;;  %v6206_v10 = vpop.f32.mrb[9].mxu1  ;;  %v1721_v5 = vld [vmem:[#allocation6 + $0x68] sm:$0xff]  ;;  %v1706_v7 = vld [vmem:[#allocation6 + $0x20] sm:$0xff] }
 0x262   : > { %v1281_v11 = vadd.f32 %v1276_v9, %v1271_v6  ;;  %v1722_v6 = vld [vmem:[#allocation6 + $0x70] sm:$0xff]  ;;  %v1707_v9 = vld [vmem:[#allocation6 + $0x28] sm:$0xff] }
 0x263   : > { %v1255_v12 = vpop.f32.mrb[10].mxu1  ;;  %v7108_v8 = vpack.c.bf16 %v1722_v6, %v1721_v5  ;;  %v7120_v10 = vpack.c.bf16 %v1707_v9, %v1706_v7  ;;  %v1951_v6 = vld [vmem:[#allocation6 + $0xa0] sm:$0xff]  ;;  %v1952_v7 = vld [vmem:[#allocation6 + $0xa8] sm:$0xff] }
 0x264   : > { %7668 = vlog2.f32 %v1281_v11  ;;  %v1277_v15 = vmul.f32 %v1255_v12, %v1255_v12  ;;  %v6209_v16 = vpop.f32.mrb[11].mxu1  ;;  %v1723_v11 = vld [vmem:[#allocation6 + $0x78] sm:$0xff]  ;;  %v1724_v12 = vld [vmem:[#allocation6 + $0x80] sm:$0xff] }
 0x265   : > { %v7111_v14 = vpack.c.bf16 %v1724_v12, %v1723_v11 }
 0x266   : > { %v7665_v17 = vpop.eup %7664  ;;  %v1282_v18 = vadd.f32 %v1277_v15, %v1272_v13  ;;  %v1708_v13 = vld [vmem:[#allocation6 + $0x30] sm:$0xff]  ;;  %v1709_v15 = vld [vmem:[#allocation6 + $0x38] sm:$0xff] }
 0x267   : > { %v1285_v19 = vmul.f32 0.6931472, %v7665_v17  ;;  %v1260_v20 = vpop.f32.mrb[12].mxu1  ;;  %v7123_v16 = vpack.c.bf16 %v1709_v15, %v1708_v13  ;;  %v1725_v17 = vld [vmem:[#allocation6 + $0x88] sm:$0xf] }
 0x268   : > { %7670 = vlog2.f32 %v1282_v18  ;;  %v1278_v22 = vmul.f32 %v1260_v20, %v1260_v20  ;;  %v6212_v23 = vpop.f32.mrb[13].mxu1  ;;  %v1710_v18 = vld [vmem:[#allocation6 + $0x40] sm:$0xf] }
 0x269   : > { %1295 = vst.msk [vmem:[#allocation2 + $0x1] sm:$0xff] %vm1294_vm3, %v1285_v19 }
 0x26a   : > { %v7667_v24 = vpop.eup %7666  ;;  %v1283_v25 = vadd.f32 %v1278_v22, %v1273_v21 }
 0x26b   : > { %v1287_v26 = vmul.f32 0.6931472, %v7667_v24 }
 0x26c   : > { %7672 = vlog2.f32 %v1283_v25 }
 0x26d   : > { %1296 = vst.msk [vmem:[#allocation2 + $0x9] sm:$0xff] %vm1294_vm3, %v1287_v26 }
 0x26e   : > { %v7669_v29 = vpop.eup %7668 }
 0x26f   : > { %v1289_v31 = vmul.f32 0.6931472, %v7669_v29 }
 0x270   : > { %v1311_v33 = vld [vmem:[#allocation2 + $0x1] sm:$0xff] }
 0x271   : > { %v1301_v34 = vld [vmem:[#allocation2] sm:$0xff]  ;;  %1297 = vst.msk [vmem:[#allocation2 + $0x11] sm:$0xff] %vm1294_vm3, %v1289_v31  ;;  %6224 = vmatmul.mubr.msk.f32.vlgmr.msra.gmra.mrb[6].mxu0 %vm1294_vm3, %v1311_v33 }
 0x272   : > { %6249 = vmatmul.mubr.msk.f32.vlgmr.msra.gmra.mrb[14].mxu1 %vm1294_vm3, %v1301_v34  ;;  %v7671_v36 = vpop.eup %7670  ;;  %7097 = vmatpush3.bf16.msra.mxu0 %v7096_v30 }
 0x273   : > { %6226 = vmatprep.mubr.msk.f32.mxu0 %vm8029_vm0, %v8028_v1  ;;  %v1291_v37 = vmul.f32 0.6931472, %v7671_v36  ;;  %6251 = vmatprep.mubr.msk.f32.mxu1 %vm8029_vm0, %v8028_v1 }
 0x274   : > { %7098 = vmatprep.subr.bf16.mxu0 %v8027_v0  ;;  %v1312_v39 = vld [vmem:[#allocation2 + $0x9] sm:$0xff]  ;;  %7103 = vmatpush3.bf16.msra.mxu1 %v7102_v58 }
 0x275   : > { %v1302_v40 = vld [vmem:[#allocation2 + $0x8] sm:$0xff]  ;;  %1298 = vst.msk [vmem:[#allocation2 + $0x19] sm:$0xff] %vm1294_vm3, %v1291_v37  ;;  %6227 = vmatmul.mubr.msk.f32.gmra.mrb[8].mxu0 %vm1294_vm3, %v1312_v39  ;;  %7104 = vmatprep.subr.bf16.mxu1 %v8027_v0 }
 0x276   : > { %6252 = vmatmul.mubr.msk.f32.gmra.mrb[16].mxu1 %vm1294_vm3, %v1302_v40  ;;  %v7673_v41 = vpop.eup %7672  ;;  %6229 = vmatprep.mubr.msk.f32.mxu0 %vm8029_vm0, %v8028_v1  ;;  %v1539_v50 = vld [vmem:[#allocation2 + $0x2] sm:$0xff] }
 0x277   : > { %6254 = vmatprep.mubr.msk.f32.mxu1 %vm8029_vm0, %v8028_v1  ;;  %v1293_v42 = vmul.f32 0.6931472, %v7673_v41  ;;  %7100 = vmatpush3.bf16.msra.mxu0 %v7099_v38 }
 0x278   : > { %v1313_v43 = vld [vmem:[#allocation2 + $0x11] sm:$0xff]  ;;  %6271 = vmatprep.subr.mxu0 %v8028_v1  ;;  %7106 = vmatpush3.bf16.msra.mxu1 %v7105_v63 }
 0x279   : > { %v1303_v44 = vld [vmem:[#allocation2 + $0x10] sm:$0xff]  ;;  %1300 = vst.msk [vmem:[#allocation2 + $0x21] sm:$0x1] %vm1299_vm4, %v1293_v42  ;;  %6230 = vmatmul.mubr.msk.f32.gmra.mrb[10].mxu0 %vm1294_vm3, %v1313_v43  ;;  %7107 = vmatprep.subr.bf16.mxu1 %v8027_v0 }
 0x27a   : > { %6255 = vmatmul.mubr.msk.f32.gmra.mrb[18].mxu1 %vm1294_vm3, %v1303_v44  ;;  %6232 = vmatprep.mubr.msk.f32.mxu0 %vm8029_vm0, %v8028_v1  ;;  %v1540_v51 = vld [vmem:[#allocation2 + $0xa] sm:$0xff] }
 0x27b   : > { %6257 = vmatprep.mubr.msk.f32.mxu1 %vm8029_vm0, %v8028_v1  ;;  %6272 = vmatpush3.msk.msra.mxu0 %vm1337_vm2, %v1549_v45  ;;  %v5532_v45 = vld [vmem:[%s10190_s6] ss:$0 sm:$0xff]  ;;  %s10195_s6 = sld [smem:[#allocation45_spill]] }
 0x27c   : > { %v1314_v46 = vld [vmem:[#allocation2 + $0x19] sm:$0xff]  ;;  %7113 = vmatprep.subr.bf16.mxu0 %v8027_v0  ;;  %7109 = vmatpush3.bf16.msra.mxu1 %v7108_v8 }
 0x27d   : > { %v1304_v47 = vld [vmem:[#allocation2 + $0x18] sm:$0xff]  ;;  %6233 = vmatmul.mubr.msk.f32.gmra.mrb[12].mxu0 %vm1294_vm3, %v1314_v46  ;;  %v1305_v49 = vld [vmem:[#allocation2 + $0x20] sm:$0x1]  ;;  %7110 = vmatprep.subr.bf16.mxu1 %v8027_v0 }
 0x27e   : > { %6258 = vmatmul.mubr.msk.f32.gmra.mrb[20].mxu1 %vm1294_vm3, %v1304_v47  ;;  %6235 = vmatprep.mubr.msk.f32.mxu0 %vm8029_vm0, %v8028_v1  ;;  %v1541_v52 = vld [vmem:[#allocation2 + $0x12] sm:$0xff] }
 0x27f   : > { %6260 = vmatprep.mubr.msk.f32.mxu1 %vm8029_vm0, %v8028_v1 }
 0x280   : > { %v1315_v48 = vld [vmem:[#allocation2 + $0x21] sm:$0x1]  ;;  %7112 = vmatpush3.bf16.msra.mxu1 %v7111_v14 }
 0x281   : > { %6236 = vmatmul.mubr.msk.f32.gmra.mrb[14].mxu0 %vm1294_vm3, %v1315_v48  ;;  %v1542_v53 = vld [vmem:[#allocation2 + $0x1a] sm:$0xff]  ;;  %6304 = vmatprep.subr.mxu1 %v8028_v1  ;;  %s9690_s2 = scalar_lea.vmem %s10195_s6, %s8510_s27  ;;  %s10199_s6 = sld [smem:[#allocation47_spill]] }
 0x282   : > { %6261 = vmatmul.mubr.msk.f32.gmra.mrb[22].mxu1 %vm1294_vm3, %v1305_v49  ;;  %6273 = vmatprep.mubr.msk.f32.mxu0 %vm8029_vm0, %v8028_v1 }
 0x283   : > { %6306 = vmatprep.mubr.msk.f32.mxu1 %vm8029_vm0, %v8028_v1 }
 0x284   : > { %6305 = vmatpush3.msk.msra.mxu1 %vm1741_vm5, %v1725_v17  ;;  %v1953_v17 = vld [vmem:[#allocation6 + $0xb0] sm:$0xff] }
 0x285   : > { %6274 = vmatmul.mubr.msk.f32.vlgmr.msra.gmra.mrb[16].mxu0 %vm1294_vm3, %v1539_v50  ;;  %7125 = vmatprep.subr.bf16.mxu1 %v8027_v0 }
 0x286   : > { %6276 = vmatprep.mubr.msk.f32.mxu0 %vm8029_vm0, %v8028_v1  ;;  %7115 = vmatpush3.bf16.msra.mxu0 %v7114_v60  ;;  %v1950_v60 = vld [vmem:[#allocation6 + $0x98] sm:$0xff] }
 0x287   : > { %7116 = vmatprep.subr.bf16.mxu0 %v8027_v0  ;;  %v7126_v5 = vpack.c.bf16 %v1950_v60, %v1949_v59  ;;  %v2131_v59 = vld [vmem:[#allocation8 + $0x78] sm:$0xff]  ;;  %v2132_v60 = vld [vmem:[#allocation8 + $0x80] sm:$0xff] }
 0x289   : > { %6277 = vmatmul.mubr.msk.f32.gmra.mrb[18].mxu0 %vm1294_vm3, %v1540_v51 }
 0x28a   : > { %6279 = vmatprep.mubr.msk.f32.mxu0 %vm8029_vm0, %v8028_v1  ;;  %7118 = vmatpush3.bf16.msra.mxu0 %v7117_v4 }
 0x28b   : > { %7119 = vmatprep.subr.bf16.mxu0 %v8027_v0 }
 0x28d   : > { %6280 = vmatmul.mubr.msk.f32.gmra.mrb[20].mxu0 %vm1294_vm3, %v1541_v52 }
 0x28e   : > { %6282 = vmatprep.mubr.msk.f32.mxu0 %vm8029_vm0, %v8028_v1  ;;  %7121 = vmatpush3.bf16.msra.mxu0 %v7120_v10 }
 0x28f   : > { %7122 = vmatprep.subr.bf16.mxu0 %v8027_v0 }
 0x291   : > { %6283 = vmatmul.mubr.msk.f32.gmra.mrb[22].mxu0 %vm1294_vm3, %v1542_v53 }
 0x292   : > { %6285 = vmatprep.mubr.msk.f32.mxu0 %vm8029_vm0, %v8028_v1  ;;  %7124 = vmatpush3.bf16.msra.mxu0 %v7123_v16  ;;  %v7129_v16 = vpack.c.bf16 %v1952_v7, %v1951_v6 }
 0x293   : > { %6337 = vmatprep.subr.mxu0 %v8028_v1 }
 0x295   : > { %6286 = vmatmul.mubr.msk.f32.gmra.mrb[24].mxu0 %vm1294_vm3, %v1543_v54 }
 0x296   : > { %6339 = vmatprep.mubr.msk.f32.mxu0 %vm8029_vm0, %v8028_v1  ;;  %6338 = vmatpush3.msk.msra.mxu0 %vm1741_vm5, %v1710_v18  ;;  %v1954_v18 = vld [vmem:[#allocation6 + $0xb8] sm:$0xff] }
 0x297   : > { %7137 = vmatprep.subr.bf16.mxu0 %v8027_v0 }
 0x344   : > { %v1407_v19 = vpop.f32.mrb[6].mxu0 }
 0x345   : > { %v1515_v20 = vpop.f32.mrb[14].mxu1  ;;  %v6225_v22 = vpop.f32.mrb[7].mxu0 }
 0x346   : > { %v1516_v21 = vadd.f32 %v1515_v20, %v1407_v19  ;;  %v6250_v23 = vpop.f32.mrb[15].mxu1 }
 0x348   : > { %v1412_v24 = vpop.f32.mrb[8].mxu0 }
 0x349   : > { %v1520_v25 = vpop.f32.mrb[16].mxu1  ;;  %v6228_v27 = vpop.f32.mrb[9].mxu0 }
 0x34a   : > { %v1521_v26 = vadd.f32 %v1520_v25, %v1412_v24  ;;  %v6253_v28 = vpop.f32.mrb[17].mxu1  ;;  %v7132_v24 = vpack.c.bf16 %v1954_v18, %v1953_v17  ;;  %v1955_v25 = vld [vmem:[#allocation6 + $0xc0] sm:$0xff] }
 0x34c   : > { %v1417_v29 = vpop.f32.mrb[10].mxu0 }
 0x34d   : > { %v1525_v30 = vpop.f32.mrb[18].mxu1  ;;  %v6231_v32 = vpop.f32.mrb[11].mxu0 }
 0x34e   : > { %v1526_v31 = vadd.f32 %v1525_v30, %v1417_v29  ;;  %v6256_v33 = vpop.f32.mrb[19].mxu1 }
 0x34f   : > { %v1957_v33 = vld [vmem:[#allocation6 + $0xd0] sm:$0xf] }
 0x350   : > { %v1422_v34 = vpop.f32.mrb[12].mxu0 }
 0x351   : > { %v1530_v35 = vpop.f32.mrb[20].mxu1  ;;  %v6234_v37 = vpop.f32.mrb[13].mxu0 }
 0x352   : > { %v1531_v36 = vadd.f32 %v1530_v35, %v1422_v34  ;;  %v6259_v38 = vpop.f32.mrb[21].mxu1 }
 0x354   : > { %v1427_v39 = vpop.f32.mrb[14].mxu0 }
 0x355   : > { %v1535_v40 = vpop.f32.mrb[22].mxu1  ;;  %v6237_v42 = vpop.f32.mrb[15].mxu0 }
 0x356   : > { %v1536_v41 = vadd.f32 %v1535_v40, %v1427_v39  ;;  %v6262_v43 = vpop.f32.mrb[23].mxu1  ;;  %v1947_v40 = vld [vmem:[#allocation3 + $0x22] sm:$0x1]  ;;  %v2126_v42 = vld [vmem:[#allocation8 + $0x50] sm:$0xff] }
 0x357   : > { %v2110_v43 = vld [vmem:[#allocation8] sm:$0xff] }
 0x358   : > { %v1634_v44 = vpop.f32.mrb[16].mxu0 }
 0x359   : > { %v1658_v46 = vadd.f32 %v1634_v44, %v1516_v21  ;;  %v6275_v47 = vpop.f32.mrb[17].mxu0 }
 0x35a   : > { %v2127_v47 = vld [vmem:[#allocation8 + $0x58] sm:$0xff] }
 0x35b   : > { %v1670_v48 = vadd.f32 %v5532_v45, %v1658_v46 }
 0x35c   : > { %v1639_v49 = vpop.f32.mrb[18].mxu0 }
 0x35d   : > { %vm1675_vm6 = vcmp.ge.f32.partialorder %v1670_v48, 0.0  ;;  %v1680_v50 = vmul.f32 0.2, %v1670_v48  ;;  %v1659_v51 = vadd.f32 %v1639_v49, %v1521_v26  ;;  %v6278_v52 = vpop.f32.mrb[19].mxu0  ;;  %v1956_v26 = vld [vmem:[#allocation6 + $0xc8] sm:$0xff] }
 0x35e   : > { %v7135_v30 = vpack.c.bf16 %v1956_v26, %v1955_v25 }
 0x35f   : > { %v1685_v53 = vsel %vm1675_vm6, %v1670_v48, %v1680_v50  ;;  %v1671_v54 = vadd.f32 %v5532_v45, %v1659_v51  ;;  %v2128_v48 = vld [vmem:[#allocation8 + $0x60] sm:$0xff]  ;;  %v2112_v50 = vld [vmem:[#allocation8 + $0x10] sm:$0xff]  ;;  %v2113_v51 = vld [vmem:[#allocation8 + $0x18] sm:$0xff] }
 0x360   : > { %1691 = vst.msk [vmem:[#allocation3 + $0x1] sm:$0xff] %vm1690_vm7, %v1685_v53  ;;  %v1644_v55 = vpop.f32.mrb[20].mxu0  ;;  %v7141_v49 = vpack.c.bf16 %v2128_v48, %v2127_v47  ;;  %v7153_v52 = vpack.c.bf16 %v2113_v51, %v2112_v50  ;;  %v2129_v53 = vld [vmem:[#allocation8 + $0x68] sm:$0xff] }
 0x361   : > { %vm1676_vm8 = vcmp.ge.f32.partialorder %v1671_v54, 0.0  ;;  %v1681_v56 = vmul.f32 0.2, %v1671_v54  ;;  %v1660_v57 = vadd.f32 %v1644_v55, %v1526_v31  ;;  %v6281_v58 = vpop.f32.mrb[21].mxu0  ;;  %v2114_v55 = vld [vmem:[#allocation8 + $0x20] sm:$0xff] }
 0x363   : > { %v1686_v61 = vsel %vm1676_vm8, %v1671_v54, %v1681_v56  ;;  %v1672_v62 = vadd.f32 %v5532_v45, %v1660_v57  ;;  %v2130_v54 = vld [vmem:[#allocation8 + $0x70] sm:$0xff]  ;;  %v2115_v57 = vld [vmem:[#allocation8 + $0x28] sm:$0xff] }
 0x364   : > { %1692 = vst.msk [vmem:[#allocation3 + $0x9] sm:$0xff] %vm1690_vm7, %v1686_v61  ;;  %v1649_v63 = vpop.f32.mrb[22].mxu0  ;;  %v7144_v56 = vpack.c.bf16 %v2130_v54, %v2129_v53  ;;  %v7156_v58 = vpack.c.bf16 %v2115_v57, %v2114_v55  ;;  %v2116_v61 = vld [vmem:[#allocation8 + $0x30] sm:$0xff]  ;;  %v2352_v54 = vld [vmem:[#allocation8 + $0xa0] sm:$0xff]  ;;  %v2353_v55 = vld [vmem:[#allocation8 + $0xa8] sm:$0xff] }
 0x365   : > { %vm1677_vm9 = vcmp.ge.f32.partialorder %v1672_v62, 0.0  ;;  %v1682_v2 = vmul.f32 0.2, %v1672_v62  ;;  %v1661_v3 = vadd.f32 %v1649_v63, %v1531_v36  ;;  %v6284_v4 = vpop.f32.mrb[23].mxu0  ;;  %v2117_v63 = vld [vmem:[#allocation8 + $0x38] sm:$0xff] }
 0x366   : > { %v2118_v4 = vld [vmem:[#allocation8 + $0x40] sm:$0xff] }
 0x367   : > { %v1687_v8 = vsel %vm1677_vm9, %v1672_v62, %v1682_v2  ;;  %v1673_v9 = vadd.f32 %v5532_v45, %v1661_v3  ;;  %v1711_v10 = vld [vmem:[#allocation3 + $0x1] sm:$0xff]  ;;  %v7147_v62 = vpack.c.bf16 %v2132_v60, %v2131_v59  ;;  %v7159_v2 = vpack.c.bf16 %v2117_v63, %v2116_v61 }
 0x368   : > { %v1697_v11 = vld [vmem:[#allocation3] sm:$0xff]  ;;  %1693 = vst.msk [vmem:[#allocation3 + $0x11] sm:$0xff] %vm1690_vm7, %v1687_v8  ;;  %v1654_v12 = vpop.f32.mrb[24].mxu0  ;;  %6307 = vmatmul.mubr.msk.f32.vlgmr.msra.gmra.mrb[24].mxu1 %vm1690_vm7, %v1711_v10 }
 0x369   : > { %6340 = vmatmul.mubr.msk.f32.vlgmr.msra.gmra.mrb[26].mxu0 %vm1690_vm7, %v1697_v11  ;;  %vm1678_vm10 = vcmp.ge.f32.partialorder %v1673_v9, 0.0  ;;  %v1683_v13 = vmul.f32 0.2, %v1673_v9  ;;  %v1662_v14 = vadd.f32 %v1654_v12, %v1536_v41  ;;  %7127 = vmatpush3.bf16.msra.mxu1 %v7126_v5  ;;  %v6287_v15 = vpop.f32.mrb[25].mxu0  ;;  %v2125_v41 = vld [vmem:[#allocation8 + $0x48] sm:$0xff] }
 0x36a   : > { %6309 = vmatprep.mubr.msk.f32.mxu1 %vm8029_vm0, %v8028_v1  ;;  %6342 = vmatprep.mubr.msk.f32.mxu0 %vm8029_vm0, %v8028_v1  ;;  %v7138_v44 = vpack.c.bf16 %v2126_v42, %v2125_v41  ;;  %v2133_v3 = vld [vmem:[#allocation8 + $0x88] sm:$0xff] }
 0x36b   : > { %7128 = vmatprep.subr.bf16.mxu1 %v8027_v0  ;;  %v1688_v19 = vsel %vm1678_vm10, %v1673_v9, %v1683_v13  ;;  %v1674_v20 = vadd.f32 %v5532_v45, %v1662_v14  ;;  %v1712_v21 = vld [vmem:[#allocation3 + $0x9] sm:$0xff]  ;;  %v2111_v45 = vld [vmem:[#allocation8 + $0x8] sm:$0xff] }
 0x36c   : > { %v1698_v22 = vld [vmem:[#allocation3 + $0x8] sm:$0xff]  ;;  %1694 = vst.msk [vmem:[#allocation3 + $0x19] sm:$0xff] %vm1690_vm7, %v1688_v19  ;;  %6310 = vmatmul.mubr.msk.f32.gmra.mrb[26].mxu1 %vm1690_vm7, %v1712_v21  ;;  %v7150_v46 = vpack.c.bf16 %v2111_v45, %v2110_v43  ;;  %7139 = vmatpush3.bf16.msra.mxu0 %v7138_v44 }
 0x36d   : > { %6343 = vmatmul.mubr.msk.f32.gmra.mrb[28].mxu0 %vm1690_vm7, %v1698_v22  ;;  %vm1679_vm11 = vcmp.ge.f32.partialorder %v1674_v20, 0.0  ;;  %v1684_v23 = vmul.f32 0.2, %v1674_v20  ;;  %7130 = vmatpush3.bf16.msra.mxu1 %v7129_v16  ;;  %v1943_v36 = vld [vmem:[#allocation3 + $0x2] sm:$0xff] }
 0x36e   : > { %6312 = vmatprep.mubr.msk.f32.mxu1 %vm8029_vm0, %v8028_v1  ;;  %6345 = vmatprep.mubr.msk.f32.mxu0 %vm8029_vm0, %v8028_v1  ;;  %v2350_v45 = vld [vmem:[#allocation8 + $0x90] sm:$0xff] }
 0x36f   : > { %7131 = vmatprep.subr.bf16.mxu1 %v8027_v0  ;;  %v1689_v27 = vsel %vm1679_vm11, %v1674_v20, %v1684_v23  ;;  %v1713_v28 = vld [vmem:[#allocation3 + $0x11] sm:$0xff]  ;;  %7140 = vmatprep.subr.bf16.mxu0 %v8027_v0 }
 0x370   : > { %v1699_v29 = vld [vmem:[#allocation3 + $0x10] sm:$0xff]  ;;  %1696 = vst.msk [vmem:[#allocation3 + $0x21] sm:$0x1] %vm1695_vm12, %v1689_v27  ;;  %6313 = vmatmul.mubr.msk.f32.gmra.mrb[28].mxu1 %vm1690_vm7, %v1713_v28  ;;  %7142 = vmatpush3.bf16.msra.mxu0 %v7141_v49  ;;  %vm2501_vm12 = vcmask 647168  }
 0x371   : > { %6346 = vmatmul.mubr.msk.f32.gmra.mrb[30].mxu0 %vm1690_vm7, %v1699_v29  ;;  %7133 = vmatpush3.bf16.msra.mxu1 %v7132_v24  ;;  %v1944_v37 = vld [vmem:[#allocation3 + $0xa] sm:$0xff] }
 0x372   : > { %6315 = vmatprep.mubr.msk.f32.mxu1 %vm8029_vm0, %v8028_v1  ;;  %6348 = vmatprep.mubr.msk.f32.mxu0 %vm8029_vm0, %v8028_v1 }
 0x373   : > { %7134 = vmatprep.subr.bf16.mxu1 %v8027_v0  ;;  %v1714_v31 = vld [vmem:[#allocation3 + $0x19] sm:$0xff]  ;;  %7143 = vmatprep.subr.bf16.mxu0 %v8027_v0 }
 0x374   : > { %v1700_v32 = vld [vmem:[#allocation3 + $0x18] sm:$0xff]  ;;  %6316 = vmatmul.mubr.msk.f32.gmra.mrb[30].mxu1 %vm1690_vm7, %v1714_v31  ;;  %v1701_v35 = vld [vmem:[#allocation3 + $0x20] sm:$0x1]  ;;  %7145 = vmatpush3.bf16.msra.mxu0 %v7144_v56 }
 0x375   : > { %6349 = vmatmul.mubr.msk.f32.gmra.mrb[32].mxu0 %vm1690_vm7, %v1700_v32  ;;  %7136 = vmatpush3.bf16.msra.mxu1 %v7135_v30  ;;  %v1945_v38 = vld [vmem:[#allocation3 + $0x12] sm:$0xff] }
 0x376   : > { %6318 = vmatprep.mubr.msk.f32.mxu1 %vm8029_vm0, %v8028_v1  ;;  %6351 = vmatprep.mubr.msk.f32.mxu0 %vm8029_vm0, %v8028_v1  ;;  %v5551_v31 = vld [vmem:[%s10191_s1] ss:$0 sm:$0xff] }
 0x377   : > { %6370 = vmatprep.subr.mxu1 %v8028_v1  ;;  %v1715_v34 = vld [vmem:[#allocation3 + $0x21] sm:$0x1]  ;;  %7146 = vmatprep.subr.bf16.mxu0 %v8027_v0 }
 0x378   : > { %6319 = vmatmul.mubr.msk.f32.gmra.mrb[32].mxu1 %vm1690_vm7, %v1715_v34  ;;  %v1946_v39 = vld [vmem:[#allocation3 + $0x1a] sm:$0xff]  ;;  %7148 = vmatpush3.bf16.msra.mxu0 %v7147_v62 }
 0x379   : > { %6352 = vmatmul.mubr.msk.f32.gmra.mrb[34].mxu0 %vm1690_vm7, %v1701_v35  ;;  %6371 = vmatpush3.msk.msra.mxu1 %vm1741_vm5, %v1957_v33  ;;  %vm2103_vm5 = vcmask 581632  }
 0x37a   : > { %6372 = vmatprep.mubr.msk.f32.mxu1 %vm8029_vm0, %v8028_v1  ;;  %7149 = vmatprep.subr.bf16.mxu1 %v8027_v0 }
 0x37b   : > { %6405 = vmatprep.mubr.msk.f32.mxu0 %vm8029_vm0, %v8028_v1  ;;  %6403 = vmatprep.subr.mxu0 %v8028_v1 }
 0x37c   : > { %6373 = vmatmul.mubr.msk.f32.vlgmr.msra.gmra.mrb[34].mxu1 %vm1690_vm7, %v1943_v36  ;;  %6404 = vmatpush3.msra.mxu0 %v2133_v3  ;;  %v2354_v3 = vld [vmem:[#allocation8 + $0xb0] sm:$0xff] }
 0x37d   : > { %6375 = vmatprep.mubr.msk.f32.mxu1 %vm8029_vm0, %v8028_v1  ;;  %7151 = vmatpush3.bf16.msra.mxu1 %v7150_v46  ;;  %v2351_v46 = vld [vmem:[#allocation8 + $0x98] sm:$0xff] }
 0x37e   : > { %7152 = vmatprep.subr.bf16.mxu1 %v8027_v0  ;;  %7161 = vmatprep.subr.bf16.mxu0 %v8027_v0  ;;  %v7162_v53 = vpack.c.bf16 %v2351_v46, %v2350_v45  ;;  %v2530_v45 = vld [vmem:[#allocation9 + $0x80] sm:$0xff]  ;;  %v2531_v46 = vld [vmem:[#allocation9 + $0x88] sm:$0xff] }
 0x380   : > { %6376 = vmatmul.mubr.msk.f32.gmra.mrb[36].mxu1 %vm1690_vm7, %v1944_v37 }
 0x381   : > { %6378 = vmatprep.mubr.msk.f32.mxu1 %vm8029_vm0, %v8028_v1  ;;  %7154 = vmatpush3.bf16.msra.mxu1 %v7153_v52 }
 0x382   : > { %7155 = vmatprep.subr.bf16.mxu1 %v8027_v0 }
 0x384   : > { %6379 = vmatmul.mubr.msk.f32.gmra.mrb[38].mxu1 %vm1690_vm7, %v1945_v38 }
 0x385   : > { %6381 = vmatprep.mubr.msk.f32.mxu1 %vm8029_vm0, %v8028_v1  ;;  %7157 = vmatpush3.bf16.msra.mxu1 %v7156_v58 }
 0x386   : > { %7158 = vmatprep.subr.bf16.mxu1 %v8027_v0 }
 0x388   : > { %6382 = vmatmul.mubr.msk.f32.gmra.mrb[40].mxu1 %vm1690_vm7, %v1946_v39 }
 0x389   : > { %6384 = vmatprep.mubr.msk.f32.mxu1 %vm8029_vm0, %v8028_v1  ;;  %7160 = vmatpush3.bf16.msra.mxu1 %v7159_v2  ;;  %v7165_v2 = vpack.c.bf16 %v2353_v55, %v2352_v54  ;;  %v2517_v55 = vld [vmem:[#allocation9 + $0x48] sm:$0xff] }
 0x38a   : > { %6436 = vmatprep.subr.mxu1 %v8028_v1 }
 0x38c   : > { %6385 = vmatmul.mubr.msk.f32.gmra.mrb[42].mxu1 %vm1690_vm7, %v1947_v40  ;;  %vm2496_vm7 = vcmask 654336  }
 0x38d   : > { %6438 = vmatprep.mubr.msk.f32.mxu1 %vm8029_vm0, %v8028_v1  ;;  %6437 = vmatpush3.msra.mxu1 %v2118_v4  ;;  %v2355_v4 = vld [vmem:[#allocation8 + $0xb8] sm:$0xff] }
 0x38e   : > { %7173 = vmatprep.subr.bf16.mxu1 %v8027_v0 }
 0x43b   : > { %v1811_v5 = vpop.f32.mrb[24].mxu1 }
 0x43c   : > { %v1919_v6 = vpop.f32.mrb[26].mxu0  ;;  %v6308_v8 = vpop.f32.mrb[25].mxu1 }
 0x43d   : > { %v1920_v7 = vadd.f32 %v1919_v6, %v1811_v5  ;;  %v6341_v9 = vpop.f32.mrb[27].mxu0 }
 0x43f   : > { %v1816_v10 = vpop.f32.mrb[26].mxu1 }
 0x440   : > { %v1924_v11 = vpop.f32.mrb[28].mxu0  ;;  %v6311_v13 = vpop.f32.mrb[27].mxu1 }
 0x441   : > { %v1925_v12 = vadd.f32 %v1924_v11, %v1816_v10  ;;  %v6344_v14 = vpop.f32.mrb[29].mxu0  ;;  %v7168_v10 = vpack.c.bf16 %v2355_v4, %v2354_v3  ;;  %v2356_v11 = vld [vmem:[#allocation8 + $0xc0] sm:$0xff] }
 0x443   : > { %v1821_v15 = vpop.f32.mrb[28].mxu1 }
 0x444   : > { %v1929_v16 = vpop.f32.mrb[30].mxu0  ;;  %v6314_v18 = vpop.f32.mrb[29].mxu1 }
 0x445   : > { %v1930_v17 = vadd.f32 %v1929_v16, %v1821_v15  ;;  %v6347_v19 = vpop.f32.mrb[31].mxu0 }
 0x446   : > { %v2358_v19 = vld [vmem:[#allocation8 + $0xd0] sm:$0xff] }
 0x447   : > { %v1826_v20 = vpop.f32.mrb[30].mxu1 }
 0x448   : > { %v1934_v21 = vpop.f32.mrb[32].mxu0  ;;  %v6317_v23 = vpop.f32.mrb[31].mxu1 }
 0x449   : > { %v1935_v22 = vadd.f32 %v1934_v21, %v1826_v20  ;;  %v6350_v24 = vpop.f32.mrb[33].mxu0 }
 0x44b   : > { %v1831_v25 = vpop.f32.mrb[32].mxu1 }
 0x44c   : > { %v1939_v26 = vpop.f32.mrb[34].mxu0  ;;  %v6320_v28 = vpop.f32.mrb[33].mxu1 }
 0x44d   : > { %v1940_v27 = vadd.f32 %v1939_v26, %v1831_v25  ;;  %v6353_v29 = vpop.f32.mrb[35].mxu0  ;;  %v2348_v26 = vld [vmem:[#allocation2 + $0x22] sm:$0x1]  ;;  %v2525_v28 = vld [vmem:[#allocation9 + $0x58] sm:$0xff] }
 0x44e   : > { %v2508_v29 = vld [vmem:[#allocation9] sm:$0xff] }
 0x44f   : > { %v2042_v30 = vpop.f32.mrb[34].mxu1 }
 0x450   : > { %v2066_v32 = vadd.f32 %v2042_v30, %v1920_v7  ;;  %v6374_v33 = vpop.f32.mrb[35].mxu1 }
 0x451   : > { %v2526_v33 = vld [vmem:[#allocation9 + $0x60] sm:$0xff] }
 0x452   : > { %v2078_v34 = vadd.f32 %v5551_v31, %v2066_v32 }
 0x453   : > { %v2047_v35 = vpop.f32.mrb[36].mxu1 }
 0x454   : > { %vm2083_vm13 = vcmp.ge.f32.partialorder %v2078_v34, 0.0  ;;  %v2088_v36 = vmul.f32 0.2, %v2078_v34  ;;  %v2067_v37 = vadd.f32 %v2047_v35, %v1925_v12  ;;  %v6377_v38 = vpop.f32.mrb[37].mxu1  ;;  %v2357_v12 = vld [vmem:[#allocation8 + $0xc8] sm:$0xff] }
 0x455   : > { %v7171_v16 = vpack.c.bf16 %v2357_v12, %v2356_v11  ;;  %v2510_v35 = vld [vmem:[#allocation9 + $0x10] sm:$0xff] }
 0x456   : > { %v2093_v39 = vsel %vm2083_vm13, %v2078_v34, %v2088_v36  ;;  %v2079_v40 = vadd.f32 %v5551_v31, %v2067_v37  ;;  %v2527_v34 = vld [vmem:[#allocation9 + $0x68] sm:$0xff]  ;;  %v2511_v37 = vld [vmem:[#allocation9 + $0x18] sm:$0xff] }
 0x457   : > { %2099 = vst.msk [vmem:[#allocation2 + $0x1] sm:$0xff] %vm2098_vm14, %v2093_v39  ;;  %v2052_v41 = vpop.f32.mrb[38].mxu1  ;;  %v7177_v36 = vpack.c.bf16 %v2527_v34, %v2526_v33  ;;  %v7192_v38 = vpack.c.bf16 %v2511_v37, %v2510_v35  ;;  %v2528_v39 = vld [vmem:[#allocation9 + $0x70] sm:$0xff]  ;;  %v2750_v35 = vld [vmem:[#allocation9 + $0xa0] sm:$0xff] }
 0x458   : > { %vm2084_vm15 = vcmp.ge.f32.partialorder %v2079_v40, 0.0  ;;  %v2089_v42 = vmul.f32 0.2, %v2079_v40  ;;  %v2068_v43 = vadd.f32 %v2052_v41, %v1930_v17  ;;  %v6380_v44 = vpop.f32.mrb[39].mxu1  ;;  %v2512_v41 = vld [vmem:[#allocation9 + $0x20] sm:$0xff] }
 0x45a   : > { %v2094_v47 = vsel %vm2084_vm15, %v2079_v40, %v2089_v42  ;;  %v2080_v48 = vadd.f32 %v5551_v31, %v2068_v43  ;;  %v2529_v40 = vld [vmem:[#allocation9 + $0x78] sm:$0xff]  ;;  %v2513_v43 = vld [vmem:[#allocation9 + $0x28] sm:$0xff] }
 0x45b   : > { %2100 = vst.msk [vmem:[#allocation2 + $0x9] sm:$0xff] %vm2098_vm14, %v2094_v47  ;;  %v2057_v49 = vpop.f32.mrb[40].mxu1  ;;  %v7180_v42 = vpack.c.bf16 %v2529_v40, %v2528_v39  ;;  %v7195_v44 = vpack.c.bf16 %v2513_v43, %v2512_v41  ;;  %v2514_v47 = vld [vmem:[#allocation9 + $0x30] sm:$0xff] }
 0x45c   : > { %vm2085_vm2 = vcmp.ge.f32.partialorder %v2080_v48, 0.0  ;;  %v2090_v50 = vmul.f32 0.2, %v2080_v48  ;;  %v2069_v51 = vadd.f32 %v2057_v49, %v1935_v22  ;;  %v6383_v52 = vpop.f32.mrb[41].mxu1  ;;  %v2515_v49 = vld [vmem:[#allocation9 + $0x38] sm:$0xff] }
 0x45d   : > { %v2533_v52 = vld [vmem:[#allocation9 + $0x98] sm:$0xff] }
 0x45e   : > { %v2095_v56 = vsel %vm2085_vm2, %v2080_v48, %v2090_v50  ;;  %v2081_v57 = vadd.f32 %v5551_v31, %v2069_v51  ;;  %v2119_v58 = vld [vmem:[#allocation2 + $0x1] sm:$0xff]  ;;  %v7183_v48 = vpack.c.bf16 %v2531_v46, %v2530_v45  ;;  %v7198_v50 = vpack.c.bf16 %v2515_v49, %v2514_v47  ;;  %v2753_v45 = vld [vmem:[#allocation9 + $0xb8] sm:$0xff] }
 0x45f   : > { %v2105_v59 = vld [vmem:[#allocation2] sm:$0xff]  ;;  %2101 = vst.msk [vmem:[#allocation2 + $0x11] sm:$0xff] %vm2098_vm14, %v2095_v56  ;;  %v2062_v60 = vpop.f32.mrb[42].mxu1  ;;  %6406 = vmatmul.mubr.msk.f32.vlgmr.msra.gmra.mrb[36].mxu0 %vm2098_vm14, %v2119_v58  ;;  %v2532_v51 = vld [vmem:[#allocation9 + $0x90] sm:$0xff] }
 0x460   : > { %6439 = vmatmul.mubr.msk.f32.vlgmr.msra.gmra.mrb[44].mxu1 %vm2098_vm14, %v2105_v59  ;;  %vm2086_vm3 = vcmp.ge.f32.partialorder %v2081_v57, 0.0  ;;  %v2091_v61 = vmul.f32 0.2, %v2081_v57  ;;  %v2070_v62 = vadd.f32 %v2062_v60, %v1940_v27  ;;  %7163 = vmatpush3.bf16.msra.mxu0 %v7162_v53  ;;  %v6386_v63 = vpop.f32.mrb[43].mxu1  ;;  %v2524_v27 = vld [vmem:[#allocation9 + $0x50] sm:$0xff]  ;;  %v2516_v53 = vld [vmem:[#allocation9 + $0x40] sm:$0xff]  ;;  %v7186_v54 = vpack.c.bf16 %v2533_v52, %v2532_v51 }
 0x461   : > { %6408 = vmatprep.mubr.msk.f32.mxu0 %vm8029_vm0, %v8028_v1  ;;  %6441 = vmatprep.mubr.msk.f32.mxu1 %vm8029_vm0, %v8028_v1  ;;  %v7174_v30 = vpack.c.bf16 %v2525_v28, %v2524_v27  ;;  %v7201_v56 = vpack.c.bf16 %v2517_v55, %v2516_v53  ;;  %v2754_v55 = vld [vmem:[#allocation9 + $0xc0] sm:$0xff] }
 0x462   : > { %7164 = vmatprep.subr.bf16.mxu0 %v8027_v0  ;;  %v2096_v5 = vsel %vm2086_vm3, %v2081_v57, %v2091_v61  ;;  %v2082_v6 = vadd.f32 %v5551_v31, %v2070_v62  ;;  %v2120_v7 = vld [vmem:[#allocation2 + $0x9] sm:$0xff]  ;;  %v2509_v31 = vld [vmem:[#allocation9 + $0x8] sm:$0xff] }
 0x463   : > { %v2106_v8 = vld [vmem:[#allocation2 + $0x8] sm:$0xff]  ;;  %2102 = vst.msk [vmem:[#allocation2 + $0x19] sm:$0xff] %vm2098_vm14, %v2096_v5  ;;  %6409 = vmatmul.mubr.msk.f32.gmra.mrb[38].mxu0 %vm2098_vm14, %v2120_v7  ;;  %v7189_v32 = vpack.c.bf16 %v2509_v31, %v2508_v29  ;;  %7175 = vmatpush3.bf16.msra.mxu1 %v7174_v30 }
 0x464   : > { %6442 = vmatmul.mubr.msk.f32.gmra.mrb[46].mxu1 %vm2098_vm14, %v2106_v8  ;;  %vm2087_vm4 = vcmp.ge.f32.partialorder %v2082_v6, 0.0  ;;  %v2092_v9 = vmul.f32 0.2, %v2082_v6  ;;  %7166 = vmatpush3.bf16.msra.mxu0 %v7165_v2  ;;  %v2344_v22 = vld [vmem:[#allocation2 + $0x2] sm:$0xff] }
 0x465   : > { %6411 = vmatprep.mubr.msk.f32.mxu0 %vm8029_vm0, %v8028_v1  ;;  %6444 = vmatprep.mubr.msk.f32.mxu1 %vm8029_vm0, %v8028_v1 }
 0x466   : > { %7167 = vmatprep.subr.bf16.mxu0 %v8027_v0  ;;  %v2097_v13 = vsel %vm2087_vm4, %v2082_v6, %v2092_v9  ;;  %v2121_v14 = vld [vmem:[#allocation2 + $0x11] sm:$0xff]  ;;  %7176 = vmatprep.subr.bf16.mxu1 %v8027_v0 }
 0x467   : > { %v2107_v15 = vld [vmem:[#allocation2 + $0x10] sm:$0xff]  ;;  %2104 = vst.msk [vmem:[#allocation2 + $0x21] sm:$0x1] %vm2103_vm5, %v2097_v13  ;;  %6412 = vmatmul.mubr.msk.f32.gmra.mrb[40].mxu0 %vm2098_vm14, %v2121_v14  ;;  %7178 = vmatpush3.bf16.msra.mxu1 %v7177_v36  ;;  %v2751_v36 = vld [vmem:[#allocation9 + $0xa8] sm:$0xff]  ;;  %vm2902_vm5 = vcmask 778240  }
 0x468   : > { %6445 = vmatmul.mubr.msk.f32.gmra.mrb[48].mxu1 %vm2098_vm14, %v2107_v15  ;;  %7169 = vmatpush3.bf16.msra.mxu0 %v7168_v10  ;;  %v2345_v23 = vld [vmem:[#allocation2 + $0xa] sm:$0xff]  ;;  %v7204_v43 = vpack.c.bf16 %v2751_v36, %v2750_v35 }
 0x469   : > { %6414 = vmatprep.mubr.msk.f32.mxu0 %vm8029_vm0, %v8028_v1  ;;  %6447 = vmatprep.mubr.msk.f32.mxu1 %vm8029_vm0, %v8028_v1  ;;  %v2919_v35 = vld [vmem:[%s10193_s4 + $0x28] sm:$0xff] }
 0x46a   : > { %7170 = vmatprep.subr.bf16.mxu0 %v8027_v0  ;;  %v2122_v17 = vld [vmem:[#allocation2 + $0x19] sm:$0xff]  ;;  %7179 = vmatprep.subr.bf16.mxu1 %v8027_v0 }
 0x46b   : > { %v2108_v18 = vld [vmem:[#allocation2 + $0x18] sm:$0xff]  ;;  %6415 = vmatmul.mubr.msk.f32.gmra.mrb[42].mxu0 %vm2098_vm14, %v2122_v17  ;;  %v2109_v21 = vld [vmem:[#allocation2 + $0x20] sm:$0x1]  ;;  %7181 = vmatpush3.bf16.msra.mxu1 %v7180_v42 }
 0x46c   : > { %6448 = vmatmul.mubr.msk.f32.gmra.mrb[50].mxu1 %vm2098_vm14, %v2108_v18  ;;  %7172 = vmatpush3.bf16.msra.mxu0 %v7171_v16  ;;  %v2346_v24 = vld [vmem:[#allocation2 + $0x12] sm:$0xff] }
 0x46d   : > { %6417 = vmatprep.mubr.msk.f32.mxu0 %vm8029_vm0, %v8028_v1  ;;  %6450 = vmatprep.mubr.msk.f32.mxu1 %vm8029_vm0, %v8028_v1 }
 0x46e   : > { %6469 = vmatprep.subr.mxu0 %v8028_v1  ;;  %v2123_v20 = vld [vmem:[#allocation2 + $0x21] sm:$0x1]  ;;  %7182 = vmatprep.subr.bf16.mxu1 %v8027_v0 }
 0x46f   : > { %6418 = vmatmul.mubr.msk.f32.gmra.mrb[44].mxu0 %vm2098_vm14, %v2123_v20  ;;  %v2347_v25 = vld [vmem:[#allocation2 + $0x1a] sm:$0xff]  ;;  %7184 = vmatpush3.bf16.msra.mxu1 %v7183_v48 }
 0x470   : > { %6451 = vmatmul.mubr.msk.f32.gmra.mrb[52].mxu1 %vm2098_vm14, %v2109_v21  ;;  %6470 = vmatpush3.msra.mxu0 %v2358_v19  ;;  %v5567_v21 = vld [vmem:[%s10192_s9] ss:$0 sm:$0xff] }
 0x471   : > { %6471 = vmatprep.mubr.msk.f32.mxu0 %vm8029_vm0, %v8028_v1  ;;  %7188 = vmatprep.subr.bf16.mxu0 %v8027_v0 }
 0x472   : > { %6506 = vmatprep.mubr.msk.f32.mxu1 %vm8029_vm0, %v8028_v1  ;;  %7185 = vmatprep.subr.bf16.mxu1 %v8027_v0 }
 0x473   : > { %6472 = vmatmul.mubr.msk.f32.vlgmr.msra.gmra.mrb[46].mxu0 %vm2098_vm14, %v2344_v22  ;;  %7187 = vmatpush3.bf16.msra.mxu1 %v7186_v54 }
 0x474   : > { %6474 = vmatprep.mubr.msk.f32.mxu0 %vm8029_vm0, %v8028_v1  ;;  %7190 = vmatpush3.bf16.msra.mxu0 %v7189_v32 }
 0x475   : > { %7191 = vmatprep.subr.bf16.mxu0 %v8027_v0  ;;  %7203 = vmatprep.subr.bf16.mxu1 %v8027_v0 }
 0x477   : > { %6475 = vmatmul.mubr.msk.f32.gmra.mrb[48].mxu0 %vm2098_vm14, %v2345_v23 }
 0x478   : > { %6477 = vmatprep.mubr.msk.f32.mxu0 %vm8029_vm0, %v8028_v1  ;;  %7193 = vmatpush3.bf16.msra.mxu0 %v7192_v38 }
 0x479   : > { %7194 = vmatprep.subr.bf16.mxu0 %v8027_v0 }
 0x47b   : > { %6478 = vmatmul.mubr.msk.f32.gmra.mrb[50].mxu0 %vm2098_vm14, %v2346_v24 }
 0x47c   : > { %6480 = vmatprep.mubr.msk.f32.mxu0 %vm8029_vm0, %v8028_v1  ;;  %7196 = vmatpush3.bf16.msra.mxu0 %v7195_v44  ;;  %v2752_v44 = vld [vmem:[#allocation9 + $0xb0] sm:$0xff] }
 0x47d   : > { %7197 = vmatprep.subr.bf16.mxu0 %v8027_v0  ;;  %v7207_v54 = vpack.c.bf16 %v2753_v45, %v2752_v44  ;;  %v5593_v44 = vld [vmem:[%s10193_s4 + $0xa8] sm:$0xff] }
 0x47f   : > { %6481 = vmatmul.mubr.msk.f32.gmra.mrb[52].mxu0 %vm2098_vm14, %v2347_v25 }
 0x480   : > { %6483 = vmatprep.mubr.msk.f32.mxu0 %vm8029_vm0, %v8028_v1  ;;  %7199 = vmatpush3.bf16.msra.mxu0 %v7198_v50 }
 0x481   : > { %7200 = vmatprep.subr.bf16.mxu0 %v8027_v0 }
 0x483   : > { %6484 = vmatmul.mubr.msk.f32.gmra.mrb[54].mxu0 %vm2098_vm14, %v2348_v26  ;;  %vm2897_vm14 = vcmask 785408  }
 0x484   : > { %6541 = vmatprep.mubr.msk.f32.mxu0 %vm8029_vm0, %v8028_v1  ;;  %7202 = vmatpush3.bf16.msra.mxu0 %v7201_v56  ;;  %v2755_v56 = vld [vmem:[#allocation9 + $0xc8] sm:$0xff] }
 0x485   : > { %7218 = vmatprep.subr.bf16.mxu0 %v8027_v0 }
 0x532   : > { %v2215_v57 = vpop.f32.mrb[36].mxu0 }
 0x533   : > { %v2320_v58 = vpop.f32.mrb[44].mxu1  ;;  %v6407_v60 = vpop.f32.mrb[37].mxu0 }
 0x534   : > { %v2321_v59 = vadd.f32 %v2320_v58, %v2215_v57  ;;  %v6440_v61 = vpop.f32.mrb[45].mxu1 }
 0x536   : > { %v2220_v62 = vpop.f32.mrb[38].mxu0 }
 0x537   : > { %v2325_v63 = vpop.f32.mrb[46].mxu1  ;;  %v6410_v3 = vpop.f32.mrb[39].mxu0 }
 0x538   : > { %v2326_v2 = vadd.f32 %v2325_v63, %v2220_v62  ;;  %v6443_v4 = vpop.f32.mrb[47].mxu1  ;;  %v7210_v62 = vpack.c.bf16 %v2755_v56, %v2754_v55  ;;  %v2756_v63 = vld [vmem:[#allocation9 + $0xd0] sm:$0xff] }
 0x53a   : > { %v2225_v5 = vpop.f32.mrb[40].mxu0 }
 0x53b   : > { %v2330_v6 = vpop.f32.mrb[48].mxu1  ;;  %v6413_v8 = vpop.f32.mrb[41].mxu0 }
 0x53c   : > { %v2331_v7 = vadd.f32 %v2330_v6, %v2225_v5  ;;  %v6446_v9 = vpop.f32.mrb[49].mxu1  ;;  %v2759_v8 = vld [vmem:[#allocation9 + $0xe8] sm:$0xff] }
 0x53e   : > { %v2230_v10 = vpop.f32.mrb[42].mxu0 }
 0x53f   : > { %v2335_v11 = vpop.f32.mrb[50].mxu1  ;;  %v6416_v13 = vpop.f32.mrb[43].mxu0 }
 0x540   : > { %v2336_v12 = vadd.f32 %v2335_v11, %v2230_v10  ;;  %v6449_v14 = vpop.f32.mrb[51].mxu1 }
 0x542   : > { %v2235_v15 = vpop.f32.mrb[44].mxu0 }
 0x543   : > { %v2340_v16 = vpop.f32.mrb[52].mxu1  ;;  %v6419_v18 = vpop.f32.mrb[45].mxu0 }
 0x544   : > { %v2341_v17 = vadd.f32 %v2340_v16, %v2235_v15  ;;  %v6452_v19 = vpop.f32.mrb[53].mxu1  ;;  %v2748_v18 = vld [vmem:[#allocation3 + $0x22] sm:$0x1] }
 0x545   : > { %v5584_v19 = vld [vmem:[%s10193_s4 + $0x60] sm:$0xff] }
 0x546   : > { %v2440_v20 = vpop.f32.mrb[46].mxu0 }
 0x547   : > { %v2464_v22 = vadd.f32 %v2440_v20, %v2321_v59  ;;  %v6473_v23 = vpop.f32.mrb[47].mxu0  ;;  %v5585_v20 = vld [vmem:[%s10193_s4 + $0x68] sm:$0xff] }
 0x548   : > { %v2915_v23 = vld [vmem:[%s10193_s4 + $0x8] sm:$0xff] }
 0x549   : > { %v2476_v24 = vadd.f32 %v5567_v21, %v2464_v22  ;;  %v2914_v22 = vld [vmem:[%s10193_s4] sm:$0xff] }
 0x54a   : > { %v2445_v25 = vpop.f32.mrb[48].mxu0 }
 0x54b   : > { %vm2481_vm6 = vcmp.ge.f32.partialorder %v2476_v24, 0.0  ;;  %v2486_v26 = vmul.f32 0.2, %v2476_v24  ;;  %v2465_v27 = vadd.f32 %v2445_v25, %v2326_v2  ;;  %v6476_v28 = vpop.f32.mrb[49].mxu0  ;;  %v2757_v2 = vld [vmem:[#allocation9 + $0xd8] sm:$0xff] }
 0x54c   : > { %v7213_v6 = vpack.c.bf16 %v2757_v2, %v2756_v63  ;;  %v5586_v25 = vld [vmem:[%s10193_s4 + $0x70] sm:$0xff] }
 0x54d   : > { %v2491_v29 = vsel %vm2481_vm6, %v2476_v24, %v2486_v26  ;;  %v2477_v30 = vadd.f32 %v5567_v21, %v2465_v27  ;;  %v7237_v24 = vpack.c.bf16 %v2915_v23, %v2914_v22  ;;  %v5587_v26 = vld [vmem:[%s10193_s4 + $0x78] sm:$0xff]  ;;  %v2916_v28 = vld [vmem:[%s10193_s4 + $0x10] sm:$0xff] }
 0x54e   : > { %2497 = vst.msk [vmem:[#allocation3 + $0x1] sm:$0xff] %vm2496_vm7, %v2491_v29  ;;  %v2450_v31 = vpop.f32.mrb[50].mxu0  ;;  %v7222_v27 = vpack.c.bf16 %v5587_v26, %v5586_v25  ;;  %v2917_v29 = vld [vmem:[%s10193_s4 + $0x18] sm:$0xff] }
 0x54f   : > { %vm2482_vm8 = vcmp.ge.f32.partialorder %v2477_v30, 0.0  ;;  %v2487_v32 = vmul.f32 0.2, %v2477_v30  ;;  %v2466_v33 = vadd.f32 %v2450_v31, %v2331_v7  ;;  %v6479_v34 = vpop.f32.mrb[51].mxu0  ;;  %v2758_v7 = vld [vmem:[#allocation9 + $0xe0] sm:$0xff]  ;;  %v5588_v31 = vld [vmem:[%s10193_s4 + $0x80] sm:$0xff] }
 0x550   : > { %v7216_v11 = vpack.c.bf16 %v2759_v8, %v2758_v7  ;;  %v2918_v34 = vld [vmem:[%s10193_s4 + $0x20] sm:$0xff] }
 0x551   : > { %v2492_v37 = vsel %vm2482_vm8, %v2477_v30, %v2487_v32  ;;  %v2478_v38 = vadd.f32 %v5567_v21, %v2466_v33  ;;  %v7240_v30 = vpack.c.bf16 %v2917_v29, %v2916_v28  ;;  %v5589_v32 = vld [vmem:[%s10193_s4 + $0x88] sm:$0xff]  ;;  %v7243_v36 = vpack.c.bf16 %v2919_v35, %v2918_v34 }
 0x552   : > { %2498 = vst.msk [vmem:[#allocation3 + $0x9] sm:$0xff] %vm2496_vm7, %v2492_v37  ;;  %v2455_v39 = vpop.f32.mrb[52].mxu0  ;;  %v7225_v33 = vpack.c.bf16 %v5589_v32, %v5588_v31  ;;  %v5590_v37 = vld [vmem:[%s10193_s4 + $0x90] sm:$0xff]  ;;  %v5607_v34 = vld [vmem:[%s10193_s4 + $0xc8] sm:$0xff] }
 0x553   : > { %vm2483_vm9 = vcmp.ge.f32.partialorder %v2478_v38, 0.0  ;;  %v2488_v40 = vmul.f32 0.2, %v2478_v38  ;;  %v2467_v41 = vadd.f32 %v2455_v39, %v2336_v12  ;;  %v6482_v42 = vpop.f32.mrb[53].mxu0 }
 0x555   : > { %v2493_v46 = vsel %vm2483_vm9, %v2478_v38, %v2488_v40  ;;  %v2479_v47 = vadd.f32 %v5567_v21, %v2467_v41  ;;  %v2518_v48 = vld [vmem:[#allocation3 + $0x1] sm:$0xff]  ;;  %v5591_v38 = vld [vmem:[%s10193_s4 + $0x98] sm:$0xff] }
 0x556   : > { %v2503_v49 = vld [vmem:[#allocation3] sm:$0xff]  ;;  %2499 = vst.msk [vmem:[#allocation3 + $0x11] sm:$0xff] %vm2496_vm7, %v2493_v46  ;;  %v2460_v50 = vpop.f32.mrb[54].mxu0  ;;  %6507 = vmatmul.mubr.msk.f32.vlgmr.msra.gmra.mrb[54].mxu1 %vm2496_vm7, %v2518_v48  ;;  %v7228_v39 = vpack.c.bf16 %v5591_v38, %v5590_v37  ;;  %v2920_v40 = vld [vmem:[%s10193_s4 + $0x30] sm:$0xff]  ;;  %v2921_v41 = vld [vmem:[%s10193_s4 + $0x38] sm:$0xff] }
 0x557   : > { %6542 = vmatmul.mubr.msk.f32.vlgmr.msra.gmra.mrb[56].mxu0 %vm2496_vm7, %v2503_v49  ;;  %vm2484_vm10 = vcmp.ge.f32.partialorder %v2479_v47, 0.0  ;;  %v2489_v51 = vmul.f32 0.2, %v2479_v47  ;;  %v2468_v52 = vadd.f32 %v2460_v50, %v2341_v17  ;;  %7205 = vmatpush3.bf16.msra.mxu1 %v7204_v43  ;;  %v6485_v53 = vpop.f32.mrb[55].mxu0  ;;  %v7246_v42 = vpack.c.bf16 %v2921_v41, %v2920_v40  ;;  %v5592_v43 = vld [vmem:[%s10193_s4 + $0xa0] sm:$0xff]  ;;  %v5594_v49 = vld [vmem:[%s10193_s4 + $0xb0] sm:$0xff] }
 0x558   : > { %6509 = vmatprep.mubr.msk.f32.mxu1 %vm8029_vm0, %v8028_v1  ;;  %6544 = vmatprep.mubr.msk.f32.mxu0 %vm8029_vm0, %v8028_v1  ;;  %v7231_v45 = vpack.c.bf16 %v5593_v44, %v5592_v43  ;;  %v2922_v46 = vld [vmem:[%s10193_s4 + $0x40] sm:$0xff]  ;;  %v5595_v50 = vld [vmem:[%s10193_s4 + $0xb8] sm:$0xff] }
 0x559   : > { %7206 = vmatprep.subr.bf16.mxu1 %v8027_v0  ;;  %v2494_v57 = vsel %vm2484_vm10, %v2479_v47, %v2489_v51  ;;  %v2480_v58 = vadd.f32 %v5567_v21, %v2468_v52  ;;  %v2519_v59 = vld [vmem:[#allocation3 + $0x9] sm:$0xff]  ;;  %v7219_v21 = vpack.c.bf16 %v5585_v20, %v5584_v19  ;;  %v2923_v47 = vld [vmem:[%s10193_s4 + $0x48] sm:$0xff]  ;;  %v7234_v51 = vpack.c.bf16 %v5595_v50, %v5594_v49 }
 0x55a   : > { %v2504_v60 = vld [vmem:[#allocation3 + $0x8] sm:$0xff]  ;;  %2500 = vst.msk [vmem:[#allocation3 + $0x19] sm:$0xff] %vm2496_vm7, %v2494_v57  ;;  %6510 = vmatmul.mubr.msk.f32.gmra.mrb[56].mxu1 %vm2496_vm7, %v2519_v59  ;;  %v7249_v48 = vpack.c.bf16 %v2923_v47, %v2922_v46  ;;  %v2925_v53 = vld [vmem:[%s10193_s4 + $0x58] sm:$0xff]  ;;  %v5583_v19 = vld [vmem:[#allocation11] ss:$0 sm:$0xff] }
 0x55b   : > { %6545 = vmatmul.mubr.msk.f32.gmra.mrb[58].mxu0 %vm2496_vm7, %v2504_v60  ;;  %vm2485_vm11 = vcmp.ge.f32.partialorder %v2480_v58, 0.0  ;;  %v2490_v61 = vmul.f32 0.2, %v2480_v58  ;;  %7208 = vmatpush3.bf16.msra.mxu1 %v7207_v54  ;;  %v2744_v14 = vld [vmem:[#allocation3 + $0x2] sm:$0xff]  ;;  %v5609_v43 = vld [vmem:[%s10193_s4 + $0xd8] sm:$0xff] }
 0x55c   : > { %6512 = vmatprep.mubr.msk.f32.mxu1 %vm8029_vm0, %v8028_v1  ;;  %6547 = vmatprep.mubr.msk.f32.mxu0 %vm8029_vm0, %v8028_v1  ;;  %v2924_v52 = vld [vmem:[%s10193_s4 + $0x50] sm:$0xff] }
 0x55d   : > { %7209 = vmatprep.subr.bf16.mxu1 %v8027_v0  ;;  %v2495_v3 = vsel %vm2485_vm11, %v2480_v58, %v2490_v61  ;;  %v2520_v4 = vld [vmem:[#allocation3 + $0x11] sm:$0xff]  ;;  %7220 = vmatpush3.bf16.msra.mxu0 %v7219_v21  ;;  %v7252_v54 = vpack.c.bf16 %v2925_v53, %v2924_v52 }
 0x55e   : > { %v2505_v5 = vld [vmem:[#allocation3 + $0x10] sm:$0xff]  ;;  %2502 = vst.msk [vmem:[#allocation3 + $0x21] sm:$0x1] %vm2501_vm12, %v2495_v3  ;;  %6513 = vmatmul.mubr.msk.f32.gmra.mrb[58].mxu1 %vm2496_vm7, %v2520_v4  ;;  %7221 = vmatprep.subr.bf16.mxu0 %v8027_v0  ;;  %v5610_v53 = vld [vmem:[%s10193_s4 + $0xe0] sm:$0xff] }
 0x55f   : > { %6548 = vmatmul.mubr.msk.f32.gmra.mrb[60].mxu0 %vm2496_vm7, %v2505_v5  ;;  %7211 = vmatpush3.bf16.msra.mxu1 %v7210_v62  ;;  %v2745_v15 = vld [vmem:[#allocation3 + $0xa] sm:$0xff] }
 0x560   : > { %6515 = vmatprep.mubr.msk.f32.mxu1 %vm8029_vm0, %v8028_v1  ;;  %6550 = vmatprep.mubr.msk.f32.mxu0 %vm8029_vm0, %v8028_v1 }
 0x561   : > { %7212 = vmatprep.subr.bf16.mxu1 %v8027_v0  ;;  %v2521_v9 = vld [vmem:[#allocation3 + $0x19] sm:$0xff]  ;;  %7223 = vmatpush3.bf16.msra.mxu0 %v7222_v27 }
 0x562   : > { %v2506_v10 = vld [vmem:[#allocation3 + $0x18] sm:$0xff]  ;;  %6516 = vmatmul.mubr.msk.f32.gmra.mrb[60].mxu1 %vm2496_vm7, %v2521_v9  ;;  %v2507_v13 = vld [vmem:[#allocation3 + $0x20] sm:$0x1]  ;;  %7224 = vmatprep.subr.bf16.mxu0 %v8027_v0 }
 0x563   : > { %6551 = vmatmul.mubr.msk.f32.gmra.mrb[62].mxu0 %vm2496_vm7, %v2506_v10  ;;  %7214 = vmatpush3.bf16.msra.mxu1 %v7213_v6  ;;  %v2746_v16 = vld [vmem:[#allocation3 + $0x12] sm:$0xff] }
 0x564   : > { %6518 = vmatprep.mubr.msk.f32.mxu1 %vm8029_vm0, %v8028_v1  ;;  %6553 = vmatprep.mubr.msk.f32.mxu0 %vm8029_vm0, %v8028_v1 }
 0x565   : > { %7215 = vmatprep.subr.bf16.mxu1 %v8027_v0  ;;  %v2522_v12 = vld [vmem:[#allocation3 + $0x21] sm:$0x1]  ;;  %7226 = vmatpush3.bf16.msra.mxu0 %v7225_v33  ;;  %v5606_v33 = vld [vmem:[%s10193_s4 + $0xc0] sm:$0xff] }
 0x566   : > { %6519 = vmatmul.mubr.msk.f32.gmra.mrb[62].mxu1 %vm2496_vm7, %v2522_v12  ;;  %v2747_v17 = vld [vmem:[#allocation3 + $0x1a] sm:$0xff]  ;;  %7227 = vmatprep.subr.bf16.mxu0 %v8027_v0  ;;  %v7255_v41 = vpack.c.bf16 %v5607_v34, %v5606_v33 }
 0x567   : > { %6554 = vmatmul.mubr.msk.f32.gmra.mrb[64].mxu0 %vm2496_vm7, %v2507_v13  ;;  %7217 = vmatpush3.bf16.msra.mxu1 %v7216_v11  ;;  %v5628_v33 = vld [vmem:[%s10108_s13 + $0x80] sm:$0xff]  ;;  %v5629_v34 = vld [vmem:[%s10108_s13 + $0x88] sm:$0xff] }
 0x568   : > { %6576 = vmatprep.mubr.msk.f32.mxu1 %vm8029_vm0, %v8028_v1  ;;  %7236 = vmatprep.subr.bf16.mxu1 %v8027_v0 }
 0x569   : > { %6615 = vmatprep.mubr.msk.f32.mxu0 %vm8029_vm0, %v8028_v1  ;;  %7229 = vmatpush3.bf16.msra.mxu0 %v7228_v39 }
 0x56a   : > { %6577 = vmatmul.mubr.msk.f32.vlgmr.msra.gmra.mrb[64].mxu1 %vm2496_vm7, %v2744_v14  ;;  %7230 = vmatprep.subr.bf16.mxu0 %v8027_v0 }
 0x56b   : > { %6579 = vmatprep.mubr.msk.f32.mxu1 %vm8029_vm0, %v8028_v1  ;;  %7238 = vmatpush3.bf16.msra.mxu1 %v7237_v24 }
 0x56c   : > { %7239 = vmatprep.subr.bf16.mxu1 %v8027_v0 }
 0x56d   : > { %7232 = vmatpush3.bf16.msra.mxu0 %v7231_v45 }
 0x56e   : > { %6580 = vmatmul.mubr.msk.f32.gmra.mrb[66].mxu1 %vm2496_vm7, %v2745_v15  ;;  %7233 = vmatprep.subr.bf16.mxu0 %v8027_v0 }
 0x56f   : > { %6582 = vmatprep.mubr.msk.f32.mxu1 %vm8029_vm0, %v8028_v1  ;;  %7241 = vmatpush3.bf16.msra.mxu1 %v7240_v30 }
 0x570   : > { %7242 = vmatprep.subr.bf16.mxu1 %v8027_v0 }
 0x571   : > { %7235 = vmatpush3.bf16.msra.mxu0 %v7234_v51 }
 0x572   : > { %6583 = vmatmul.mubr.msk.f32.gmra.mrb[68].mxu1 %vm2496_vm7, %v2746_v16  ;;  %7254 = vmatprep.subr.bf16.mxu0 %v8027_v0 }
 0x573   : > { %6585 = vmatprep.mubr.msk.f32.mxu1 %vm8029_vm0, %v8028_v1  ;;  %7244 = vmatpush3.bf16.msra.mxu1 %v7243_v36 }
 0x574   : > { %7245 = vmatprep.subr.bf16.mxu1 %v8027_v0 }
 0x576   : > { %6586 = vmatmul.mubr.msk.f32.gmra.mrb[70].mxu1 %vm2496_vm7, %v2747_v17 }
 0x577   : > { %6588 = vmatprep.mubr.msk.f32.mxu1 %vm8029_vm0, %v8028_v1  ;;  %7247 = vmatpush3.bf16.msra.mxu1 %v7246_v42  ;;  %v5608_v42 = vld [vmem:[%s10193_s4 + $0xd0] sm:$0xff] }
 0x578   : > { %7248 = vmatprep.subr.bf16.mxu1 %v8027_v0  ;;  %v7258_v52 = vpack.c.bf16 %v5609_v43, %v5608_v42  ;;  %v3325_v43 = vld [vmem:[%s10108_s13 + $0x30] sm:$0xff] }
 0x57a   : > { %6589 = vmatmul.mubr.msk.f32.gmra.mrb[72].mxu1 %vm2496_vm7, %v2748_v18 }
 0x57b   : > { %6654 = vmatprep.mubr.msk.f32.mxu1 %vm8029_vm0, %v8028_v1  ;;  %7250 = vmatpush3.bf16.msra.mxu1 %v7249_v48 }
 0x57c   : > { %7251 = vmatprep.subr.bf16.mxu1 %v8027_v0 }
 0x57f   : > { %7253 = vmatpush3.bf16.msra.mxu1 %v7252_v54  ;;  %v5611_v54 = vld [vmem:[%s10193_s4 + $0xe8] sm:$0xff] }
 0x580   : > { %7272 = vmatprep.subr.bf16.mxu1 %v8027_v0 }
 0x629   : > { %v2615_v55 = vpop.f32.mrb[54].mxu1 }
 0x62a   : > { %v2720_v56 = vpop.f32.mrb[56].mxu0  ;;  %v6508_v58 = vpop.f32.mrb[55].mxu1 }
 0x62b   : > { %v2721_v57 = vadd.f32 %v2720_v56, %v2615_v55  ;;  %v6543_v59 = vpop.f32.mrb[57].mxu0 }
 0x62d   : > { %v2620_v60 = vpop.f32.mrb[56].mxu1 }
 0x62e   : > { %v2725_v61 = vpop.f32.mrb[58].mxu0  ;;  %v6511_v63 = vpop.f32.mrb[57].mxu1 }
 0x62f   : > { %v2726_v62 = vadd.f32 %v2725_v61, %v2620_v60  ;;  %v6546_v2 = vpop.f32.mrb[59].mxu0  ;;  %v7261_v60 = vpack.c.bf16 %v5611_v54, %v5610_v53  ;;  %v5612_v61 = vld [vmem:[%s10193_s4 + $0xf0] sm:$0xff]  ;;  %v5635_v54 = vld [vmem:[%s10108_s13 + $0xb8] sm:$0xff] }
 0x630   : > { %v5634_v53 = vld [vmem:[%s10108_s13 + $0xb0] sm:$0xff] }
 0x631   : > { %v2625_v3 = vpop.f32.mrb[58].mxu1 }
 0x632   : > { %v2730_v4 = vpop.f32.mrb[60].mxu0  ;;  %v6514_v6 = vpop.f32.mrb[59].mxu1 }
 0x633   : > { %v2731_v5 = vadd.f32 %v2730_v4, %v2625_v3  ;;  %v6549_v7 = vpop.f32.mrb[61].mxu0  ;;  %v5615_v6 = vld [vmem:[%s10193_s4 + $0x108] sm:$0xff] }
 0x635   : > { %v2630_v8 = vpop.f32.mrb[60].mxu1 }
 0x636   : > { %v2735_v9 = vpop.f32.mrb[62].mxu0  ;;  %v6517_v11 = vpop.f32.mrb[61].mxu1 }
 0x637   : > { %v2736_v10 = vadd.f32 %v2735_v9, %v2630_v8  ;;  %v6552_v12 = vpop.f32.mrb[63].mxu0  ;;  %v5617_v11 = vld [vmem:[%s10193_s4 + $0x118] sm:$0xff] }
 0x639   : > { %v2635_v13 = vpop.f32.mrb[62].mxu1 }
 0x63a   : > { %v2740_v14 = vpop.f32.mrb[64].mxu0  ;;  %v6520_v16 = vpop.f32.mrb[63].mxu1 }
 0x63b   : > { %v2741_v15 = vadd.f32 %v2740_v14, %v2635_v13  ;;  %v6555_v17 = vpop.f32.mrb[65].mxu0 }
 0x63d   : > { %v2841_v18 = vpop.f32.mrb[64].mxu1 }
 0x63e   : > { %v2865_v20 = vadd.f32 %v2841_v18, %v2721_v57  ;;  %v6578_v21 = vpop.f32.mrb[65].mxu1 }
 0x63f   : > { %v5625_v21 = vld [vmem:[%s10108_s13 + $0x68] sm:$0xff] }
 0x640   : > { %v2877_v22 = vadd.f32 %v5583_v19, %v2865_v20  ;;  %v5624_v20 = vld [vmem:[%s10108_s13 + $0x60] sm:$0xff] }
 0x641   : > { %v2846_v23 = vpop.f32.mrb[66].mxu1 }
 0x642   : > { %vm2882_vm13 = vcmp.ge.f32.partialorder %v2877_v22, 0.0  ;;  %v2887_v24 = vmul.f32 0.2, %v2877_v22  ;;  %v2866_v25 = vadd.f32 %v2846_v23, %v2726_v62  ;;  %v6581_v26 = vpop.f32.mrb[67].mxu1  ;;  %v5613_v62 = vld [vmem:[%s10193_s4 + $0xf8] sm:$0xff]  ;;  %v3319_v23 = vld [vmem:[%s10108_s13] sm:$0xff] }
 0x643   : > { %v7264_v4 = vpack.c.bf16 %v5613_v62, %v5612_v61  ;;  %v5626_v26 = vld [vmem:[%s10108_s13 + $0x70] sm:$0xff] }
 0x644   : > { %v8934_v27 = vsel %vm2882_vm13, %v2877_v22, %v2887_v24  ;;  %v2878_v28 = vadd.f32 %v5583_v19, %v2866_v25  ;;  %v7273_v22 = vpack.c.bf16 %v5625_v21, %v5624_v20  ;;  %v3320_v24 = vld [vmem:[%s10108_s13 + $0x8] sm:$0xff] }
 0x645   : > { %2898 = vst.msk [vmem:[%s8932_s20] sm:$0xff] %vm2897_vm14, %v8934_v27  ;;  %2904 = vst.msk [vmem:[#allocation2 + $0x1] sm:$0xff] %vm2897_vm14, %v8934_v27  ;;  %v2851_v29 = vpop.f32.mrb[68].mxu1  ;;  %v7291_v25 = vpack.c.bf16 %v3320_v24, %v3319_v23 }
 0x646   : > { %vm2883_vm15 = vcmp.ge.f32.partialorder %v2878_v28, 0.0  ;;  %v2888_v30 = vmul.f32 0.2, %v2878_v28  ;;  %v2867_v31 = vadd.f32 %v2851_v29, %v2731_v5  ;;  %v6584_v32 = vpop.f32.mrb[69].mxu1  ;;  %v5614_v5 = vld [vmem:[%s10193_s4 + $0x100] sm:$0xff]  ;;  %v3321_v29 = vld [vmem:[%s10108_s13 + $0x10] sm:$0xff] }
 0x647   : > { %v7267_v9 = vpack.c.bf16 %v5615_v6, %v5614_v5 }
 0x648   : > { %v8947_v35 = vsel %vm2883_vm15, %v2878_v28, %v2888_v30  ;;  %v2879_v36 = vadd.f32 %v5583_v19, %v2867_v31  ;;  %v5627_v28 = vld [vmem:[%s10108_s13 + $0x78] sm:$0xff] }
 0x649   : > { %2899 = vst.msk [vmem:[%s8932_s20 + $0x8] sm:$0xff] %vm2897_vm14, %v8947_v35  ;;  %2905 = vst.msk [vmem:[#allocation2 + $0x9] sm:$0xff] %vm2897_vm14, %v8947_v35  ;;  %v2856_v37 = vpop.f32.mrb[70].mxu1  ;;  %v7276_v30 = vpack.c.bf16 %v5627_v28, %v5626_v26  ;;  %v3322_v31 = vld [vmem:[%s10108_s13 + $0x18] sm:$0xff] }
 0x64a   : > { %vm2884_vm2 = vcmp.ge.f32.partialorder %v2879_v36, 0.0  ;;  %v2889_v38 = vmul.f32 0.2, %v2879_v36  ;;  %v2868_v39 = vadd.f32 %v2856_v37, %v2736_v10  ;;  %v6587_v40 = vpop.f32.mrb[71].mxu1  ;;  %v5616_v10 = vld [vmem:[%s10193_s4 + $0x110] sm:$0xff]  ;;  %v7294_v32 = vpack.c.bf16 %v3322_v31, %v3321_v29  ;;  %v3323_v37 = vld [vmem:[%s10108_s13 + $0x20] sm:$0xff] }
 0x64b   : > { %v7270_v14 = vpack.c.bf16 %v5617_v11, %v5616_v10  ;;  %v5630_v40 = vld [vmem:[%s10108_s13 + $0x90] sm:$0xff] }
 0x64c   : > { %v8960_v44 = vsel %vm2884_vm2, %v2879_v36, %v2889_v38  ;;  %v2880_v45 = vadd.f32 %v5583_v19, %v2868_v39  ;;  %v2926_v46 = vld [vmem:[#allocation2 + $0x1] sm:$0xff]  ;;  %v7279_v36 = vpack.c.bf16 %v5629_v34, %v5628_v33 }
 0x64d   : > { %v2909_v47 = vld [vmem:[#allocation2] sm:$0xff]  ;;  %2900 = vst.msk [vmem:[%s8932_s20 + $0x10] sm:$0xff] %vm2897_vm14, %v8960_v44  ;;  %2906 = vst.msk [vmem:[#allocation2 + $0x11] sm:$0xff] %vm2897_vm14, %v8960_v44  ;;  %v2861_v48 = vpop.f32.mrb[72].mxu1  ;;  %6616 = vmatmul.mubr.msk.f32.vlgmr.msra.gmra.mrb[66].mxu0 %vm2897_vm14, %v2926_v46  ;;  %v3324_v38 = vld [vmem:[%s10108_s13 + $0x28] sm:$0xff] }
 0x64e   : > { %6655 = vmatmul.mubr.msk.f32.vlgmr.msra.gmra.mrb[74].mxu1 %vm2897_vm14, %v2909_v47  ;;  %vm2885_vm3 = vcmp.ge.f32.partialorder %v2880_v45, 0.0  ;;  %v2890_v49 = vmul.f32 0.2, %v2880_v45  ;;  %v2869_v50 = vadd.f32 %v2861_v48, %v2741_v15  ;;  %7256 = vmatpush3.bf16.msra.mxu0 %v7255_v41  ;;  %v6590_v51 = vpop.f32.mrb[73].mxu1  ;;  %v7297_v39 = vpack.c.bf16 %v3324_v38, %v3323_v37  ;;  %v5631_v41 = vld [vmem:[%s10108_s13 + $0x98] sm:$0xff]  ;;  %v5632_v47 = vld [vmem:[%s10108_s13 + $0xa0] sm:$0xff] }
 0x64f   : > { %6618 = vmatprep.mubr.msk.f32.mxu0 %vm8029_vm0, %v8028_v1  ;;  %6657 = vmatprep.mubr.msk.f32.mxu1 %vm8029_vm0, %v8028_v1  ;;  %v7282_v42 = vpack.c.bf16 %v5631_v41, %v5630_v40  ;;  %v5633_v48 = vld [vmem:[%s10108_s13 + $0xa8] sm:$0xff]  ;;  %v5646_v41 = vld [vmem:[%s10108_s13 + $0xc0] sm:$0xff] }
 0x650   : > { %7257 = vmatprep.subr.bf16.mxu0 %v8027_v0  ;;  %v8980_v55 = vsel %vm2885_vm3, %v2880_v45, %v2890_v49  ;;  %v2881_v56 = vadd.f32 %v5583_v19, %v2869_v50  ;;  %v2927_v57 = vld [vmem:[#allocation2 + $0x9] sm:$0xff]  ;;  %v3158_v19 = vld [vmem:[#allocation2 + $0x22] sm:$0x1]  ;;  %7274 = vmatpush3.bf16.msra.mxu1 %v7273_v22  ;;  %v3326_v45 = vld [vmem:[%s10108_s13 + $0x38] sm:$0xff]  ;;  %v7285_v49 = vpack.c.bf16 %v5633_v48, %v5632_v47 }
 0x651   : > { %v2910_v58 = vld [vmem:[#allocation2 + $0x8] sm:$0xff]  ;;  %2901 = vst.msk [vmem:[%s8932_s20 + $0x18] sm:$0xff] %vm2897_vm14, %v8980_v55  ;;  %2907 = vst.msk [vmem:[#allocation2 + $0x19] sm:$0xff] %vm2897_vm14, %v8980_v55  ;;  %6619 = vmatmul.mubr.msk.f32.gmra.mrb[68].mxu0 %vm2897_vm14, %v2927_v57  ;;  %7275 = vmatprep.subr.bf16.mxu1 %v8027_v0  ;;  %v7300_v46 = vpack.c.bf16 %v3326_v45, %v3325_v43  ;;  %v3327_v50 = vld [vmem:[%s10108_s13 + $0x40] sm:$0xff] }
 0x652   : > { %6658 = vmatmul.mubr.msk.f32.gmra.mrb[76].mxu1 %vm2897_vm14, %v2910_v58  ;;  %vm2886_vm4 = vcmp.ge.f32.partialorder %v2881_v56, 0.0  ;;  %v2891_v59 = vmul.f32 0.2, %v2881_v56  ;;  %7259 = vmatpush3.bf16.msra.mxu0 %v7258_v52  ;;  %v3154_v15 = vld [vmem:[#allocation2 + $0x2] sm:$0xff]  ;;  %v3329_v57 = vld [vmem:[%s10108_s13 + $0x50] sm:$0xff]  ;;  %v3330_v58 = vld [vmem:[%s10108_s13 + $0x58] sm:$0xff] }
 0x653   : > { %6621 = vmatprep.mubr.msk.f32.mxu0 %vm8029_vm0, %v8028_v1  ;;  %6660 = vmatprep.mubr.msk.f32.mxu1 %vm8029_vm0, %v8028_v1  ;;  %v3328_v51 = vld [vmem:[%s10108_s13 + $0x48] sm:$0xff] }
 0x654   : > { %7260 = vmatprep.subr.bf16.mxu0 %v8027_v0  ;;  %v9000_v63 = vsel %vm2886_vm4, %v2881_v56, %v2891_v59  ;;  %v2928_v2 = vld [vmem:[#allocation2 + $0x11] sm:$0xff]  ;;  %7277 = vmatpush3.bf16.msra.mxu1 %v7276_v30  ;;  %v7303_v52 = vpack.c.bf16 %v3328_v51, %v3327_v50  ;;  %v7288_v56 = vpack.c.bf16 %v5635_v54, %v5634_v53 }
 0x655   : > { %v2911_v3 = vld [vmem:[#allocation2 + $0x10] sm:$0xff]  ;;  %2903 = vst.msk [vmem:[%s8932_s20 + $0x20] sm:$0x1] %vm2902_vm5, %v9000_v63  ;;  %2908 = vst.msk [vmem:[#allocation2 + $0x21] sm:$0x1] %vm2902_vm5, %v9000_v63  ;;  %6622 = vmatmul.mubr.msk.f32.gmra.mrb[70].mxu0 %vm2897_vm14, %v2928_v2  ;;  %7278 = vmatprep.subr.bf16.mxu1 %v8027_v0  ;;  %v7306_v59 = vpack.c.bf16 %v3330_v58, %v3329_v57 }
 0x656   : > { %6661 = vmatmul.mubr.msk.f32.gmra.mrb[78].mxu1 %vm2897_vm14, %v2911_v3  ;;  %7262 = vmatpush3.bf16.msra.mxu0 %v7261_v60  ;;  %v3155_v16 = vld [vmem:[#allocation2 + $0xa] sm:$0xff] }
 0x657   : > { %6624 = vmatprep.mubr.msk.f32.mxu0 %vm8029_vm0, %v8028_v1  ;;  %6663 = vmatprep.mubr.msk.f32.mxu1 %vm8029_vm0, %v8028_v1  ;;  %v5648_v51 = vld [vmem:[%s10108_s13 + $0xd0] sm:$0xff] }
 0x658   : > { %7263 = vmatprep.subr.bf16.mxu0 %v8027_v0  ;;  %v2929_v7 = vld [vmem:[#allocation2 + $0x19] sm:$0xff]  ;;  %7280 = vmatpush3.bf16.msra.mxu1 %v7279_v36 }
 0x659   : > { %v2912_v8 = vld [vmem:[#allocation2 + $0x18] sm:$0xff]  ;;  %6625 = vmatmul.mubr.msk.f32.gmra.mrb[72].mxu0 %vm2897_vm14, %v2929_v7  ;;  %v2913_v13 = vld [vmem:[#allocation2 + $0x20] sm:$0x1]  ;;  %7281 = vmatprep.subr.bf16.mxu1 %v8027_v0 }
 0x65a   : > { %6664 = vmatmul.mubr.msk.f32.gmra.mrb[80].mxu1 %vm2897_vm14, %v2912_v8  ;;  %7265 = vmatpush3.bf16.msra.mxu0 %v7264_v4  ;;  %v3156_v17 = vld [vmem:[#allocation2 + $0x12] sm:$0xff] }
 0x65b   : > { %6627 = vmatprep.mubr.msk.f32.mxu0 %vm8029_vm0, %v8028_v1  ;;  %6666 = vmatprep.mubr.msk.f32.mxu1 %vm8029_vm0, %v8028_v1 }
 0x65c   : > { %7266 = vmatprep.subr.bf16.mxu0 %v8027_v0  ;;  %v2930_v12 = vld [vmem:[#allocation2 + $0x21] sm:$0x1]  ;;  %7283 = vmatpush3.bf16.msra.mxu1 %v7282_v42  ;;  %v5647_v42 = vld [vmem:[%s10108_s13 + $0xc8] sm:$0xff] }
 0x65d   : > { %6628 = vmatmul.mubr.msk.f32.gmra.mrb[74].mxu0 %vm2897_vm14, %v2930_v12  ;;  %v3157_v18 = vld [vmem:[#allocation2 + $0x1a] sm:$0xff]  ;;  %7284 = vmatprep.subr.bf16.mxu1 %v8027_v0  ;;  %v7309_v50 = vpack.c.bf16 %v5647_v42, %v5646_v41  ;;  %v3726_v41 = vld [vmem:[%s10110_s15 + $0x10] sm:$0xff] }
 0x65e   : > { %6667 = vmatmul.mubr.msk.f32.gmra.mrb[82].mxu1 %vm2897_vm14, %v2913_v13  ;;  %7268 = vmatpush3.bf16.msra.mxu0 %v7267_v9 }
 0x65f   : > { %6693 = vmatprep.mubr.msk.f32.mxu0 %vm8029_vm0, %v8028_v1  ;;  %7269 = vmatprep.subr.bf16.mxu0 %v8027_v0 }
 0x660   : > { %6732 = vmatprep.mubr.msk.f32.mxu1 %vm8029_vm0, %v8028_v1  ;;  %7286 = vmatpush3.bf16.msra.mxu1 %v7285_v49 }
 0x661   : > { %7287 = vmatprep.subr.bf16.mxu1 %v8027_v0 }
 0x662   : > { %7271 = vmatpush3.bf16.msra.mxu0 %v7270_v14 }
 0x663   : > { %7290 = vmatprep.subr.bf16.mxu0 %v8027_v0 }
 0x664   : > { %7289 = vmatpush3.bf16.msra.mxu1 %v7288_v56 }
 0x665   : > { %6694 = vmatmul.mubr.msk.f32.vlgmr.msra.gmra.mrb[76].mxu0 %vm2897_vm14, %v3154_v15  ;;  %7308 = vmatprep.subr.bf16.mxu1 %v8027_v0 }
 0x666   : > { %6696 = vmatprep.mubr.msk.f32.mxu0 %vm8029_vm0, %v8028_v1  ;;  %7292 = vmatpush3.bf16.msra.mxu0 %v7291_v25  ;;  %v5623_v25 = vld [vmem:[#allocation12] ss:$0 sm:$0xff] }
 0x667   : > { %7293 = vmatprep.subr.bf16.mxu0 %v8027_v0 }
 0x669   : > { %6697 = vmatmul.mubr.msk.f32.gmra.mrb[78].mxu0 %vm2897_vm14, %v3155_v16 }
 0x66a   : > { %6699 = vmatprep.mubr.msk.f32.mxu0 %vm8029_vm0, %v8028_v1  ;;  %7295 = vmatpush3.bf16.msra.mxu0 %v7294_v32 }
 0x66b   : > { %7296 = vmatprep.subr.bf16.mxu0 %v8027_v0 }
 0x66d   : > { %6700 = vmatmul.mubr.msk.f32.gmra.mrb[80].mxu0 %vm2897_vm14, %v3156_v17 }
 0x66e   : > { %6702 = vmatprep.mubr.msk.f32.mxu0 %vm8029_vm0, %v8028_v1  ;;  %7298 = vmatpush3.bf16.msra.mxu0 %v7297_v39 }
 0x66f   : > { %7299 = vmatprep.subr.bf16.mxu0 %v8027_v0 }
 0x671   : > { %6703 = vmatmul.mubr.msk.f32.gmra.mrb[82].mxu0 %vm2897_vm14, %v3157_v18 }
 0x672   : > { %6705 = vmatprep.mubr.msk.f32.mxu0 %vm8029_vm0, %v8028_v1  ;;  %7301 = vmatpush3.bf16.msra.mxu0 %v7300_v46 }
 0x673   : > { %7302 = vmatprep.subr.bf16.mxu0 %v8027_v0 }
 0x675   : > { %6706 = vmatmul.mubr.msk.f32.gmra.mrb[84].mxu0 %vm2897_vm14, %v3158_v19 }
 0x676   : > { %6771 = vmatprep.mubr.msk.f32.mxu0 %vm8029_vm0, %v8028_v1  ;;  %7304 = vmatpush3.bf16.msra.mxu0 %v7303_v52  ;;  %v5649_v52 = vld [vmem:[%s10108_s13 + $0xd8] sm:$0xff] }
 0x677   : > { %7305 = vmatprep.subr.bf16.mxu0 %v8027_v0 }
 0x67a   : > { %7307 = vmatpush3.bf16.msra.mxu0 %v7306_v59 }
 0x67b   : > { %7326 = vmatprep.subr.bf16.mxu0 %v8027_v0 }
 0x720   : > { %v3025_v60 = vpop.f32.mrb[66].mxu0 }
 0x721   : > { %v3130_v61 = vpop.f32.mrb[74].mxu1  ;;  %v6617_v2 = vpop.f32.mrb[67].mxu0 }
 0x722   : > { %v3131_v62 = vadd.f32 %v3130_v61, %v3025_v60  ;;  %v6656_v3 = vpop.f32.mrb[75].mxu1  ;;  %v5650_v2 = vld [vmem:[%s10108_s13 + $0xe0] sm:$0xff] }
 0x723   : > { %v5651_v3 = vld [vmem:[%s10108_s13 + $0xe8] sm:$0xff] }
 0x724   : > { %v3030_v4 = vpop.f32.mrb[68].mxu0 }
 0x725   : > { %v3135_v5 = vpop.f32.mrb[76].mxu1  ;;  %v6620_v7 = vpop.f32.mrb[69].mxu0 }
 0x726   : > { %v3136_v6 = vadd.f32 %v3135_v5, %v3030_v4  ;;  %v6659_v8 = vpop.f32.mrb[77].mxu1 }
 0x728   : > { %v3035_v9 = vpop.f32.mrb[70].mxu0 }
 0x729   : > { %v3140_v10 = vpop.f32.mrb[78].mxu1  ;;  %v6623_v12 = vpop.f32.mrb[71].mxu0 }
 0x72a   : > { %v3141_v11 = vadd.f32 %v3140_v10, %v3035_v9  ;;  %v6662_v13 = vpop.f32.mrb[79].mxu1  ;;  %v7315_v9 = vpack.c.bf16 %v5651_v3, %v5650_v2  ;;  %v5652_v10 = vld [vmem:[%s10108_s13 + $0xf0] sm:$0xff]  ;;  %v3733_v2 = vld [vmem:[%s10110_s15 + $0x48] sm:$0xff] }
 0x72c   : > { %v3040_v14 = vpop.f32.mrb[72].mxu0 }
 0x72d   : > { %v3145_v15 = vpop.f32.mrb[80].mxu1  ;;  %v6626_v17 = vpop.f32.mrb[73].mxu0 }
 0x72e   : > { %v3146_v16 = vadd.f32 %v3145_v15, %v3040_v14  ;;  %v6665_v18 = vpop.f32.mrb[81].mxu1  ;;  %v5655_v17 = vld [vmem:[%s10108_s13 + $0x108] sm:$0xff] }
 0x730   : > { %v3045_v19 = vpop.f32.mrb[74].mxu0 }
 0x731   : > { %v3150_v20 = vpop.f32.mrb[82].mxu1  ;;  %v6629_v22 = vpop.f32.mrb[75].mxu0 }
 0x732   : > { %v3151_v21 = vadd.f32 %v3150_v20, %v3045_v19  ;;  %v6668_v23 = vpop.f32.mrb[83].mxu1  ;;  %v5657_v22 = vld [vmem:[%s10108_s13 + $0x118] sm:$0xff] }
 0x738   : > { %v3253_v24 = vpop.f32.mrb[76].mxu0 }
 0x739   : > { %v3277_v26 = vadd.f32 %v3253_v24, %v3131_v62  ;;  %v6695_v28 = vpop.f32.mrb[77].mxu0  ;;  %v7312_v62 = vpack.c.bf16 %v5649_v52, %v5648_v51  ;;  %v5670_v52 = vld [vmem:[%s10110_s15 + $0x90] sm:$0xff] }
 0x73b   : > { %v3289_v29 = vadd.f32 %v5623_v25, %v3277_v26 }
 0x73c   : > { %v3258_v30 = vpop.f32.mrb[78].mxu0 }
 0x73d   : > { %vm3294_vm6 = vcmp.ge.f32.partialorder %v3289_v29, 0.0  ;;  %v3299_v31 = vmul.f32 0.2, %v3289_v29  ;;  %v3278_v32 = vadd.f32 %v3258_v30, %v3136_v6  ;;  %v6698_v33 = vpop.f32.mrb[79].mxu0 }
 0x73e   : > { %v5665_v33 = vld [vmem:[%s10110_s15 + $0x68] sm:$0xff] }
 0x73f   : > { %v3304_v34 = vsel %vm3294_vm6, %v3289_v29, %v3299_v31  ;;  %v3290_v36 = vadd.f32 %v5623_v25, %v3278_v32  ;;  %v3563_v31 = vld [vmem:[#allocation3 + $0x22] sm:$0x1]  ;;  %v5664_v32 = vld [vmem:[%s10110_s15 + $0x60] sm:$0xff] }
 0x740   : > { %3309 = vst.msk [vmem:[#allocation3 + $0x1] sm:$0xff] %vm2897_vm14, %v3304_v34  ;;  %v3263_v37 = vpop.f32.mrb[80].mxu0  ;;  %v7327_v34 = vpack.c.bf16 %v5665_v33, %v5664_v32 }
 0x741   : > { %vm3295_vm7 = vcmp.ge.f32.partialorder %v3290_v36, 0.0  ;;  %v3300_v38 = vmul.f32 0.2, %v3290_v36  ;;  %v3279_v39 = vadd.f32 %v3263_v37, %v3141_v11  ;;  %v6701_v40 = vpop.f32.mrb[81].mxu0  ;;  %v5653_v11 = vld [vmem:[%s10108_s13 + $0xf8] sm:$0xff]  ;;  %v3725_v37 = vld [vmem:[%s10110_s15 + $0x8] sm:$0xff] }
 0x742   : > { %v7318_v15 = vpack.c.bf16 %v5653_v11, %v5652_v10  ;;  %v5667_v40 = vld [vmem:[%s10110_s15 + $0x78] sm:$0xff] }
 0x743   : > { %v3305_v43 = vsel %vm3295_vm7, %v3290_v36, %v3300_v38  ;;  %v3291_v45 = vadd.f32 %v5623_v25, %v3279_v39  ;;  %v3724_v36 = vld [vmem:[%s10110_s15] sm:$0xff]  ;;  %v5666_v39 = vld [vmem:[%s10110_s15 + $0x70] sm:$0xff] }
 0x744   : > { %3310 = vst.msk [vmem:[#allocation3 + $0x9] sm:$0xff] %vm2897_vm14, %v3305_v43  ;;  %v3268_v46 = vpop.f32.mrb[82].mxu0  ;;  %v7345_v38 = vpack.c.bf16 %v3725_v37, %v3724_v36  ;;  %v7330_v42 = vpack.c.bf16 %v5667_v40, %v5666_v39  ;;  %v3727_v43 = vld [vmem:[%s10110_s15 + $0x18] sm:$0xff] }
 0x745   : > { %vm3296_vm8 = vcmp.ge.f32.partialorder %v3291_v45, 0.0  ;;  %v3301_v47 = vmul.f32 0.2, %v3291_v45  ;;  %v3280_v48 = vadd.f32 %v3268_v46, %v3146_v16  ;;  %v6704_v49 = vpop.f32.mrb[83].mxu0  ;;  %v5654_v16 = vld [vmem:[%s10108_s13 + $0x100] sm:$0xff] }
 0x746   : > { %v7321_v20 = vpack.c.bf16 %v5655_v17, %v5654_v16  ;;  %v5668_v46 = vld [vmem:[%s10110_s15 + $0x80] sm:$0xff] }
 0x747   : > { %v3306_v53 = vsel %vm3296_vm8, %v3291_v45, %v3301_v47  ;;  %v3292_v54 = vadd.f32 %v5623_v25, %v3280_v48  ;;  %v3331_v56 = vld [vmem:[#allocation3 + $0x1] sm:$0xff]  ;;  %v7348_v45 = vpack.c.bf16 %v3727_v43, %v3726_v41  ;;  %v3728_v49 = vld [vmem:[%s10110_s15 + $0x20] sm:$0xff] }
 0x748   : > { %v3314_v57 = vld [vmem:[#allocation3] sm:$0xff]  ;;  %3311 = vst.msk [vmem:[#allocation3 + $0x11] sm:$0xff] %vm2897_vm14, %v3306_v53  ;;  %v3273_v58 = vpop.f32.mrb[84].mxu0  ;;  %6733 = vmatmul.mubr.msk.f32.vlgmr.msra.gmra.mrb[84].mxu1 %vm2897_vm14, %v3331_v56  ;;  %v5671_v53 = vld [vmem:[%s10110_s15 + $0x98] sm:$0xff]  ;;  %v3730_v56 = vld [vmem:[%s10110_s15 + $0x30] sm:$0xff] }
 0x749   : > { %6772 = vmatmul.mubr.msk.f32.vlgmr.msra.gmra.mrb[86].mxu0 %vm2897_vm14, %v3314_v57  ;;  %vm3297_vm9 = vcmp.ge.f32.partialorder %v3292_v54, 0.0  ;;  %v3302_v59 = vmul.f32 0.2, %v3292_v54  ;;  %v3281_v60 = vadd.f32 %v3273_v58, %v3151_v21  ;;  %7310 = vmatpush3.bf16.msra.mxu1 %v7309_v50  ;;  %v6707_v61 = vpop.f32.mrb[85].mxu0  ;;  %v5656_v21 = vld [vmem:[%s10108_s13 + $0x110] sm:$0xff]  ;;  %v5669_v47 = vld [vmem:[%s10110_s15 + $0x88] sm:$0xff] }
 0x74a   : > { %6735 = vmatprep.mubr.msk.f32.mxu1 %vm8029_vm0, %v8028_v1  ;;  %6774 = vmatprep.mubr.msk.f32.mxu0 %vm8029_vm0, %v8028_v1  ;;  %v7333_v48 = vpack.c.bf16 %v5669_v47, %v5668_v46  ;;  %v3729_v50 = vld [vmem:[%s10110_s15 + $0x28] sm:$0xff]  ;;  %v3731_v57 = vld [vmem:[%s10110_s15 + $0x38] sm:$0xff] }
 0x74b   : > { %7311 = vmatprep.subr.bf16.mxu1 %v8027_v0  ;;  %v3307_v4 = vsel %vm3297_vm9, %v3292_v54, %v3302_v59  ;;  %v3293_v5 = vadd.f32 %v5623_v25, %v3281_v60  ;;  %v3332_v6 = vld [vmem:[#allocation3 + $0x9] sm:$0xff]  ;;  %v7324_v25 = vpack.c.bf16 %v5657_v22, %v5656_v21  ;;  %7328 = vmatpush3.bf16.msra.mxu0 %v7327_v34  ;;  %v5672_v59 = vld [vmem:[%s10110_s15 + $0xa0] sm:$0xff]  ;;  %v5673_v60 = vld [vmem:[%s10110_s15 + $0xa8] sm:$0xff]  ;;  %vm4748_vm9 = vcmask 1048064  }
 0x74c   : > { %v3315_v7 = vld [vmem:[#allocation3 + $0x8] sm:$0xff]  ;;  %3312 = vst.msk [vmem:[#allocation3 + $0x19] sm:$0xff] %vm2897_vm14, %v3307_v4  ;;  %6736 = vmatmul.mubr.msk.f32.gmra.mrb[86].mxu1 %vm2897_vm14, %v3332_v6  ;;  %7329 = vmatprep.subr.bf16.mxu0 %v8027_v0  ;;  %v7351_v51 = vpack.c.bf16 %v3729_v50, %v3728_v49  ;;  %v7336_v54 = vpack.c.bf16 %v5671_v53, %v5670_v52  ;;  %v5686_v53 = vld [vmem:[%s10110_s15 + $0xc0] sm:$0xff] }
 0x74d   : > { %6775 = vmatmul.mubr.msk.f32.gmra.mrb[88].mxu0 %vm2897_vm14, %v3315_v7  ;;  %vm3298_vm10 = vcmp.ge.f32.partialorder %v3293_v5, 0.0  ;;  %v3303_v8 = vmul.f32 0.2, %v3293_v5  ;;  %7313 = vmatpush3.bf16.msra.mxu1 %v7312_v62  ;;  %v3559_v26 = vld [vmem:[#allocation3 + $0x2] sm:$0xff]  ;;  %v7354_v58 = vpack.c.bf16 %v3731_v57, %v3730_v56  ;;  %v7339_v61 = vpack.c.bf16 %v5673_v60, %v5672_v59  ;;  %v3732_v62 = vld [vmem:[%s10110_s15 + $0x40] sm:$0xff] }
 0x74e   : > { %6738 = vmatprep.mubr.msk.f32.mxu1 %vm8029_vm0, %v8028_v1  ;;  %6777 = vmatprep.mubr.msk.f32.mxu0 %vm8029_vm0, %v8028_v1  ;;  %v7357_v3 = vpack.c.bf16 %v3733_v2, %v3732_v62  ;;  %v5674_v4 = vld [vmem:[%s10110_s15 + $0xb0] sm:$0xff] }
 0x74f   : > { %7314 = vmatprep.subr.bf16.mxu1 %v8027_v0  ;;  %v3308_v12 = vsel %vm3298_vm10, %v3293_v5, %v3303_v8  ;;  %v3333_v13 = vld [vmem:[#allocation3 + $0x11] sm:$0xff]  ;;  %7331 = vmatpush3.bf16.msra.mxu0 %v7330_v42  ;;  %v3734_v7 = vld [vmem:[%s10110_s15 + $0x50] sm:$0xff]  ;;  %vm4514_vm10 = vcmask 385024  }
 0x750   : > { %v3316_v14 = vld [vmem:[#allocation3 + $0x10] sm:$0xff]  ;;  %3313 = vst.msk [vmem:[#allocation3 + $0x21] sm:$0x1] %vm2902_vm5, %v3308_v12  ;;  %6739 = vmatmul.mubr.msk.f32.gmra.mrb[88].mxu1 %vm2897_vm14, %v3333_v13  ;;  %7332 = vmatprep.subr.bf16.mxu0 %v8027_v0  ;;  %v5688_v2 = vld [vmem:[%s10110_s15 + $0xd0] sm:$0xff] }
 0x751   : > { %6778 = vmatmul.mubr.msk.f32.gmra.mrb[90].mxu0 %vm2897_vm14, %v3316_v14  ;;  %7316 = vmatpush3.bf16.msra.mxu1 %v7315_v9  ;;  %v3560_v28 = vld [vmem:[#allocation3 + $0xa] sm:$0xff] }
 0x752   : > { %6741 = vmatprep.mubr.msk.f32.mxu1 %vm8029_vm0, %v8028_v1  ;;  %6780 = vmatprep.mubr.msk.f32.mxu0 %vm8029_vm0, %v8028_v1  ;;  %v5675_v5 = vld [vmem:[%s10110_s15 + $0xb8] sm:$0xff] }
 0x753   : > { %7317 = vmatprep.subr.bf16.mxu1 %v8027_v0  ;;  %v3334_v18 = vld [vmem:[#allocation3 + $0x19] sm:$0xff]  ;;  %7334 = vmatpush3.bf16.msra.mxu0 %v7333_v48  ;;  %v7342_v6 = vpack.c.bf16 %v5675_v5, %v5674_v4  ;;  %v3735_v8 = vld [vmem:[%s10110_s15 + $0x58] sm:$0xff] }
 0x754   : > { %v3317_v19 = vld [vmem:[#allocation3 + $0x18] sm:$0xff]  ;;  %6742 = vmatmul.mubr.msk.f32.gmra.mrb[90].mxu1 %vm2897_vm14, %v3334_v18  ;;  %v3318_v24 = vld [vmem:[#allocation3 + $0x20] sm:$0x1]  ;;  %7335 = vmatprep.subr.bf16.mxu0 %v8027_v0  ;;  %v7360_v9 = vpack.c.bf16 %v3735_v8, %v3734_v7 }
 0x755   : > { %6781 = vmatmul.mubr.msk.f32.gmra.mrb[92].mxu0 %vm2897_vm14, %v3317_v19  ;;  %7319 = vmatpush3.bf16.msra.mxu1 %v7318_v15  ;;  %v3561_v29 = vld [vmem:[#allocation3 + $0x12] sm:$0xff] }
 0x756   : > { %6744 = vmatprep.mubr.msk.f32.mxu1 %vm8029_vm0, %v8028_v1  ;;  %6783 = vmatprep.mubr.msk.f32.mxu0 %vm8029_vm0, %v8028_v1 }
 0x757   : > { %7320 = vmatprep.subr.bf16.mxu1 %v8027_v0  ;;  %v3335_v23 = vld [vmem:[#allocation3 + $0x21] sm:$0x1]  ;;  %7337 = vmatpush3.bf16.msra.mxu0 %v7336_v54 }
 0x758   : > { %6745 = vmatmul.mubr.msk.f32.gmra.mrb[92].mxu1 %vm2897_vm14, %v3335_v23  ;;  %v3562_v30 = vld [vmem:[#allocation3 + $0x1a] sm:$0xff]  ;;  %7338 = vmatprep.subr.bf16.mxu0 %v8027_v0 }
 0x759   : > { %6784 = vmatmul.mubr.msk.f32.gmra.mrb[94].mxu0 %vm2897_vm14, %v3318_v24  ;;  %7322 = vmatpush3.bf16.msra.mxu1 %v7321_v20  ;;  %v5687_v54 = vld [vmem:[%s10110_s15 + $0xc8] sm:$0xff] }
 0x75a   : > { %6810 = vmatprep.mubr.msk.f32.mxu1 %vm8029_vm0, %v8028_v1  ;;  %7323 = vmatprep.subr.bf16.mxu1 %v8027_v0  ;;  %v7363_v62 = vpack.c.bf16 %v5687_v54, %v5686_v53  ;;  %v4131_v53 = vld [vmem:[%s10112_s17 + $0x10] sm:$0xff] }
 0x75b   : > { %6849 = vmatprep.mubr.msk.f32.mxu0 %vm8029_vm0, %v8028_v1  ;;  %7340 = vmatpush3.bf16.msra.mxu0 %v7339_v61 }
 0x75c   : > { %7341 = vmatprep.subr.bf16.mxu0 %v8027_v0 }
 0x75d   : > { %7325 = vmatpush3.bf16.msra.mxu1 %v7324_v25 }
 0x75e   : > { %7344 = vmatprep.subr.bf16.mxu1 %v8027_v0 }
 0x75f   : > { %7343 = vmatpush3.bf16.msra.mxu0 %v7342_v6 }
 0x760   : > { %6811 = vmatmul.mubr.msk.f32.vlgmr.msra.gmra.mrb[94].mxu1 %vm2897_vm14, %v3559_v26  ;;  %7362 = vmatprep.subr.bf16.mxu0 %v8027_v0 }
 0x761   : > { %6813 = vmatprep.mubr.msk.f32.mxu1 %vm8029_vm0, %v8028_v1  ;;  %7346 = vmatpush3.bf16.msra.mxu1 %v7345_v38  ;;  %v5663_v38 = vld [vmem:[#allocation14] ss:$0 sm:$0xff] }
 0x762   : > { %7347 = vmatprep.subr.bf16.mxu1 %v8027_v0 }
 0x764   : > { %6814 = vmatmul.mubr.msk.f32.gmra.mrb[96].mxu1 %vm2897_vm14, %v3560_v28 }
 0x765   : > { %6816 = vmatprep.mubr.msk.f32.mxu1 %vm8029_vm0, %v8028_v1  ;;  %7349 = vmatpush3.bf16.msra.mxu1 %v7348_v45 }
 0x766   : > { %7350 = vmatprep.subr.bf16.mxu1 %v8027_v0 }
 0x768   : > { %6817 = vmatmul.mubr.msk.f32.gmra.mrb[98].mxu1 %vm2897_vm14, %v3561_v29 }
 0x769   : > { %6819 = vmatprep.mubr.msk.f32.mxu1 %vm8029_vm0, %v8028_v1  ;;  %7352 = vmatpush3.bf16.msra.mxu1 %v7351_v51 }
 0x76a   : > { %7353 = vmatprep.subr.bf16.mxu1 %v8027_v0 }
 0x76c   : > { %6820 = vmatmul.mubr.msk.f32.gmra.mrb[100].mxu1 %vm2897_vm14, %v3562_v30 }
 0x76d   : > { %6822 = vmatprep.mubr.msk.f32.mxu1 %vm8029_vm0, %v8028_v1  ;;  %7355 = vmatpush3.bf16.msra.mxu1 %v7354_v58 }
 0x76e   : > { %7356 = vmatprep.subr.bf16.mxu1 %v8027_v0 }
 0x770   : > { %6823 = vmatmul.mubr.msk.f32.gmra.mrb[102].mxu1 %vm2897_vm14, %v3563_v31 }
 0x771   : > { %6888 = vmatprep.mubr.msk.f32.mxu1 %vm8029_vm0, %v8028_v1  ;;  %7358 = vmatpush3.bf16.msra.mxu1 %v7357_v3  ;;  %v5689_v3 = vld [vmem:[%s10110_s15 + $0xd8] sm:$0xff] }
 0x772   : > { %7359 = vmatprep.subr.bf16.mxu1 %v8027_v0 }
 0x775   : > { %7361 = vmatpush3.bf16.msra.mxu1 %v7360_v9 }
 0x776   : > { %7380 = vmatprep.subr.bf16.mxu1 %v8027_v0 }
 0x81b   : > { %v3430_v10 = vpop.f32.mrb[84].mxu1 }
 0x81c   : > { %v3535_v11 = vpop.f32.mrb[86].mxu0  ;;  %v6734_v13 = vpop.f32.mrb[85].mxu1 }
 0x81d   : > { %v3536_v12 = vadd.f32 %v3535_v11, %v3430_v10  ;;  %v6773_v14 = vpop.f32.mrb[87].mxu0  ;;  %v5690_v13 = vld [vmem:[%s10110_s15 + $0xe0] sm:$0xff] }
 0x81e   : > { %v5691_v14 = vld [vmem:[%s10110_s15 + $0xe8] sm:$0xff] }
 0x81f   : > { %v3435_v15 = vpop.f32.mrb[86].mxu1 }
 0x820   : > { %v3540_v16 = vpop.f32.mrb[88].mxu0  ;;  %v6737_v18 = vpop.f32.mrb[87].mxu1 }
 0x821   : > { %v3541_v17 = vadd.f32 %v3540_v16, %v3435_v15  ;;  %v6776_v19 = vpop.f32.mrb[89].mxu0 }
 0x823   : > { %v3440_v20 = vpop.f32.mrb[88].mxu1 }
 0x824   : > { %v3545_v21 = vpop.f32.mrb[90].mxu0  ;;  %v6740_v23 = vpop.f32.mrb[89].mxu1 }
 0x825   : > { %v3546_v22 = vadd.f32 %v3545_v21, %v3440_v20  ;;  %v6779_v24 = vpop.f32.mrb[91].mxu0  ;;  %v7369_v20 = vpack.c.bf16 %v5691_v14, %v5690_v13  ;;  %v5692_v21 = vld [vmem:[%s10110_s15 + $0xf0] sm:$0xff]  ;;  %v4138_v13 = vld [vmem:[%s10112_s17 + $0x48] sm:$0xff] }
 0x827   : > { %v3445_v25 = vpop.f32.mrb[90].mxu1 }
 0x828   : > { %v3550_v26 = vpop.f32.mrb[92].mxu0  ;;  %v6743_v29 = vpop.f32.mrb[91].mxu1 }
 0x829   : > { %v3551_v28 = vadd.f32 %v3550_v26, %v3445_v25  ;;  %v6782_v30 = vpop.f32.mrb[93].mxu0  ;;  %v5695_v29 = vld [vmem:[%s10110_s15 + $0x108] sm:$0xff] }
 0x82b   : > { %v3450_v31 = vpop.f32.mrb[92].mxu1 }
 0x82c   : > { %v3555_v32 = vpop.f32.mrb[94].mxu0  ;;  %v6746_v34 = vpop.f32.mrb[93].mxu1 }
 0x82d   : > { %v3556_v33 = vadd.f32 %v3555_v32, %v3450_v31  ;;  %v6785_v36 = vpop.f32.mrb[95].mxu0  ;;  %v5697_v34 = vld [vmem:[%s10110_s15 + $0x118] sm:$0xff] }
 0x833   : > { %v3658_v37 = vpop.f32.mrb[94].mxu1 }
 0x834   : > { %v3682_v39 = vadd.f32 %v3658_v37, %v3536_v12  ;;  %v6812_v40 = vpop.f32.mrb[95].mxu1  ;;  %v7366_v12 = vpack.c.bf16 %v5689_v3, %v5688_v2  ;;  %v5710_v3 = vld [vmem:[%s10112_s17 + $0x90] sm:$0xff] }
 0x836   : > { %v3694_v41 = vadd.f32 %v5663_v38, %v3682_v39 }
 0x837   : > { %v3663_v42 = vpop.f32.mrb[96].mxu1 }
 0x838   : > { %vm3699_vm11 = vcmp.ge.f32.partialorder %v3694_v41, 0.0  ;;  %v3704_v43 = vmul.f32 0.2, %v3694_v41  ;;  %v3683_v45 = vadd.f32 %v3663_v42, %v3541_v17  ;;  %v6815_v46 = vpop.f32.mrb[97].mxu1 }
 0x839   : > { %v5705_v46 = vld [vmem:[%s10112_s17 + $0x68] sm:$0xff] }
 0x83a   : > { %v3709_v47 = vsel %vm3699_vm11, %v3694_v41, %v3704_v43  ;;  %v3695_v48 = vadd.f32 %v5663_v38, %v3683_v45  ;;  %v3968_v43 = vld [vmem:[#allocation2 + $0x22] sm:$0x1]  ;;  %vm4684_vm11 = vcmask 516096  }
 0x83b   : > { %3714 = vst.msk [vmem:[#allocation2 + $0x1] sm:$0xff] %vm2897_vm14, %v3709_v47  ;;  %v3668_v49 = vpop.f32.mrb[98].mxu1  ;;  %v5704_v45 = vld [vmem:[%s10112_s17 + $0x60] sm:$0xff] }
 0x83c   : > { %vm3700_vm12 = vcmp.ge.f32.partialorder %v3695_v48, 0.0  ;;  %v3705_v50 = vmul.f32 0.2, %v3695_v48  ;;  %v3684_v51 = vadd.f32 %v3668_v49, %v3546_v22  ;;  %v6818_v52 = vpop.f32.mrb[99].mxu1  ;;  %v5693_v22 = vld [vmem:[%s10110_s15 + $0xf8] sm:$0xff]  ;;  %v4129_v47 = vld [vmem:[%s10112_s17] sm:$0xff] }
 0x83d   : > { %v7372_v26 = vpack.c.bf16 %v5693_v22, %v5692_v21  ;;  %v4130_v49 = vld [vmem:[%s10112_s17 + $0x8] sm:$0xff]  ;;  %v5707_v52 = vld [vmem:[%s10112_s17 + $0x78] sm:$0xff] }
 0x83e   : > { %v3710_v56 = vsel %vm3700_vm12, %v3695_v48, %v3705_v50  ;;  %v3696_v57 = vadd.f32 %v5663_v38, %v3684_v51  ;;  %v7381_v48 = vpack.c.bf16 %v5705_v46, %v5704_v45  ;;  %v7399_v50 = vpack.c.bf16 %v4130_v49, %v4129_v47  ;;  %v5706_v51 = vld [vmem:[%s10112_s17 + $0x70] sm:$0xff]  ;;  %v4517_v21 = vld [vmem:[%s10114_s19 + $0x8] sm:$0xff]  ;;  %v4519_v22 = vld [vmem:[%s10114_s19 + $0x18] sm:$0xff] }
 0x83f   : > { %3715 = vst.msk [vmem:[#allocation2 + $0x9] sm:$0xff] %vm2897_vm14, %v3710_v56  ;;  %v3673_v58 = vpop.f32.mrb[100].mxu1  ;;  %v7384_v54 = vpack.c.bf16 %v5707_v52, %v5706_v51  ;;  %v4132_v56 = vld [vmem:[%s10112_s17 + $0x18] sm:$0xff]  ;;  %vm4761_vm12 = vcmask 1040896  }
 0x840   : > { %vm3701_vm13 = vcmp.ge.f32.partialorder %v3696_v57, 0.0  ;;  %v3706_v59 = vmul.f32 0.2, %v3696_v57  ;;  %v3685_v60 = vadd.f32 %v3673_v58, %v3551_v28  ;;  %v6821_v61 = vpop.f32.mrb[101].mxu1  ;;  %v5694_v28 = vld [vmem:[%s10110_s15 + $0x100] sm:$0xff] }
 0x841   : > { %v7375_v32 = vpack.c.bf16 %v5695_v29, %v5694_v28  ;;  %v5708_v58 = vld [vmem:[%s10112_s17 + $0x80] sm:$0xff] }
 0x842   : > { %v3711_v4 = vsel %vm3701_vm13, %v3696_v57, %v3706_v59  ;;  %v3697_v5 = vadd.f32 %v5663_v38, %v3685_v60  ;;  %v3736_v6 = vld [vmem:[#allocation2 + $0x1] sm:$0xff]  ;;  %v7402_v57 = vpack.c.bf16 %v4132_v56, %v4131_v53  ;;  %v9497_v53 = vld [vmem:[#allocation15] ss:$0 sm:$0xff] }
 0x843   : > { %v3719_v7 = vld [vmem:[#allocation2] sm:$0xff]  ;;  %3716 = vst.msk [vmem:[#allocation2 + $0x11] sm:$0xff] %vm2897_vm14, %v3711_v4  ;;  %v3678_v8 = vpop.f32.mrb[102].mxu1  ;;  %6850 = vmatmul.mubr.msk.f32.vlgmr.msra.gmra.mrb[96].mxu0 %vm2897_vm14, %v3736_v6  ;;  %v5709_v59 = vld [vmem:[%s10112_s17 + $0x88] sm:$0xff]  ;;  %v5711_v4 = vld [vmem:[%s10112_s17 + $0x98] sm:$0xff] }
 0x844   : > { %6889 = vmatmul.mubr.msk.f32.vlgmr.msra.gmra.mrb[104].mxu1 %vm2897_vm14, %v3719_v7  ;;  %vm3702_vm15 = vcmp.ge.f32.partialorder %v3697_v5, 0.0  ;;  %v3707_v9 = vmul.f32 0.2, %v3697_v5  ;;  %v3686_v10 = vadd.f32 %v3678_v8, %v3556_v33  ;;  %7364 = vmatpush3.bf16.msra.mxu0 %v7363_v62  ;;  %v6824_v11 = vpop.f32.mrb[103].mxu1  ;;  %v5696_v33 = vld [vmem:[%s10110_s15 + $0x110] sm:$0xff]  ;;  %v4133_v60 = vld [vmem:[%s10112_s17 + $0x20] sm:$0xff]  ;;  %v7387_v61 = vpack.c.bf16 %v5709_v59, %v5708_v58 }
 0x845   : > { %6852 = vmatprep.mubr.msk.f32.mxu0 %vm8029_vm0, %v8028_v1  ;;  %6891 = vmatprep.mubr.msk.f32.mxu1 %vm8029_vm0, %v8028_v1  ;;  %v4134_v62 = vld [vmem:[%s10112_s17 + $0x28] sm:$0xff]  ;;  %v4135_v6 = vld [vmem:[%s10112_s17 + $0x30] sm:$0xff]  ;;  %v4136_v7 = vld [vmem:[%s10112_s17 + $0x38] sm:$0xff] }
 0x846   : > { %7365 = vmatprep.subr.bf16.mxu0 %v8027_v0  ;;  %v3712_v15 = vsel %vm3702_vm15, %v3697_v5, %v3707_v9  ;;  %v3698_v16 = vadd.f32 %v5663_v38, %v3686_v10  ;;  %v3737_v17 = vld [vmem:[#allocation2 + $0x9] sm:$0xff]  ;;  %v7378_v38 = vpack.c.bf16 %v5697_v34, %v5696_v33  ;;  %7382 = vmatpush3.bf16.msra.mxu1 %v7381_v48  ;;  %v5712_v9 = vld [vmem:[%s10112_s17 + $0xa0] sm:$0xff] }
 0x847   : > { %v3720_v18 = vld [vmem:[#allocation2 + $0x8] sm:$0xff]  ;;  %3717 = vst.msk [vmem:[#allocation2 + $0x19] sm:$0xff] %vm2897_vm14, %v3712_v15  ;;  %6853 = vmatmul.mubr.msk.f32.gmra.mrb[98].mxu0 %vm2897_vm14, %v3737_v17  ;;  %7383 = vmatprep.subr.bf16.mxu1 %v8027_v0  ;;  %v7405_v2 = vpack.c.bf16 %v4134_v62, %v4133_v60  ;;  %v7390_v5 = vpack.c.bf16 %v5711_v4, %v5710_v3  ;;  %v4137_v11 = vld [vmem:[%s10112_s17 + $0x40] sm:$0xff]  ;;  %v5714_v15 = vld [vmem:[%s10112_s17 + $0xb0] sm:$0xff] }
 0x848   : > { %6892 = vmatmul.mubr.msk.f32.gmra.mrb[106].mxu1 %vm2897_vm14, %v3720_v18  ;;  %vm3703_vm2 = vcmp.ge.f32.partialorder %v3698_v16, 0.0  ;;  %v3708_v19 = vmul.f32 0.2, %v3698_v16  ;;  %7367 = vmatpush3.bf16.msra.mxu0 %v7366_v12  ;;  %v3964_v39 = vld [vmem:[#allocation2 + $0x2] sm:$0xff]  ;;  %v7408_v8 = vpack.c.bf16 %v4136_v7, %v4135_v6  ;;  %v7411_v14 = vpack.c.bf16 %v4138_v13, %v4137_v11  ;;  %v4139_v17 = vld [vmem:[%s10112_s17 + $0x50] sm:$0xff] }
 0x849   : > { %6855 = vmatprep.mubr.msk.f32.mxu0 %vm8029_vm0, %v8028_v1  ;;  %6894 = vmatprep.mubr.msk.f32.mxu1 %vm8029_vm0, %v8028_v1  ;;  %v5713_v10 = vld [vmem:[%s10112_s17 + $0xa8] sm:$0xff]  ;;  %v5726_v7 = vld [vmem:[%s10112_s17 + $0xc0] sm:$0xff] }
 0x84a   : > { %7368 = vmatprep.subr.bf16.mxu0 %v8027_v0  ;;  %v3713_v23 = vsel %vm3703_vm2, %v3698_v16, %v3708_v19  ;;  %v3738_v24 = vld [vmem:[#allocation2 + $0x11] sm:$0xff]  ;;  %7385 = vmatpush3.bf16.msra.mxu1 %v7384_v54  ;;  %v7393_v12 = vpack.c.bf16 %v5713_v10, %v5712_v9  ;;  %v4516_v9 = vld [vmem:[%s10114_s19] sm:$0xff] }
 0x84b   : > { %v3721_v25 = vld [vmem:[#allocation2 + $0x10] sm:$0xff]  ;;  %3718 = vst.msk [vmem:[#allocation2 + $0x21] sm:$0x1] %vm2902_vm5, %v3713_v23  ;;  %6856 = vmatmul.mubr.msk.f32.gmra.mrb[100].mxu0 %vm2897_vm14, %v3738_v24  ;;  %7386 = vmatprep.subr.bf16.mxu1 %v8027_v0  ;;  %v5715_v16 = vld [vmem:[%s10112_s17 + $0xb8] sm:$0xff]  ;;  %v7434_v23 = vpack.c.bf16 %v4519_v22, %v4517_v21 }
 0x84c   : > { %6895 = vmatmul.mubr.msk.f32.gmra.mrb[108].mxu1 %vm2897_vm14, %v3721_v25  ;;  %7370 = vmatpush3.bf16.msra.mxu0 %v7369_v20  ;;  %v3965_v40 = vld [vmem:[#allocation2 + $0xa] sm:$0xff]  ;;  %v7396_v18 = vpack.c.bf16 %v5715_v16, %v5714_v15  ;;  %v4140_v19 = vld [vmem:[%s10112_s17 + $0x58] sm:$0xff] }
 0x84d   : > { %6858 = vmatprep.mubr.msk.f32.mxu0 %vm8029_vm0, %v8028_v1  ;;  %6897 = vmatprep.mubr.msk.f32.mxu1 %vm8029_vm0, %v8028_v1  ;;  %v7414_v20 = vpack.c.bf16 %v4140_v19, %v4139_v17  ;;  %v4518_v10 = vld [vmem:[%s10114_s19 + $0x10] sm:$0xff]  ;;  %v4521_v15 = vld [vmem:[%s10114_s19 + $0x28] sm:$0xff]  ;;  %v4523_v16 = vld [vmem:[%s10114_s19 + $0x38] sm:$0xff] }
 0x84e   : > { %7371 = vmatprep.subr.bf16.mxu0 %v8027_v0  ;;  %v3739_v30 = vld [vmem:[#allocation2 + $0x19] sm:$0xff]  ;;  %7388 = vmatpush3.bf16.msra.mxu1 %v7387_v61  ;;  %v5728_v21 = vld [vmem:[%s10112_s17 + $0xd0] sm:$0xff] }
 0x84f   : > { %v3722_v31 = vld [vmem:[#allocation2 + $0x18] sm:$0xff]  ;;  %6859 = vmatmul.mubr.msk.f32.gmra.mrb[102].mxu0 %vm2897_vm14, %v3739_v30  ;;  %v3723_v37 = vld [vmem:[#allocation2 + $0x20] sm:$0x1]  ;;  %7389 = vmatprep.subr.bf16.mxu1 %v8027_v0 }
 0x850   : > { %6898 = vmatmul.mubr.msk.f32.gmra.mrb[110].mxu1 %vm2897_vm14, %v3722_v31  ;;  %7373 = vmatpush3.bf16.msra.mxu0 %v7372_v26  ;;  %v3966_v41 = vld [vmem:[#allocation2 + $0x12] sm:$0xff] }
 0x851   : > { %6861 = vmatprep.mubr.msk.f32.mxu0 %vm8029_vm0, %v8028_v1  ;;  %6900 = vmatprep.mubr.msk.f32.mxu1 %vm8029_vm0, %v8028_v1  ;;  %v5729_v22 = vld [vmem:[%s10112_s17 + $0xd8] sm:$0xff] }
 0x852   : > { %7374 = vmatprep.subr.bf16.mxu0 %v8027_v0  ;;  %v3740_v36 = vld [vmem:[#allocation2 + $0x21] sm:$0x1]  ;;  %7391 = vmatpush3.bf16.msra.mxu1 %v7390_v5 }
 0x853   : > { %6862 = vmatmul.mubr.msk.f32.gmra.mrb[104].mxu0 %vm2897_vm14, %v3740_v36  ;;  %v3967_v42 = vld [vmem:[#allocation2 + $0x1a] sm:$0xff]  ;;  %7392 = vmatprep.subr.bf16.mxu1 %v8027_v0 }
 0x854   : > { %6901 = vmatmul.mubr.msk.f32.gmra.mrb[112].mxu1 %vm2897_vm14, %v3723_v37  ;;  %7376 = vmatpush3.bf16.msra.mxu0 %v7375_v32 }
 0x855   : > { %6927 = vmatprep.mubr.msk.f32.mxu0 %vm8029_vm0, %v8028_v1  ;;  %7377 = vmatprep.subr.bf16.mxu0 %v8027_v0 }
 0x856   : > { %6966 = vmatprep.mubr.msk.f32.mxu1 %vm8029_vm0, %v8028_v1  ;;  %7394 = vmatpush3.bf16.msra.mxu1 %v7393_v12 }
 0x857   : > { %7395 = vmatprep.subr.bf16.mxu1 %v8027_v0 }
 0x858   : > { %7379 = vmatpush3.bf16.msra.mxu0 %v7378_v38 }
 0x859   : > { %7398 = vmatprep.subr.bf16.mxu0 %v8027_v0 }
 0x85a   : > { %7397 = vmatpush3.bf16.msra.mxu1 %v7396_v18 }
 0x85b   : > { %6928 = vmatmul.mubr.msk.f32.vlgmr.msra.gmra.mrb[106].mxu0 %vm2897_vm14, %v3964_v39  ;;  %7416 = vmatprep.subr.bf16.mxu1 %v8027_v0 }
 0x85c   : > { %6930 = vmatprep.mubr.msk.f32.mxu0 %vm8029_vm0, %v8028_v1  ;;  %7400 = vmatpush3.bf16.msra.mxu0 %v7399_v50 }
 0x85d   : > { %7401 = vmatprep.subr.bf16.mxu0 %v8027_v0 }
 0x85f   : > { %6931 = vmatmul.mubr.msk.f32.gmra.mrb[108].mxu0 %vm2897_vm14, %v3965_v40 }
 0x860   : > { %6933 = vmatprep.mubr.msk.f32.mxu0 %vm8029_vm0, %v8028_v1  ;;  %7403 = vmatpush3.bf16.msra.mxu0 %v7402_v57 }
 0x861   : > { %7404 = vmatprep.subr.bf16.mxu0 %v8027_v0 }
 0x863   : > { %6934 = vmatmul.mubr.msk.f32.gmra.mrb[110].mxu0 %vm2897_vm14, %v3966_v41 }
 0x864   : > { %6936 = vmatprep.mubr.msk.f32.mxu0 %vm8029_vm0, %v8028_v1  ;;  %7406 = vmatpush3.bf16.msra.mxu0 %v7405_v2 }
 0x865   : > { %7407 = vmatprep.subr.bf16.mxu0 %v8027_v0 }
 0x867   : > { %6937 = vmatmul.mubr.msk.f32.gmra.mrb[112].mxu0 %vm2897_vm14, %v3967_v42 }
 0x868   : > { %6939 = vmatprep.mubr.msk.f32.mxu0 %vm8029_vm0, %v8028_v1  ;;  %7409 = vmatpush3.bf16.msra.mxu0 %v7408_v8  ;;  %v5727_v8 = vld [vmem:[%s10112_s17 + $0xc8] sm:$0xff] }
 0x869   : > { %7410 = vmatprep.subr.bf16.mxu0 %v8027_v0 }
 0x86b   : > { %6940 = vmatmul.mubr.msk.f32.gmra.mrb[114].mxu0 %vm2897_vm14, %v3968_v43 }
 0x86c   : > { %7005 = vmatprep.mubr.msk.f32.mxu0 %vm8029_vm0, %v8028_v1  ;;  %7412 = vmatpush3.bf16.msra.mxu0 %v7411_v14  ;;  %v7417_v14 = vpack.c.bf16 %v5727_v8, %v5726_v7  ;;  %v5734_v7 = vld [vmem:[%s10112_s17 + $0x100] sm:$0xff]  ;;  %v5735_v8 = vld [vmem:[%s10112_s17 + $0x108] sm:$0xff] }
 0x86d   : > { %7413 = vmatprep.subr.bf16.mxu0 %v8027_v0 }
 0x870   : > { %7415 = vmatpush3.bf16.msra.mxu0 %v7414_v20  ;;  %v7436_v20 = vpack.c.bf16 %v4518_v10, %v4516_v9  ;;  %v4532_v9 = vld [vmem:[%s10114_s19 + $0x80] sm:$0xff]  ;;  %v4534_v10 = vld [vmem:[%s10114_s19 + $0x90] sm:$0xff] }
 0x871   : > { %7435 = vmatprep.subr.bf16.mxu0 %v7434_v23  ;;  %v4520_v23 = vld [vmem:[%s10114_s19 + $0x20] sm:$0xff] }
 0x916   : > { %v3835_v24 = vpop.f32.mrb[96].mxu0 }
 0x917   : > { %v3940_v25 = vpop.f32.mrb[104].mxu1  ;;  %v6851_v28 = vpop.f32.mrb[97].mxu0 }
 0x918   : > { %v3941_v26 = vadd.f32 %v3940_v25, %v3835_v24  ;;  %v6890_v29 = vpop.f32.mrb[105].mxu1  ;;  %v4522_v24 = vld [vmem:[%s10114_s19 + $0x30] sm:$0xff] }
 0x91a   : > { %v3840_v30 = vpop.f32.mrb[98].mxu0 }
 0x91b   : > { %v3945_v31 = vpop.f32.mrb[106].mxu1  ;;  %v6854_v33 = vpop.f32.mrb[99].mxu0 }
 0x91c   : > { %v3946_v32 = vadd.f32 %v3945_v31, %v3840_v30  ;;  %v6893_v34 = vpop.f32.mrb[107].mxu1  ;;  %v7438_v30 = vpack.c.bf16 %v4523_v16, %v4521_v15  ;;  %v4525_v33 = vld [vmem:[%s10114_s19 + $0x48] sm:$0xff]  ;;  %v4539_v15 = vld [vmem:[%s10114_s19 + $0xb8] sm:$0xff]  ;;  %v7429_v16 = vpack.c.bf16 %v5735_v8, %v5734_v7 }
 0x91d   : > { %v4527_v34 = vld [vmem:[%s10114_s19 + $0x58] sm:$0xff] }
 0x91e   : > { %v3845_v36 = vpop.f32.mrb[100].mxu0 }
 0x91f   : > { %v3950_v37 = vpop.f32.mrb[108].mxu1  ;;  %v6857_v39 = vpop.f32.mrb[101].mxu0 }
 0x920   : > { %v3951_v38 = vadd.f32 %v3950_v37, %v3845_v36  ;;  %v6896_v40 = vpop.f32.mrb[109].mxu1  ;;  %v5730_v39 = vld [vmem:[%s10112_s17 + $0xe0] sm:$0xff] }
 0x922   : > { %v3850_v41 = vpop.f32.mrb[102].mxu0 }
 0x923   : > { %v3955_v42 = vpop.f32.mrb[110].mxu1  ;;  %v6860_v45 = vpop.f32.mrb[103].mxu0 }
 0x924   : > { %v3956_v43 = vadd.f32 %v3955_v42, %v3850_v41  ;;  %v6899_v46 = vpop.f32.mrb[111].mxu1  ;;  %v5731_v41 = vld [vmem:[%s10112_s17 + $0xe8] sm:$0xff]  ;;  %v4524_v42 = vld [vmem:[%s10114_s19 + $0x40] sm:$0xff] }
 0x926   : > { %v3855_v47 = vpop.f32.mrb[104].mxu0 }
 0x927   : > { %v3960_v48 = vpop.f32.mrb[112].mxu1  ;;  %v6863_v50 = vpop.f32.mrb[105].mxu0 }
 0x928   : > { %v3961_v49 = vadd.f32 %v3960_v48, %v3855_v47  ;;  %v6902_v51 = vpop.f32.mrb[113].mxu1  ;;  %v4529_v50 = vld [vmem:[%s10114_s19 + $0x68] sm:$0xff] }
 0x929   : > { %v4531_v51 = vld [vmem:[%s10114_s19 + $0x78] sm:$0xff] }
 0x92e   : > { %v4063_v52 = vpop.f32.mrb[106].mxu0 }
 0x92f   : > { %v4087_v54 = vadd.f32 %v4063_v52, %v3941_v26  ;;  %v6929_v56 = vpop.f32.mrb[107].mxu0 }
 0x930   : > { %v5732_v56 = vld [vmem:[%s10112_s17 + $0xf0] sm:$0xff] }
 0x931   : > { %v4099_v57 = vadd.f32 %v9497_v53, %v4087_v54 }
 0x932   : > { %v4068_v58 = vpop.f32.mrb[108].mxu0 }
 0x933   : > { %vm4104_vm3 = vcmp.ge.f32.partialorder %v4099_v57, 0.0  ;;  %v4109_v59 = vmul.f32 0.2, %v4099_v57  ;;  %v4088_v60 = vadd.f32 %v4068_v58, %v3946_v32  ;;  %v6932_v61 = vpop.f32.mrb[109].mxu0  ;;  %v7420_v32 = vpack.c.bf16 %v5729_v22, %v5728_v21  ;;  %v4528_v58 = vld [vmem:[%s10114_s19 + $0x60] sm:$0xff]  ;;  %v4538_v22 = vld [vmem:[%s10114_s19 + $0xb0] sm:$0xff] }
 0x934   : > { %v4536_v21 = vld [vmem:[%s10114_s19 + $0xa0] sm:$0xff] }
 0x935   : > { %v4114_v62 = vsel %vm4104_vm3, %v4099_v57, %v4109_v59  ;;  %v4100_v2 = vadd.f32 %v9497_v53, %v4088_v60  ;;  %v5733_v57 = vld [vmem:[%s10112_s17 + $0xf8] sm:$0xff]  ;;  %v4530_v59 = vld [vmem:[%s10114_s19 + $0x70] sm:$0xff] }
 0x936   : > { %4119 = vst.msk [vmem:[#allocation3 + $0x1] sm:$0xff] %vm2897_vm14, %v4114_v62  ;;  %v4073_v3 = vpop.f32.mrb[110].mxu0 }
 0x937   : > { %vm4105_vm4 = vcmp.ge.f32.partialorder %v4100_v2, 0.0  ;;  %v4110_v4 = vmul.f32 0.2, %v4100_v2  ;;  %v4089_v5 = vadd.f32 %v4073_v3, %v3951_v38  ;;  %v6935_v6 = vpop.f32.mrb[111].mxu0  ;;  %v7440_v38 = vpack.c.bf16 %v4522_v24, %v4520_v23  ;;  %v4533_v3 = vld [vmem:[%s10114_s19 + $0x88] sm:$0xff] }
 0x938   : > { %v7448_v6 = vpack.c.bf16 %v4530_v59, %v4528_v58  ;;  %v4540_v58 = vld [vmem:[%s10194_s16] sm:$0x3]  ;;  %s10065_s16 = scalar_lea.vmem %s10198_s23, %s8510_s27 }
 0x939   : > { %v4115_v11 = vsel %vm4105_vm4, %v4100_v2, %v4110_v4  ;;  %v4101_v12 = vadd.f32 %v9497_v53, %v4089_v5  ;;  %v7446_v2 = vpack.c.bf16 %v4531_v51, %v4529_v50  ;;  %v4535_v4 = vld [vmem:[%s10114_s19 + $0x98] sm:$0xff]  ;;  %v7426_v5 = vpack.c.bf16 %v5733_v57, %v5732_v56 }
 0x93a   : > { %4120 = vst.msk [vmem:[#allocation3 + $0x9] sm:$0xff] %vm2897_vm14, %v4115_v11  ;;  %v4078_v13 = vpop.f32.mrb[112].mxu0  ;;  %v4537_v11 = vld [vmem:[%s10114_s19 + $0xa8] sm:$0xff] }
 0x93b   : > { %vm4106_vm6 = vcmp.ge.f32.partialorder %v4101_v12, 0.0  ;;  %v4111_v17 = vmul.f32 0.2, %v4101_v12  ;;  %v4090_v18 = vadd.f32 %v4078_v13, %v3956_v43  ;;  %v6938_v19 = vpop.f32.mrb[113].mxu0  ;;  %v4526_v43 = vld [vmem:[%s10114_s19 + $0x50] sm:$0xff] }
 0x93c   : > { %v7444_v54 = vpack.c.bf16 %v4526_v43, %v4524_v42  ;;  %v7454_v19 = vpack.c.bf16 %v4539_v15, %v4537_v11 }
 0x93d   : > { %v4116_v25 = vsel %vm4106_vm6, %v4101_v12, %v4111_v17  ;;  %v4102_v26 = vadd.f32 %v9497_v53, %v4090_v18  ;;  %v4141_v28 = vld [vmem:[#allocation3 + $0x1] sm:$0xff]  ;;  %v7452_v17 = vpack.c.bf16 %v4534_v10, %v4532_v9 }
 0x93e   : > { %v4124_v29 = vld [vmem:[#allocation3] sm:$0xff]  ;;  %4121 = vst.msk [vmem:[#allocation3 + $0x11] sm:$0xff] %vm2897_vm14, %v4116_v25  ;;  %v4083_v31 = vpop.f32.mrb[114].mxu0  ;;  %6967 = vmatmul.mubr.msk.f32.vlgmr.msra.gmra.mrb[114].mxu1 %vm2897_vm14, %v4141_v28  ;;  %v5736_v18 = vld [vmem:[%s10112_s17 + $0x110] sm:$0xff] }
 0x93f   : > { %7006 = vmatmul.mubr.msk.f32.vlgmr.msra.gmra.mrb[116].mxu0 %vm2897_vm14, %v4124_v29  ;;  %vm4107_vm7 = vcmp.ge.f32.partialorder %v4102_v26, 0.0  ;;  %v4112_v36 = vmul.f32 0.2, %v4102_v26  ;;  %v4091_v37 = vadd.f32 %v4083_v31, %v3961_v49  ;;  %7418 = vmatpush3.bf16.msra.mxu1 %v7417_v14  ;;  %v6941_v40 = vpop.f32.mrb[115].mxu0  ;;  %v7442_v49 = vpack.c.bf16 %v4527_v34, %v4525_v33 }
 0x940   : > { %7437 = vmatpush1.bf16.msra.mxu0 %v7436_v20  ;;  %6969 = vmatprep.mubr.msk.f32.mxu1 %vm8029_vm0, %v8028_v1  ;;  %v7450_v14 = vpack.c.bf16 %v4535_v4, %v4533_v3  ;;  %v5737_v20 = vld [vmem:[%s10112_s17 + $0x118] sm:$0xff] }
 0x941   : > { %7008 = vmatprep.mubr.msk.f32.mxu0 %vm8029_vm0, %v8028_v1  ;;  %v4117_v45 = vsel %vm4107_vm7, %v4102_v26, %v4112_v36  ;;  %v4103_v46 = vadd.f32 %v9497_v53, %v4091_v37  ;;  %7419 = vmatprep.subr.bf16.mxu1 %v8027_v0  ;;  %v4142_v47 = vld [vmem:[#allocation3 + $0x9] sm:$0xff]  ;;  %v7423_v53 = vpack.c.bf16 %v5731_v41, %v5730_v39 }
 0x942   : > { %7439 = vmatprep.subr.bf16.mxu0 %v7438_v30  ;;  %v4125_v48 = vld [vmem:[#allocation3 + $0x8] sm:$0xff]  ;;  %4122 = vst.msk [vmem:[#allocation3 + $0x19] sm:$0xff] %vm2897_vm14, %v4117_v45  ;;  %6970 = vmatmul.mubr.msk.f32.gmra.mrb[116].mxu1 %vm2897_vm14, %v4142_v47  ;;  %v7432_v25 = vpack.c.bf16 %v5737_v20, %v5736_v18  ;;  %v7456_v26 = vpack.c.bf16 %v4538_v22, %v4536_v21  ;;  %v4542_v45 = vlaneseq }
 0x943   : > { %7009 = vmatmul.mubr.msk.f32.gmra.mrb[118].mxu0 %vm2897_vm14, %v4125_v48  ;;  %vm4108_vm8 = vcmp.ge.f32.partialorder %v4103_v46, 0.0  ;;  %v4113_v52 = vmul.f32 0.2, %v4103_v46  ;;  %7421 = vmatpush3.bf16.msra.mxu1 %v7420_v32  ;;  %v4369_v28 = vld [vmem:[#allocation3 + $0x2] sm:$0xff] }
 0x944   : > { %7441 = vmatpush1.bf16.msra.mxu0 %v7440_v38  ;;  %6972 = vmatprep.mubr.msk.f32.mxu1 %vm8029_vm0, %v8028_v1  ;;  %v4543_v50 = vshrl.u32 %v4542_v45, 7 }
 0x945   : > { %7011 = vmatprep.mubr.msk.f32.mxu0 %vm8029_vm0, %v8028_v1  ;;  %v4118_v60 = vsel %vm4108_vm8, %v4103_v46, %v4113_v52  ;;  %7422 = vmatprep.subr.bf16.mxu1 %v8027_v0  ;;  %v4143_v61 = vld [vmem:[#allocation3 + $0x11] sm:$0xff] }
 0x946   : > { %7443 = vmatprep.subr.bf16.mxu0 %v7442_v49  ;;  %v4126_v62 = vld [vmem:[#allocation3 + $0x10] sm:$0xff]  ;;  %4123 = vst.msk [vmem:[#allocation3 + $0x21] sm:$0x1] %vm2902_vm5, %v4118_v60  ;;  %6973 = vmatmul.mubr.msk.f32.gmra.mrb[118].mxu1 %vm2897_vm14, %v4143_v61  ;;  %v4544_v57 = vsub.s32 0, %v4543_v50  ;;  %v4548_v59 = vsub.s32 1, %v4543_v50 }
 0x947   : > { %7012 = vmatmul.mubr.msk.f32.gmra.mrb[120].mxu0 %vm2897_vm14, %v4126_v62  ;;  %7424 = vmatpush3.bf16.msra.mxu1 %v7423_v53  ;;  %v4370_v29 = vld [vmem:[#allocation3 + $0xa] sm:$0xff] }
 0x948   : > { %7445 = vmatpush1.bf16.msra.mxu0 %v7444_v54  ;;  %6975 = vmatprep.mubr.msk.f32.mxu1 %vm8029_vm0, %v8028_v1  ;;  %v9679_v60 = vrot.slane %v4540_v58, %v4544_v57  ;;  %v9681_v61 = vrot.slane %v4540_v58, %v4548_v59 }
 0x949   : > { %7014 = vmatprep.mubr.msk.f32.mxu0 %vm8029_vm0, %v8028_v1  ;;  %7425 = vmatprep.subr.bf16.mxu1 %v8027_v0  ;;  %v4144_v12 = vld [vmem:[#allocation3 + $0x19] sm:$0xff] }
 0x94a   : > { %7447 = vmatprep.subr.bf16.mxu0 %v7446_v2  ;;  %v4127_v13 = vld [vmem:[#allocation3 + $0x18] sm:$0xff]  ;;  %6976 = vmatmul.mubr.msk.f32.gmra.mrb[120].mxu1 %vm2897_vm14, %v4144_v12  ;;  %v4128_v24 = vld [vmem:[#allocation3 + $0x20] sm:$0x1]  ;;  %v9683_v2 = vld [vmem:[#allocation17] ss:$0 sm:$0xff] }
 0x94b   : > { %7015 = vmatmul.mubr.msk.f32.gmra.mrb[122].mxu0 %vm2897_vm14, %v4127_v13  ;;  %7427 = vmatpush3.bf16.msra.mxu1 %v7426_v5  ;;  %v4371_v30 = vld [vmem:[#allocation3 + $0x12] sm:$0xff] }
 0x94c   : > { %7449 = vmatpush1.bf16.msra.mxu0 %v7448_v6  ;;  %6978 = vmatprep.mubr.msk.f32.mxu1 %vm8029_vm0, %v8028_v1 }
 0x94d   : > { %7017 = vmatprep.mubr.msk.f32.mxu0 %vm8029_vm0, %v8028_v1  ;;  %7428 = vmatprep.subr.bf16.mxu1 %v8027_v0  ;;  %v4145_v23 = vld [vmem:[#allocation3 + $0x21] sm:$0x1] }
 0x94e   : > { %7451 = vmatprep.subr.bf16.mxu0 %v7450_v14  ;;  %6979 = vmatmul.mubr.msk.f32.gmra.mrb[122].mxu1 %vm2897_vm14, %v4145_v23 }
 0x94f   : > { %7018 = vmatmul.mubr.msk.f32.gmra.mrb[124].mxu0 %vm2897_vm14, %v4128_v24  ;;  %7430 = vmatpush3.bf16.msra.mxu1 %v7429_v16 }
 0x950   : > { %7453 = vmatpush1.bf16.msra.mxu0 %v7452_v17  ;;  %7431 = vmatprep.subr.bf16.mxu1 %v8027_v0 }
 0x951   : > { %7455 = vmatprep.subr.bf16.mxu0 %v7454_v19  ;;  %7044 = vmatprep.mubr.msk.f32.mxu1 %vm8029_vm0, %v8028_v1 }
 0x952   : > { %4631 = vmatprep.mubr.f32.mxu0 %v8028_v1 }
 0x953   : > { %7433 = vmatpush3.bf16.msra.mxu1 %v7432_v25 }
 0x954   : > { %7457 = vmatpush1.bf16.msra.mxu0 %v7456_v26  ;;  %7458 = vmatprep.subr.bf16.mxu1 %v8027_v0 }
 0x955   : > { %7494 = vmatprep.subr.bf16.mxu0 %v8027_v0 }
 0x956   : > { %7045 = vmatmul.mubr.msk.f32.vlgmr.msra.gmra.mrb[124].mxu1 %vm2897_vm14, %v4369_v28 }
 0x957   : > { %5744 = vmatmul.mubr.msk.f32.vlgmr.msra.gmra.mrb[126].mxu0 %vm2897_vm14, %v8934_v27  ;;  %7047 = vmatprep.mubr.msk.f32.mxu1 %vm8029_vm0, %v8028_v1  ;;  %v4372_v27 = vld [vmem:[#allocation3 + $0x1a] sm:$0xff] }
 0x958   : > { %4637 = vmatprep.mubr.f32.mxu0 %v8028_v1 }
 0x95a   : > { %7048 = vmatmul.mubr.msk.f32.gmra.mrb[126].mxu1 %vm2897_vm14, %v4370_v29 }
 0x95b   : > { %5745 = vmatmul.mubr.msk.f32.gmra.mrb[128].mxu0 %vm2897_vm14, %v8947_v35  ;;  %7050 = vmatprep.mubr.msk.f32.mxu1 %vm8029_vm0, %v8028_v1  ;;  %v4373_v35 = vld [vmem:[#allocation3 + $0x22] sm:$0x1] }
 0x95c   : > { %4643 = vmatprep.mubr.f32.mxu0 %v8028_v1 }
 0x95e   : > { %7051 = vmatmul.mubr.msk.f32.gmra.mrb[128].mxu1 %vm2897_vm14, %v4371_v30 }
 0x95f   : > { %5746 = vmatmul.mubr.msk.f32.gmra.mrb[130].mxu0 %vm2897_vm14, %v8960_v44  ;;  %7053 = vmatprep.mubr.msk.f32.mxu1 %vm8029_vm0, %v8028_v1 }
 0x960   : > { %4649 = vmatprep.mubr.f32.mxu0 %v8028_v1 }
 0x962   : > { %7054 = vmatmul.mubr.msk.f32.gmra.mrb[130].mxu1 %vm2897_vm14, %v4372_v27 }
 0x963   : > { %5747 = vmatmul.mubr.msk.f32.gmra.mrb[132].mxu0 %vm2897_vm14, %v8980_v55  ;;  %7056 = vmatprep.mubr.msk.f32.mxu1 %vm8029_vm0, %v8028_v1  ;;  %vm4509_vm0 = vcmask 392192  }
 0x964   : > { %4655 = vmatprep.mubr.f32.mxu0 %v8028_v1 }
 0x966   : > { %7057 = vmatmul.mubr.msk.f32.gmra.mrb[132].mxu1 %vm2897_vm14, %v4373_v35 }
 0x967   : > { %5748 = vmatmul.mubr.msk.f32.gmra.mrb[134].mxu0 %vm2897_vm14, %v9000_v63 }
 0xa11   : > { %v4240_v44 = vpop.f32.mrb[114].mxu1 }
 0xa12   : > { %v4345_v31 = vpop.f32.mrb[116].mxu0  ;;  %v6968_v33 = vpop.f32.mrb[115].mxu1 }
 0xa13   : > { %v4346_v32 = vadd.f32 %v4345_v31, %v4240_v44  ;;  %v7007_v34 = vpop.f32.mrb[117].mxu0 }
 0xa15   : > { %v4245_v36 = vpop.f32.mrb[116].mxu1 }
 0xa16   : > { %v4350_v37 = vpop.f32.mrb[118].mxu0  ;;  %v6971_v55 = vpop.f32.mrb[117].mxu1 }
 0xa17   : > { %v4351_v38 = vadd.f32 %v4350_v37, %v4245_v36  ;;  %v7010_v39 = vpop.f32.mrb[119].mxu0 }
 0xa19   : > { %v4250_v40 = vpop.f32.mrb[118].mxu1 }
 0xa1a   : > { %v4355_v41 = vpop.f32.mrb[120].mxu0  ;;  %v6974_v1 = vpop.f32.mrb[119].mxu1 }
 0xa1b   : > { %v4356_v42 = vadd.f32 %v4355_v41, %v4250_v40  ;;  %v7013_v43 = vpop.f32.mrb[121].mxu0 }
 0xa1d   : > { %v4255_v46 = vpop.f32.mrb[120].mxu1 }
 0xa1e   : > { %v4360_v47 = vpop.f32.mrb[122].mxu0  ;;  %v6977_v63 = vpop.f32.mrb[121].mxu1 }
 0xa1f   : > { %v4361_v48 = vadd.f32 %v4360_v47, %v4255_v46  ;;  %v7016_v49 = vpop.f32.mrb[123].mxu0 }
 0xa21   : > { %v4260_v51 = vpop.f32.mrb[122].mxu1 }
 0xa22   : > { %v4365_v52 = vpop.f32.mrb[124].mxu0  ;;  %v6980_v54 = vpop.f32.mrb[123].mxu1 }
 0xa23   : > { %v9674_v53 = vadd.f32 %v4365_v52, %v4260_v51  ;;  %v7019_v56 = vpop.f32.mrb[125].mxu0 }
 0xa29   : > { %v4468_v62 = vpop.f32.mrb[124].mxu1 }
 0xa2a   : > { %v4633_v3 = vpop.f32.mrb[126].mxu0  ;;  %v4492_v4 = vadd.f32 %v4468_v62, %v4346_v32  ;;  %v7046_v6 = vpop.f32.mrb[125].mxu1 }
 0xa2b   : > { %v4634_v5 = vadd.f32 %v4633_v3, %v9679_v60  ;;  %v4635_v7 = vpop.f32.mrb[127].mxu0 }
 0xa2c   : > { %v4636_v8 = vadd.f32 %v4635_v7, %v9681_v61  ;;  %v4504_v9 = vadd.f32 %v9683_v2, %v4492_v4 }
 0xa2d   : > { %v9694_v10 = vmax.f32 %v4634_v5, 0.0  ;;  %v4473_v12 = vpop.f32.mrb[126].mxu1 }
 0xa2e   : > { %v9696_v11 = vmax.f32 %v4636_v8, 0.0  ;;  %v4639_v13 = vpop.f32.mrb[128].mxu0  ;;  %4510 = vst.msk [vmem:[%s9690_s2] sm:$0xff] %vm4509_vm0, %v4504_v9  ;;  %v4493_v14 = vadd.f32 %v4473_v12, %v4351_v38  ;;  %v7049_v16 = vpop.f32.mrb[127].mxu1 }
 0xa2f   : > { %v4640_v15 = vadd.f32 %v4639_v13, %v9679_v60  ;;  %v4641_v17 = vpop.f32.mrb[129].mxu0  ;;  %v4672_v18 = vsel %vm1060_vm1, %v9694_v10, -inf  ;;  %v4749_v30 = vsel %vm4748_vm9, %v9694_v10, -inf }
 0xa30   : > { %v4642_v19 = vadd.f32 %v4641_v17, %v9681_v61  ;;  %4673 = vmax.xlane.f32.xlu0 %v4672_v18  ;;  %v4825_v20 = vsel %vm1060_vm1, %v9696_v11, -inf  ;;  %v4505_v21 = vadd.f32 %v9683_v2, %v4493_v14 }
 0xa31   : > { %v9707_v22 = vmax.f32 %v4640_v15, 0.0  ;;  %4826 = vmax.xlane.f32.xlu1 %v4825_v20  ;;  %v4478_v23 = vpop.f32.mrb[128].mxu1 }
 0xa32   : > { %v4645_v24 = vpop.f32.mrb[130].mxu0  ;;  %4511 = vst.msk [vmem:[%s9690_s2 + $0x8] sm:$0xff] %vm4509_vm0, %v4505_v21  ;;  %v4494_v25 = vadd.f32 %v4478_v23, %v4356_v42  ;;  %v7052_v28 = vpop.f32.mrb[129].mxu1  ;;  %v9716_v35 = vmax.f32 %v4642_v19, 0.0 }
 0xa33   : > { %v4646_v26 = vadd.f32 %v4645_v24, %v9679_v60  ;;  %v4647_v29 = vpop.f32.mrb[131].mxu0  ;;  %v4675_v27 = vsel %vm1060_vm1, %v9707_v22, -inf  ;;  %v4752_v55 = vsel %vm4748_vm9, %v9707_v22, -inf }
 0xa34   : > { %4750 = vmax.xlane.f32.xlu0 %v4749_v30  ;;  %v4506_v44 = vadd.f32 %v9683_v2, %v4494_v25  ;;  %v4648_v34 = vadd.f32 %v4647_v29, %v9681_v61  ;;  %v4828_v40 = vsel %vm1060_vm1, %v9716_v35, -inf }
 0xa35   : > { %4676 = vmax.xlane.f32.xlu1 %v4675_v27  ;;  %v4483_v31 = vpop.f32.mrb[130].mxu1  ;;  %v9721_v33 = vmax.f32 %v4646_v26, 0.0 }
 0xa36   : > { %v4651_v32 = vpop.f32.mrb[132].mxu0  ;;  %4512 = vst.msk [vmem:[%s9690_s2 + $0x10] sm:$0xff] %vm4509_vm0, %v4506_v44  ;;  %v4495_v36 = vadd.f32 %v4483_v31, %v4361_v48  ;;  %v7055_v37 = vpop.f32.mrb[131].mxu1  ;;  %v9730_v43 = vmax.f32 %v4648_v34, 0.0 }
 0xa37   : > { %v4653_v38 = vpop.f32.mrb[133].mxu0  ;;  %v4652_v39 = vadd.f32 %v4651_v32, %v9679_v60  ;;  %v4678_v47 = vsel %vm1060_vm1, %v9721_v33, -inf  ;;  %v4755_v50 = vsel %vm4748_vm9, %v9721_v33, -inf }
 0xa38   : > { %4753 = vmax.xlane.f32.xlu0 %v4752_v55  ;;  %v4507_v41 = vadd.f32 %v9683_v2, %v4495_v36  ;;  %v4654_v49 = vadd.f32 %v4653_v38, %v9681_v61 }
 0xa39   : > { %4829 = vmax.xlane.f32.xlu1 %v4828_v40  ;;  %v4488_v42 = vpop.f32.mrb[132].mxu1  ;;  %v9737_v63 = vmax.f32 %v4652_v39, 0.0 }
 0xa3a   : > { %v4657_v1 = vpop.f32.mrb[134].mxu0  ;;  %4513 = vst.msk [vmem:[%s9690_s2 + $0x18] sm:$0xff] %vm4509_vm0, %v4507_v41  ;;  %v4496_v45 = vadd.f32 %v4488_v42, %v9674_v53  ;;  %v7058_v48 = vpop.f32.mrb[133].mxu1  ;;  %v4831_v53 = vsel %vm1060_vm1, %v9730_v43, -inf  ;;  %v9747_v54 = vmax.f32 %v4654_v49, 0.0 }
 0xa3b   : > { %v4659_v46 = vpop.f32.mrb[135].mxu0  ;;  %v4658_v52 = vadd.f32 %v4657_v1, %v9679_v60  ;;  %v4681_v56 = vsel %vm1060_vm1, %v9737_v63, -inf  ;;  %v4758_v59 = vsel %vm4748_vm9, %v9737_v63, -inf }
 0xa3c   : > { %4679 = vmax.xlane.f32.xlu0 %v4678_v47  ;;  %v4508_v51 = vadd.f32 %v9683_v2, %v4496_v45  ;;  %v4660_v58 = vadd.f32 %v4659_v46, %v9681_v61  ;;  %v4834_v60 = vsel %vm1060_vm1, %v9747_v54, -inf }
 0xa3d   : > { %4756 = vmax.xlane.f32.xlu1 %v4755_v50  ;;  %v9751_v57 = vmax.f32 %v4658_v52, 0.0 }
 0xa3e   : > { %4515 = vst.msk [vmem:[%s9690_s2 + $0x20] sm:$0x1] %vm4514_vm10, %v4508_v51  ;;  %v9758_v62 = vmax.f32 %v4660_v58, 0.0  ;;  %v5056_v58 = vld [vmem:[%s10196_s21] sm:$0xff]  ;;  %s10071_s2 = scalar_lea.vmem %s10199_s6, %s8510_s27 }
 0xa3f   : > { %v4685_v2 = vsel %vm4684_vm11, %v9751_v57, -inf  ;;  %v4762_v3 = vsel %vm4761_vm12, %v9751_v57, -inf }
 0xa40   : > { %4832 = vmax.xlane.f32.xlu0 %v4831_v53  ;;  %v4837_v61 = vsel %vm4684_vm11, %v9758_v62, -inf  ;;  %v4915_v53 = vld [vmem:[#allocation18] sm:$0xff] }
 0xa41   : > { %4682 = vmax.xlane.f32.xlu1 %v4681_v56  ;;  %v4916_v56 = vld [vmem:[#allocation18 + $0x8] sm:$0xff] }
 0xa44   : > { %4759 = vmax.xlane.f32.xlu0 %v4758_v59  ;;  %v7459_v59 = vpack.c.bf16 %v4916_v56, %v4915_v53  ;;  %v5068_v53 = vld [vmem:[%s10196_s21 + $0x60] sm:$0xff]  ;;  %v5069_v56 = vld [vmem:[%s10196_s21 + $0x68] sm:$0xff] }
 0xa45   : > { %4835 = vmax.xlane.f32.xlu1 %v4834_v60  ;;  %v5057_v60 = vld [vmem:[%s10196_s21 + $0x8] sm:$0xff] }
 0xa46   : > { %7460 = vmatpush1.bf16.msra.mxu1 %v7459_v59  ;;  %v7513_v59 = vpack.c.bf16 %v5069_v56, %v5068_v53  ;;  %v4935_v53 = vld [vmem:[#allocation18 + $0xa0] sm:$0xff]  ;;  %v4936_v56 = vld [vmem:[#allocation18 + $0xa8] sm:$0xff] }
 0xa47   : > { %7461 = vmatprep.subr.bf16.mxu1 %v8027_v0 }
 0xa48   : > { %4686 = vmax.xlane.f32.xlu0 %v4685_v2  ;;  %v4917_v2 = vld [vmem:[#allocation18 + $0x10] sm:$0xff] }
 0xa49   : > { %4763 = vmax.xlane.f32.xlu1 %v4762_v3  ;;  %v4918_v3 = vld [vmem:[#allocation18 + $0x18] sm:$0xff] }
 0xa4c   : > { %4838 = vmax.xlane.f32.xlu0 %v4837_v61  ;;  %v7495_v61 = vpack.c.bf16 %v5057_v60, %v5056_v58  ;;  %v4929_v60 = vld [vmem:[#allocation18 + $0x70] sm:$0xff] }
 0xa4e   : > { %7496 = vmatpush1.bf16.msra.mxu0 %v7495_v61  ;;  %v5071_v61 = vld [vmem:[%s10196_s21 + $0x78] sm:$0xff] }
 0xa4f   : > { %7497 = vmatprep.subr.bf16.mxu0 %v8027_v0 }
 0xabd   : > { %v4674_v4 = vpop.xlane.xlu0 %4673 }
 0xabe   : > { %vm4688_vm13 = vcmp.ge.f32.partialorder %v9694_v10, %v4674_v4  ;;  %v4827_v5 = vpop.xlane.xlu1 %4826  ;;  %v5058_v4 = vld [vmem:[%s10196_s21 + $0x10] sm:$0xff] }
 0xabf   : > { %v9768_v6 = vsel %vm4688_vm13, -inf, %v9694_v10  ;;  %vm4840_vm15 = vcmp.ge.f32.partialorder %v9696_v11, %v4827_v5  ;;  %v5059_v5 = vld [vmem:[%s10196_s21 + $0x18] sm:$0xff] }
 0xac0   : > { %v4698_v7 = vsel %vm1060_vm1, %v9768_v6, -inf  ;;  %v9774_v8 = vsel %vm4840_vm15, -inf, %v9696_v11 }
 0xac1   : > { %4699 = vmax.xlane.f32.xlu1 %v4698_v7  ;;  %v4751_v9 = vpop.xlane.xlu0 %4750  ;;  %v4850_v14 = vsel %vm1060_vm1, %v9774_v8, -inf  ;;  %v7462_v7 = vpack.c.bf16 %v4918_v3, %v4917_v2  ;;  %v4930_v2 = vld [vmem:[#allocation18 + $0x78] sm:$0xff] }
 0xac2   : > { %vm4765_vm2 = vcmp.ge.f32.partialorder %v9694_v10, %v4751_v9  ;;  %v4677_v12 = vpop.xlane.xlu1 %4676  ;;  %v7498_v9 = vpack.c.bf16 %v5059_v5, %v5058_v4  ;;  %v5070_v3 = vld [vmem:[%s10196_s21 + $0x70] sm:$0xff]  ;;  %v7480_v4 = vpack.c.bf16 %v4930_v2, %v4929_v60  ;;  %v7489_v2 = vpack.c.bf16 %v4936_v56, %v4935_v53 }
 0xac3   : > { %v9778_v13 = vsel %vm4765_vm2, -inf, %v9694_v10  ;;  %vm4689_vm3 = vcmp.ge.f32.partialorder %v9707_v22, %v4677_v12  ;;  %v4919_v12 = vld [vmem:[#allocation18 + $0x20] sm:$0xff]  ;;  %7463 = vmatpush1.bf16.msra.mxu1 %v7462_v7  ;;  %v7516_v5 = vpack.c.bf16 %v5071_v61, %v5070_v3 }
 0xac4   : > { %v4775_v15 = vsel %vm4748_vm9, %v9778_v13, -inf  ;;  %v9786_v16 = vsel %vm4689_vm3, -inf, %v9707_v22  ;;  %7499 = vmatpush1.bf16.msra.mxu0 %v7498_v9  ;;  %7464 = vmatprep.subr.bf16.mxu1 %v8027_v0  ;;  %v4931_v7 = vld [vmem:[#allocation18 + $0x80] sm:$0xff]  ;;  %v4932_v9 = vld [vmem:[#allocation18 + $0x88] sm:$0xff] }
 0xac5   : > { %4851 = vmax.xlane.f32.xlu1 %v4850_v14  ;;  %4776 = vmax.xlane.f32.xlu0 %v4775_v15  ;;  %v4754_v17 = vpop.xlane.xlu0 %4753  ;;  %v4701_v20 = vsel %vm1060_vm1, %v9786_v16, -inf  ;;  %v4920_v14 = vld [vmem:[#allocation18 + $0x28] sm:$0xff] }
 0xac6   : > { %vm4766_vm4 = vcmp.ge.f32.partialorder %v9707_v22, %v4754_v17  ;;  %v4830_v18 = vpop.xlane.xlu1 %4829  ;;  %v5060_v15 = vld [vmem:[%s10196_s21 + $0x20] sm:$0xff]  ;;  %v5061_v17 = vld [vmem:[%s10196_s21 + $0x28] sm:$0xff]  ;;  %7500 = vmatprep.subr.bf16.mxu0 %v8027_v0 }
 0xac7   : > { %v9790_v19 = vsel %vm4766_vm4, -inf, %v9707_v22  ;;  %vm4841_vm6 = vcmp.ge.f32.partialorder %v9716_v35, %v4830_v18  ;;  %v7465_v18 = vpack.c.bf16 %v4920_v14, %v4919_v12  ;;  %v5072_v12 = vld [vmem:[%s10196_s21 + $0x80] sm:$0xff]  ;;  %v5073_v14 = vld [vmem:[%s10196_s21 + $0x88] sm:$0xff] }
 0xac8   : > { %v4778_v21 = vsel %vm4748_vm9, %v9790_v19, -inf  ;;  %v9798_v23 = vsel %vm4841_vm6, -inf, %v9716_v35 }
 0xac9   : > { %4702 = vmax.xlane.f32.xlu0 %v4701_v20  ;;  %4779 = vmax.xlane.f32.xlu1 %v4778_v21  ;;  %v4680_v24 = vpop.xlane.xlu0 %4679  ;;  %v4853_v28 = vsel %vm1060_vm1, %v9798_v23, -inf  ;;  %v7501_v20 = vpack.c.bf16 %v5061_v17, %v5060_v15  ;;  %v4921_v21 = vld [vmem:[#allocation18 + $0x30] sm:$0xff]  ;;  %v7483_v15 = vpack.c.bf16 %v4932_v9, %v4931_v7  ;;  %v7519_v17 = vpack.c.bf16 %v5073_v14, %v5072_v12  ;;  %v4938_v9 = vld [vmem:[#allocation18 + $0xb8] sm:$0xff] }
 0xaca   : > { %vm4690_vm7 = vcmp.ge.f32.partialorder %v9721_v33, %v4680_v24  ;;  %v4757_v25 = vpop.xlane.xlu1 %4756  ;;  %v4922_v24 = vld [vmem:[#allocation18 + $0x38] sm:$0xff]  ;;  %7466 = vmatpush1.bf16.msra.mxu1 %v7465_v18  ;;  %v4933_v18 = vld [vmem:[#allocation18 + $0x90] sm:$0xff] }
 0xacb   : > { %v9802_v26 = vsel %vm4690_vm7, -inf, %v9721_v33  ;;  %vm4767_vm8 = vcmp.ge.f32.partialorder %v9721_v33, %v4757_v25  ;;  %v5062_v25 = vld [vmem:[%s10196_s21 + $0x30] sm:$0xff]  ;;  %7502 = vmatpush1.bf16.msra.mxu0 %v7501_v20  ;;  %7467 = vmatprep.subr.bf16.mxu1 %v8027_v0  ;;  %v4937_v7 = vld [vmem:[#allocation18 + $0xb0] sm:$0xff] }
 0xacc   : > { %v4704_v29 = vsel %vm1060_vm1, %v9802_v26, -inf  ;;  %v9810_v30 = vsel %vm4767_vm8, -inf, %v9721_v33  ;;  %7503 = vmatprep.subr.bf16.mxu0 %v8027_v0  ;;  %v4934_v20 = vld [vmem:[#allocation18 + $0x98] sm:$0xff] }
 0xacd   : > { %4854 = vmax.xlane.f32.xlu0 %v4853_v28  ;;  %4705 = vmax.xlane.f32.xlu1 %v4704_v29  ;;  %v4833_v27 = vpop.xlane.xlu0 %4832  ;;  %v4781_v32 = vsel %vm4748_vm9, %v9810_v30, -inf  ;;  %v5063_v28 = vld [vmem:[%s10196_s21 + $0x38] sm:$0xff]  ;;  %v7468_v29 = vpack.c.bf16 %v4922_v24, %v4921_v21  ;;  %v5074_v21 = vld [vmem:[%s10196_s21 + $0x90] sm:$0xff] }
 0xace   : > { %vm4842_vm0 = vcmp.ge.f32.partialorder %v9730_v43, %v4833_v27  ;;  %v4683_v44 = vpop.xlane.xlu1 %4682  ;;  %v7504_v27 = vpack.c.bf16 %v5063_v28, %v5062_v25  ;;  %v5075_v24 = vld [vmem:[%s10196_s21 + $0x98] sm:$0xff]  ;;  %v7486_v25 = vpack.c.bf16 %v4934_v20, %v4933_v18  ;;  %v5078_v12 = vld [vmem:[%s10196_s21 + $0xb0] sm:$0xff] }
 0xacf   : > { %v9814_v31 = vsel %vm4842_vm0, -inf, %v9730_v43  ;;  %vm4691_vm10 = vcmp.ge.f32.partialorder %v9737_v63, %v4683_v44  ;;  %v4923_v44 = vld [vmem:[#allocation18 + $0x40] sm:$0xff]  ;;  %7469 = vmatpush1.bf16.msra.mxu1 %v7468_v29  ;;  %v7522_v28 = vpack.c.bf16 %v5075_v24, %v5074_v21 }
 0xad0   : > { %v4856_v34 = vsel %vm1060_vm1, %v9814_v31, -inf  ;;  %v9822_v36 = vsel %vm4691_vm10, -inf, %v9737_v63  ;;  %7505 = vmatpush1.bf16.msra.mxu0 %v7504_v27  ;;  %7470 = vmatprep.subr.bf16.mxu1 %v8027_v0 }
 0xad1   : > { %4782 = vmax.xlane.f32.xlu0 %v4781_v32  ;;  %4857 = vmax.xlane.f32.xlu1 %v4856_v34  ;;  %v4760_v37 = vpop.xlane.xlu0 %4759  ;;  %v4707_v39 = vsel %vm1060_vm1, %v9822_v36, -inf  ;;  %v4924_v32 = vld [vmem:[#allocation18 + $0x48] sm:$0xff] }
 0xad2   : > { %vm4768_vm13 = vcmp.ge.f32.partialorder %v9737_v63, %v4760_v37  ;;  %v4836_v38 = vpop.xlane.xlu1 %4835  ;;  %v5064_v34 = vld [vmem:[%s10196_s21 + $0x40] sm:$0xff]  ;;  %v5065_v37 = vld [vmem:[%s10196_s21 + $0x48] sm:$0xff]  ;;  %7506 = vmatprep.subr.bf16.mxu0 %v8027_v0 }
 0xad3   : > { %v9826_v55 = vsel %vm4768_vm13, -inf, %v9737_v63  ;;  %vm4843_vm15 = vcmp.ge.f32.partialorder %v9747_v54, %v4836_v38  ;;  %v7471_v38 = vpack.c.bf16 %v4924_v32, %v4923_v44 }
 0xad4   : > { %v4784_v40 = vsel %vm4748_vm9, %v9826_v55, -inf  ;;  %v9834_v41 = vsel %vm4843_vm15, -inf, %v9747_v54 }
 0xad5   : > { %4708 = vmax.xlane.f32.xlu0 %v4707_v39  ;;  %4785 = vmax.xlane.f32.xlu1 %v4784_v40  ;;  %v4687_v42 = vpop.xlane.xlu0 %4686  ;;  %v4859_v46 = vsel %vm1060_vm1, %v9834_v41, -inf  ;;  %v7507_v39 = vpack.c.bf16 %v5065_v37, %v5064_v34  ;;  %v4925_v40 = vld [vmem:[#allocation18 + $0x50] sm:$0xff] }
 0xad6   : > { %vm4692_vm2 = vcmp.ge.f32.partialorder %v9751_v57, %v4687_v42  ;;  %v4764_v1 = vpop.xlane.xlu1 %4763  ;;  %v4926_v42 = vld [vmem:[#allocation18 + $0x58] sm:$0xff]  ;;  %7472 = vmatpush1.bf16.msra.mxu1 %v7471_v38 }
 0xad7   : > { %v9838_v45 = vsel %vm4692_vm2, -inf, %v9751_v57  ;;  %vm4769_vm3 = vcmp.ge.f32.partialorder %v9751_v57, %v4764_v1  ;;  %v5066_v1 = vld [vmem:[%s10196_s21 + $0x50] sm:$0xff]  ;;  %7508 = vmatpush1.bf16.msra.mxu0 %v7507_v39  ;;  %7473 = vmatprep.subr.bf16.mxu1 %v8027_v0 }
 0xad8   : > { %v4710_v47 = vsel %vm4684_vm11, %v9838_v45, -inf  ;;  %v9846_v48 = vsel %vm4769_vm3, -inf, %v9751_v57  ;;  %7509 = vmatprep.subr.bf16.mxu0 %v8027_v0 }
 0xad9   : > { %4860 = vmax.xlane.f32.xlu0 %v4859_v46  ;;  %4711 = vmax.xlane.f32.xlu1 %v4710_v47  ;;  %v4839_v49 = vpop.xlane.xlu0 %4838  ;;  %v4787_v51 = vsel %vm4761_vm12, %v9846_v48, -inf  ;;  %v5067_v46 = vld [vmem:[%s10196_s21 + $0x58] sm:$0xff]  ;;  %v7474_v47 = vpack.c.bf16 %v4926_v42, %v4925_v40 }
 0xada   : > { %vm4844_vm4 = vcmp.ge.f32.partialorder %v9758_v62, %v4839_v49  ;;  %v7510_v49 = vpack.c.bf16 %v5067_v46, %v5066_v1 }
 0xadb   : > { %v9850_v50 = vsel %vm4844_vm4, -inf, %v9758_v62  ;;  %7475 = vmatpush1.bf16.msra.mxu1 %v7474_v47 }
 0xadc   : > { %v4862_v52 = vsel %vm4684_vm11, %v9850_v50, -inf  ;;  %7511 = vmatpush1.bf16.msra.mxu0 %v7510_v49  ;;  %7476 = vmatprep.subr.bf16.mxu1 %v8027_v0 }
 0xadd   : > { %4788 = vmax.xlane.f32.xlu0 %v4787_v51  ;;  %4863 = vmax.xlane.f32.xlu1 %v4862_v52  ;;  %v4927_v51 = vld [vmem:[#allocation18 + $0x60] sm:$0xff]  ;;  %v4928_v52 = vld [vmem:[#allocation18 + $0x68] sm:$0xff] }
 0xade   : > { %v7477_v58 = vpack.c.bf16 %v4928_v52, %v4927_v51  ;;  %7512 = vmatprep.subr.bf16.mxu0 %v8027_v0 }
 0xae0   : > { %7478 = vmatpush1.bf16.msra.mxu1 %v7477_v58  ;;  %7514 = vmatpush1.bf16.msra.mxu0 %v7513_v59  ;;  %v5076_v58 = vld [vmem:[%s10196_s21 + $0xa0] sm:$0xff] }
 0xae1   : > { %7479 = vmatprep.subr.bf16.mxu1 %v8027_v0  ;;  %7515 = vmatprep.subr.bf16.mxu0 %v8027_v0 }
 0xae4   : > { %7481 = vmatpush1.bf16.msra.mxu1 %v7480_v4  ;;  %7517 = vmatpush1.bf16.msra.mxu0 %v7516_v5 }
 0xae5   : > { %7482 = vmatprep.subr.bf16.mxu1 %v8027_v0  ;;  %7518 = vmatprep.subr.bf16.mxu0 %v8027_v0 }
 0xae8   : > { %7484 = vmatpush1.bf16.msra.mxu1 %v7483_v15  ;;  %7520 = vmatpush1.bf16.msra.mxu0 %v7519_v17  ;;  %v7492_v15 = vpack.c.bf16 %v4938_v9, %v4937_v7 }
 0xae9   : > { %7485 = vmatprep.subr.bf16.mxu1 %v8027_v0  ;;  %7521 = vmatprep.subr.bf16.mxu0 %v8027_v0 }
 0xaec   : > { %7487 = vmatpush1.bf16.msra.mxu1 %v7486_v25  ;;  %7523 = vmatpush1.bf16.msra.mxu0 %v7522_v28 }
 0xaed   : > { %7488 = vmatprep.subr.bf16.mxu1 %v8027_v0  ;;  %7524 = vmatprep.subr.bf16.mxu0 %v8027_v0 }
 0xaf0   : > { %7490 = vmatpush1.bf16.msra.mxu1 %v7489_v2 }
 0xaf1   : > { %7491 = vmatprep.subr.bf16.mxu1 %v8027_v0 }
 0xaf4   : > { %7493 = vmatpush1.bf16.msra.mxu1 %v7492_v15 }
 0xb4e   : > { %v4700_v29 = vpop.xlane.xlu1 %4699 }
 0xb4f   : > { %vm4713_vm6 = vcmp.ge.f32.partialorder %v9768_v6, %v4700_v29 }
 0xb50   : > { %v4718_v27 = vsel %vm4713_vm6, -inf, %v9768_v6 }
 0xb51   : > { %v4723_v44 = vsel %vm1060_vm1, %v4718_v27, -inf }
 0xb52   : > { %v4852_v32 = vpop.xlane.xlu1 %4851  ;;  %4724 = vmax.xlane.f32.xlu0 %v4723_v44  ;;  %v4777_v34 = vpop.xlane.xlu0 %4776 }
 0xb53   : > { %vm4865_vm7 = vcmp.ge.f32.partialorder %v9774_v8, %v4852_v32  ;;  %vm4790_vm8 = vcmp.ge.f32.partialorder %v9778_v13, %v4777_v34 }
 0xb54   : > { %v4870_v37 = vsel %vm4865_vm7, -inf, %v9774_v8  ;;  %v4795_v38 = vsel %vm4790_vm8, -inf, %v9778_v13 }
 0xb55   : > { %v4875_v39 = vsel %vm1060_vm1, %v4870_v37, -inf  ;;  %v4800_v40 = vsel %vm4748_vm9, %v4795_v38, -inf }
 0xb56   : > { %4876 = vmax.xlane.f32.xlu0 %v4875_v39  ;;  %v4780_v42 = vpop.xlane.xlu1 %4779  ;;  %4801 = vmax.xlane.f32.xlu1 %v4800_v40  ;;  %v4703_v6 = vpop.xlane.xlu0 %4702 }
 0xb57   : > { %vm4791_vm0 = vcmp.ge.f32.partialorder %v9790_v19, %v4780_v42  ;;  %vm4714_vm10 = vcmp.ge.f32.partialorder %v9786_v16, %v4703_v6 }
 0xb58   : > { %v4796_v1 = vsel %vm4791_vm0, -inf, %v9790_v19  ;;  %v4719_v46 = vsel %vm4714_vm10, -inf, %v9786_v16 }
 0xb59   : > { %v4803_v8 = vsel %vm4748_vm9, %v4796_v1, -inf  ;;  %v4726_v13 = vsel %vm1060_vm1, %v4719_v46, -inf }
 0xb5a   : > { %4804 = vmax.xlane.f32.xlu0 %v4803_v8  ;;  %v4706_v47 = vpop.xlane.xlu1 %4705  ;;  %4727 = vmax.xlane.f32.xlu1 %v4726_v13  ;;  %v4855_v49 = vpop.xlane.xlu0 %4854 }
 0xb5b   : > { %vm4715_vm13 = vcmp.ge.f32.partialorder %v9802_v26, %v4706_v47  ;;  %vm4866_vm15 = vcmp.ge.f32.partialorder %v9798_v23, %v4855_v49 }
 0xb5c   : > { %v4720_v51 = vsel %vm4715_vm13, -inf, %v9802_v26  ;;  %v4871_v52 = vsel %vm4866_vm15, -inf, %v9798_v23  ;;  %v5077_v26 = vld [vmem:[%s10196_s21 + $0xa8] sm:$0xff] }
 0xb5d   : > { %v4729_v19 = vsel %vm1060_vm1, %v4720_v51, -inf  ;;  %v4878_v16 = vsel %vm1060_vm1, %v4871_v52, -inf  ;;  %v7525_v23 = vpack.c.bf16 %v5077_v26, %v5076_v58 }
 0xb5e   : > { %4730 = vmax.xlane.f32.xlu0 %v4729_v19  ;;  %v4858_v59 = vpop.xlane.xlu1 %4857  ;;  %4879 = vmax.xlane.f32.xlu1 %v4878_v16  ;;  %v4783_v60 = vpop.xlane.xlu0 %4782 }
 0xb5f   : > { %vm4867_vm2 = vcmp.ge.f32.partialorder %v9814_v31, %v4858_v59  ;;  %vm4792_vm3 = vcmp.ge.f32.partialorder %v9810_v30, %v4783_v60  ;;  %7526 = vmatpush1.bf16.msra.mxu0 %v7525_v23 }
 0xb60   : > { %v4872_v3 = vsel %vm4867_vm2, -inf, %v9814_v31  ;;  %v4797_v61 = vsel %vm4792_vm3, -inf, %v9810_v30  ;;  %v5079_v30 = vld [vmem:[%s10196_s21 + $0xb8] sm:$0xff]  ;;  %7527 = vmatprep.subr.bf16.mxu0 %v8027_v0 }
 0xb61   : > { %v4881_v4 = vsel %vm1060_vm1, %v4872_v3, -inf  ;;  %v4806_v5 = vsel %vm4748_vm9, %v4797_v61, -inf  ;;  %v7528_v17 = vpack.c.bf16 %v5079_v30, %v5078_v12  ;;  %v5749_v61 = vld [vmem:[#allocation20] ss:$0 sm:$0xff] }
 0xb62   : > { %4882 = vmax.xlane.f32.xlu0 %v4881_v4  ;;  %v4786_v14 = vpop.xlane.xlu1 %4785  ;;  %4807 = vmax.xlane.f32.xlu1 %v4806_v5  ;;  %v4709_v31 = vpop.xlane.xlu0 %4708 }
 0xb63   : > { %vm4793_vm4 = vcmp.ge.f32.partialorder %v9826_v55, %v4786_v14  ;;  %vm4716_vm6 = vcmp.ge.f32.partialorder %v9822_v36, %v4709_v31  ;;  %7529 = vmatpush1.bf16.msra.mxu0 %v7528_v17 }
 0xb64   : > { %v4798_v18 = vsel %vm4793_vm4, -inf, %v9826_v55  ;;  %v4721_v20 = vsel %vm4716_vm6, -inf, %v9822_v36 }
 0xb65   : > { %v4809_v21 = vsel %vm4748_vm9, %v4798_v18, -inf  ;;  %v4732_v24 = vsel %vm1060_vm1, %v4721_v20, -inf }
 0xb66   : > { %4810 = vmax.xlane.f32.xlu0 %v4809_v21  ;;  %v4712_v25 = vpop.xlane.xlu1 %4711  ;;  %4733 = vmax.xlane.f32.xlu1 %v4732_v24  ;;  %v4861_v28 = vpop.xlane.xlu0 %4860 }
 0xb67   : > { %vm4717_vm7 = vcmp.ge.f32.partialorder %v9838_v45, %v4712_v25  ;;  %vm4868_vm8 = vcmp.ge.f32.partialorder %v9834_v41, %v4861_v28 }
 0xb68   : > { %v4722_v0 = vsel %vm4717_vm7, -inf, %v9838_v45  ;;  %v4873_v55 = vsel %vm4868_vm8, -inf, %v9834_v41 }
 0xb69   : > { %v4735_v36 = vsel %vm4684_vm11, %v4722_v0, -inf  ;;  %v4884_v29 = vsel %vm1060_vm1, %v4873_v55, -inf }
 0xb6a   : > { %4736 = vmax.xlane.f32.xlu0 %v4735_v36  ;;  %v4864_v27 = vpop.xlane.xlu1 %4863  ;;  %4885 = vmax.xlane.f32.xlu1 %v4884_v29  ;;  %v4789_v44 = vpop.xlane.xlu0 %4788 }
 0xb6b   : > { %vm4869_vm9 = vcmp.ge.f32.partialorder %v9850_v50, %v4864_v27  ;;  %vm4794_vm0 = vcmp.ge.f32.partialorder %v9846_v48, %v4789_v44 }
 0xb6c   : > { %v4874_v32 = vsel %vm4869_vm9, -inf, %v9850_v50  ;;  %v4799_v34 = vsel %vm4794_vm0, -inf, %v9846_v48 }
 0xb6d   : > { %v4887_v45 = vsel %vm4684_vm11, %v4874_v32, -inf  ;;  %v4812_v41 = vsel %vm4761_vm12, %v4799_v34, -inf }
 0xb6e   : > { %4888 = vmax.xlane.f32.xlu0 %v4887_v45  ;;  %4813 = vmax.xlane.f32.xlu1 %v4812_v41 }
 0xbdf   : > { %v4725_v37 = vpop.xlane.xlu0 %4724 }
 0xbe0   : > { %vm4738_vm10 = vcmp.ge.f32.partialorder %v9694_v10, %v4725_v37 }
 0xbe1   : > { %v4743_v48 = vsel %vm4738_vm10, %v9694_v10, 0.0 }
 0xbe3   : > { %v4802_v50 = vpop.xlane.xlu1 %4801  ;;  %v4877_v38 = vpop.xlane.xlu0 %4876 }
 0xbe4   : > { %vm4815_vm13 = vcmp.ge.f32.partialorder %v9694_v10, %v4802_v50  ;;  %vm4890_vm15 = vcmp.ge.f32.partialorder %v9696_v11, %v4877_v38 }
 0xbe5   : > { %v4820_v39 = vsel %vm4815_vm13, %v9694_v10, 0.0  ;;  %v4895_v40 = vsel %vm4890_vm15, %v9696_v11, 0.0 }
 0xbe6   : > { %v4900_v42 = vsel %vm1060_vm1, %v4743_v48, %v4820_v39  ;;  %4906 = vst.msk [vmem:[%s10000_s8 + $0x8] sm:$0xff] %vm1060_vm1, %v4895_v40  ;;  %5750 = vmatprep.mubr.msk.f32.mxu1 %vm1060_vm1, %v4895_v40  ;;  %5755 = vmatprep.mubr.msk.f32.mxu0 %vm1060_vm1, %v4895_v40 }
 0xbe7   : > { %4905 = vst [vmem:[%s10000_s8] sm:$0xff] %v4900_v42  ;;  %v4728_v6 = vpop.xlane.xlu1 %4727  ;;  %5145 = vmatmul.mubr.f32.vlgmr.msra.gmra.mrb[136].mxu0 %v4900_v42  ;;  %v4805_v1 = vpop.xlane.xlu0 %4804  ;;  %5026 = vmatmul.mubr.f32.vlgmr.msra.gmra.mrb[134].mxu1 %v4900_v42 }
 0xbe8   : > { %vm4739_vm12 = vcmp.ge.f32.partialorder %v9707_v22, %v4728_v6  ;;  %vm4816_vm2 = vcmp.ge.f32.partialorder %v9707_v22, %v4805_v1 }
 0xbe9   : > { %v4744_v10 = vsel %vm4739_vm12, %v9707_v22, 0.0  ;;  %v4821_v11 = vsel %vm4816_vm2, %v9707_v22, 0.0  ;;  %vm5170_vm12 = vcmask 244736  }
 0xbea   : > { %v4901_v46 = vsel %vm1060_vm1, %v4744_v10, %v4821_v11 }
 0xbeb   : > { %v4880_v8 = vpop.xlane.xlu1 %4879  ;;  %v4731_v13 = vpop.xlane.xlu0 %4730  ;;  %4907 = vst [vmem:[%s10000_s8 + $0x10] sm:$0xff] %v4901_v46 }
 0xbec   : > { %vm4891_vm3 = vcmp.ge.f32.partialorder %v9716_v35, %v4880_v8  ;;  %vm4740_vm4 = vcmp.ge.f32.partialorder %v9721_v33, %v4731_v13 }
 0xbed   : > { %v4896_v47 = vsel %vm4891_vm3, %v9716_v35, 0.0  ;;  %v4745_v51 = vsel %vm4740_vm4, %v9721_v33, 0.0 }
 0xbee   : > { %4908 = vst.msk [vmem:[%s10000_s8 + $0x18] sm:$0xff] %vm1060_vm1, %v4896_v47  ;;  %5751 = vmatprep.mubr.msk.f32.mxu1 %vm1060_vm1, %v4896_v47  ;;  %5756 = vmatprep.mubr.msk.f32.mxu0 %vm1060_vm1, %v4896_v47 }
 0xbef   : > { %v4808_v22 = vpop.xlane.xlu1 %4807  ;;  %5150 = vmatmul.mubr.f32.gmra.mrb[138].mxu0 %v4901_v46  ;;  %v4883_v49 = vpop.xlane.xlu0 %4882  ;;  %5031 = vmatmul.mubr.f32.gmra.mrb[136].mxu1 %v4901_v46 }
 0xbf0   : > { %vm4817_vm6 = vcmp.ge.f32.partialorder %v9721_v33, %v4808_v22  ;;  %vm4892_vm7 = vcmp.ge.f32.partialorder %v9730_v43, %v4883_v49 }
 0xbf1   : > { %v4822_v35 = vsel %vm4817_vm6, %v9721_v33, 0.0  ;;  %v4897_v52 = vsel %vm4892_vm7, %v9730_v43, 0.0 }
 0xbf2   : > { %4910 = vst.msk [vmem:[%s10000_s8 + $0x28] sm:$0xff] %vm1060_vm1, %v4897_v52  ;;  %5752 = vmatprep.mubr.msk.f32.mxu1 %vm1060_vm1, %v4897_v52  ;;  %5757 = vmatprep.mubr.msk.f32.mxu0 %vm1060_vm1, %v4897_v52  ;;  %v4902_v19 = vsel %vm1060_vm1, %v4745_v51, %v4822_v35 }
 0xbf3   : > { %v4734_v16 = vpop.xlane.xlu1 %4733  ;;  %4909 = vst [vmem:[%s10000_s8 + $0x20] sm:$0xff] %v4902_v19  ;;  %5155 = vmatmul.mubr.f32.gmra.mrb[140].mxu0 %v4902_v19  ;;  %v4811_v53 = vpop.xlane.xlu0 %4810  ;;  %5036 = vmatmul.mubr.f32.gmra.mrb[138].mxu1 %v4902_v19 }
 0xbf4   : > { %vm4741_vm8 = vcmp.ge.f32.partialorder %v9737_v63, %v4734_v16  ;;  %vm4818_vm9 = vcmp.ge.f32.partialorder %v9737_v63, %v4811_v53 }
 0xbf5   : > { %v4746_v33 = vsel %vm4741_vm8, %v9737_v63, 0.0  ;;  %v4823_v43 = vsel %vm4818_vm9, %v9737_v63, 0.0 }
 0xbf6   : > { %v4903_v56 = vsel %vm1060_vm1, %v4746_v33, %v4823_v43 }
 0xbf7   : > { %v4886_v58 = vpop.xlane.xlu1 %4885  ;;  %v4737_v59 = vpop.xlane.xlu0 %4736  ;;  %4911 = vst [vmem:[%s10000_s8 + $0x30] sm:$0xff] %v4903_v56 }
 0xbf8   : > { %vm4893_vm0 = vcmp.ge.f32.partialorder %v9747_v54, %v4886_v58  ;;  %vm4742_vm10 = vcmp.ge.f32.partialorder %v9751_v57, %v4737_v59 }
 0xbf9   : > { %v4898_v60 = vsel %vm4893_vm0, %v9747_v54, 0.0  ;;  %v4747_v54 = vsel %vm4742_vm10, %v9751_v57, 0.0 }
 0xbfa   : > { %4912 = vst.msk [vmem:[%s10000_s8 + $0x38] sm:$0xff] %vm1060_vm1, %v4898_v60  ;;  %5753 = vmatprep.mubr.msk.f32.mxu1 %vm1060_vm1, %v4898_v60  ;;  %5758 = vmatprep.mubr.msk.f32.mxu0 %vm1060_vm1, %v4898_v60 }
 0xbfb   : > { %v4814_v63 = vpop.xlane.xlu1 %4813  ;;  %5160 = vmatmul.mubr.f32.gmra.mrb[142].mxu0 %v4903_v56  ;;  %v4889_v2 = vpop.xlane.xlu0 %4888  ;;  %5041 = vmatmul.mubr.f32.gmra.mrb[140].mxu1 %v4903_v56 }
 0xbfc   : > { %vm4819_vm13 = vcmp.ge.f32.partialorder %v9751_v57, %v4814_v63  ;;  %vm4894_vm15 = vcmp.ge.f32.partialorder %v9758_v62, %v4889_v2 }
 0xbfd   : > { %v4824_v26 = vsel %vm4819_vm13, %v9751_v57, 0.0  ;;  %v4899_v23 = vsel %vm4894_vm15, %v9758_v62, 0.0 }
 0xbfe   : > { %4914 = vst.msk [vmem:[%s10000_s8 + $0x48] sm:$0x1] %vm4684_vm11, %v4899_v23  ;;  %5754 = vmatprep.mubr.msk.f32.mxu1 %vm1060_vm1, %v4899_v23  ;;  %5759 = vmatprep.mubr.msk.f32.mxu0 %vm1060_vm1, %v4899_v23  ;;  %v4904_v3 = vsel %vm1060_vm1, %v4747_v54, %v4824_v26  ;;  %vm5175_vm1 = vcmask 237568  }
 0xbff   : > { %4913 = vst [vmem:[%s10000_s8 + $0x40] sm:$0x1] %v4904_v3  ;;  %5046 = vmatmul.mubr.f32.gmra.mrb[142].mxu1 %v4904_v3  ;;  %5165 = vmatmul.mubr.f32.gmra.mrb[144].mxu0 %v4904_v3 }
 0xcba   : > { %v5027_v57 = vpop.f32.mrb[134].mxu1  ;;  %v5146_v62 = vpop.f32.mrb[136].mxu0 }
 0xcbb   : > { %v5028_v4 = vadd.f32 %v5749_v61, %v5027_v57  ;;  %5171 = vst.msk [vmem:[%s10065_s16] sm:$0xff] %vm5170_vm12, %v5146_v62  ;;  %v5029_v5 = vpop.f32.mrb[135].mxu1  ;;  %v5148_v7 = vpop.f32.mrb[137].mxu0 }
 0xcbd   : > { %5051 = vst.msk [vmem:[%s10071_s2] sm:$0xff] %vm2897_vm14, %v5028_v4 }
 0xcc2   : > { %v5032_v9 = vpop.f32.mrb[136].mxu1  ;;  %v5151_v12 = vpop.f32.mrb[138].mxu0 }
 0xcc3   : > { %v5033_v14 = vadd.f32 %v5749_v61, %v5032_v9  ;;  %5172 = vst.msk [vmem:[%s10065_s16 + $0x8] sm:$0xff] %vm5170_vm12, %v5151_v12  ;;  %v5034_v31 = vpop.f32.mrb[137].mxu1  ;;  %v5153_v15 = vpop.f32.mrb[139].mxu0 }
 0xcc5   : > { %5052 = vst.msk [vmem:[%s10071_s2 + $0x8] sm:$0xff] %vm2897_vm14, %v5033_v14 }
 0xcc6   : > { %v5037_v30 = vpop.f32.mrb[138].mxu1  ;;  %v5156_v17 = vpop.f32.mrb[140].mxu0 }
 0xcc7   : > { %v5038_v18 = vadd.f32 %v5749_v61, %v5037_v30  ;;  %5173 = vst.msk [vmem:[%s10065_s16 + $0x10] sm:$0xff] %vm5170_vm12, %v5156_v17  ;;  %v5039_v20 = vpop.f32.mrb[139].mxu1  ;;  %v5158_v21 = vpop.f32.mrb[141].mxu0 }
 0xcc9   : > { %5053 = vst.msk [vmem:[%s10071_s2 + $0x10] sm:$0xff] %vm2897_vm14, %v5038_v18 }
 0xcce   : > { %v5042_v24 = vpop.f32.mrb[140].mxu1  ;;  %v5161_v25 = vpop.f32.mrb[142].mxu0 }
 0xccf   : > { %v5043_v28 = vadd.f32 %v5749_v61, %v5042_v24  ;;  %5174 = vst.msk [vmem:[%s10065_s16 + $0x18] sm:$0xff] %vm5170_vm12, %v5161_v25  ;;  %v5044_v0 = vpop.f32.mrb[141].mxu1  ;;  %v5163_v55 = vpop.f32.mrb[143].mxu0 }
 0xcd1   : > { %5054 = vst.msk [vmem:[%s10071_s2 + $0x18] sm:$0xff] %vm2897_vm14, %v5043_v28 }
 0xcd2   : > { %v5047_v36 = vpop.f32.mrb[142].mxu1  ;;  %v5166_v29 = vpop.f32.mrb[144].mxu0 }
 0xcd3   : > { %v5048_v27 = vadd.f32 %v5749_v61, %v5047_v36  ;;  %5176 = vst.msk [vmem:[%s10065_s16 + $0x20] sm:$0x1] %vm5175_vm1, %v5166_v29  ;;  %v5049_v44 = vpop.f32.mrb[143].mxu1  ;;  %v5168_v32 = vpop.f32.mrb[145].mxu0 }
 0xcd5   : > { %5055 = vst.msk [vmem:[%s10071_s2 + $0x20] sm:$0x1] %vm2902_vm5, %v5048_v27 }
 0xcd6 PF: > { %s10200_s27 = sld [smem:[#allocation27_spill]] }
 0xcdc   : > { %s45_s8 = sadd.s32 1, %s10200_s27  }
 0xcdd   : > { %p42_p2 = scmp.ge.s32.totalorder %s45_s8, 4  }
 0xcdf   :  { %44 = sbr.rel (!%p42_p2) target bundleno = 28 (0x1c), region = 255 }
 0xce6   :  { %5262 = vsyncpa [#allocation5], 1 }
 0xce7   :  { %5264 = vsyncpa [#allocation5 + $0x1], 1 }
 0xce8   :  { %5265 = vsyncpa [#allocation7], 1 }
 0xce9   :  { %5266 = vsyncpa [#allocation10], 1 }
 0xcea   :  { %5267 = vsyncpa [#allocation13], 1 }
 0xceb   :  { %5268 = vsyncpa [#allocation16], 1 }
 0xcec   :  { %5269 = vsyncpa [#allocation19], 1 }

</bundles_post_ra>
